<compile_context>
chip_gen: v5e
topology: v5e:2x2
jax: 0.10.0
libtpu: 0.0.40
codegen_flags: <defaults>
</compile_context>

<pallas_src>
import jax
import jax.numpy as jnp
from jax import lax
from jax.experimental import pallas as pl
from jax.experimental.pallas import tpu as pltpu
import numpy as np

INPUT_SIZE = 512
HIDDEN = 128
OUT_SIZE = 6
OUT_PAD = 128          # lane-dense padded output width
_BT_CAP = 128          # batch-tile cap; sweep 32/64/128 when tuning per generation


def model3_kernel(x_ref, mask_ref, wih_ref, whh_ref, b_ref, wattn_ref,
                  wlin_ref, blin_ref, wout_ref, bout_ref,
                  y_ref,
                  gx_ref, hseq_ref):
    S, BT, IN = x_ref.shape
    H = whh_ref.shape[0]
    OUTP = wout_ref.shape[1]

    whh = whh_ref[...]                                        # (H, 4H) bf16

    # ---- hoisted input projection: gates_x = (x*mask) @ W_ih + b, one MXU call ----
    xm = x_ref[...] * mask_ref[...]                           # bf16 (S, BT, IN)
    gx = jnp.dot(xm.reshape(S * BT, IN), wih_ref[...],
                 preferred_element_type=jnp.float32) + b_ref[...]
    gx_ref[...] = gx.reshape(S, BT, 4 * H)                    # already time-major: no transpose

    # ---- LSTM recurrence (PyTorch gate order i, f, g, o), batched over BT ----
    def step(t, carry):
        h, c = carry                                          # f32 (BT, H)
        gates = gx_ref[t] + jnp.dot(h.astype(jnp.bfloat16), whh,
                                    preferred_element_type=jnp.float32)
        i = jax.nn.sigmoid(gates[:, 0:H])
        f = jax.nn.sigmoid(gates[:, H:2 * H])
        g = jnp.tanh(gates[:, 2 * H:3 * H])
        o = jax.nn.sigmoid(gates[:, 3 * H:4 * H])
        c = f * c + i * g
        h = o * jnp.tanh(c)
        hseq_ref[t] = h                                       # time-major (leading-axis) store
        return (h, c)

    h0 = jnp.zeros((BT, H), jnp.float32)
    lax.fori_loop(0, S, step, (h0, h0), unroll=min(S, 8))

    # ---- ReLU + layout-aware relayout (S,BT,H) -> (BT,S,H); bf16 for attention MXU ops ----
    henc = jnp.maximum(pltpu.einshape("sbh->bsh", hseq_ref[...]), 0.0
                       ).astype(jnp.bfloat16)                 # (BT, S, H)

    # ---- Attention: softmax((henc @ W_attn) @ henc^T) @ henc, batched over BT ----
    tmp = jnp.dot(henc.reshape(BT * S, H), wattn_ref[...],
                  preferred_element_type=jnp.float32)
    tmp = tmp.reshape(BT, S, H).astype(jnp.bfloat16)
    scores = lax.dot_general(tmp, henc, (((2,), (2,)), ((0,), (0,))),
                             preferred_element_type=jnp.float32)   # (BT, S, S)
    m = jnp.max(scores, axis=-1, keepdims=True)
    p = jnp.exp(scores - m)
    denom = jnp.sum(p, axis=-1, keepdims=True)
    probs = (p * pl.reciprocal(denom, approx=True)).astype(jnp.bfloat16)  # EUP divide
    attn = lax.dot_general(probs, henc, (((2,), (1,)), ((0,), (0,))),
                           preferred_element_type=jnp.float32)     # (BT, S, H)

    # ---- Linear -> ReLU -> Linear (output lane-padded to OUTP columns) ----
    lin = jnp.dot(attn.reshape(BT * S, H).astype(jnp.bfloat16), wlin_ref[...],
                  preferred_element_type=jnp.float32) + blin_ref[...]
    lin = jnp.maximum(lin, 0.0).astype(jnp.bfloat16)
    out = jnp.dot(lin, wout_ref[...],
                  preferred_element_type=jnp.float32) + bout_ref[...]
    y_ref[...] = out.reshape(BT, S, OUTP).astype(y_ref.dtype)


def _choose_bt(B, cap=_BT_CAP):
    """Batch tile: sublane-aligned (multiple of 8), large enough to fill the MXU M dim and
    amortize the serial LSTM chain, while keeping >= 2 grid steps (for B > 8) so v7x's two
    TensorCores both get work under the 'parallel' batch axis."""
    if B <= 8:
        return B                       # full-batch block (sublane rule satisfied by equality)
    return min(cap, max(8, (B // 2) // 8 * 8))


def _vmem_limit_bytes(bt, S, IN, H, OUTP):
    x_buf = 2 * S * bt * IN * 2                 # bf16, double-buffered
    msk_buf = 2 * S * bt * 1 * 2
    w_buf = 2 * ((IN + H) * 4 * H + 2 * H * H + H * OUTP) * 2   # bf16 weights, double-buffered
    b_buf = 2 * (4 * H + H + OUTP) * 4
    out_buf = 2 * bt * S * OUTP * 4
    scratch = S * bt * (4 * H + H) * 4          # gx + hseq scratch
    interm = 8 * bt * S * H * 4                 # headroom for henc/attn/lin temporaries
    est = x_buf + msk_buf + w_buf + b_buf + out_buf + scratch + interm
    return int(min(max(2 * est, 32 * 1024 * 1024), 64 * 1024 * 1024))


def model3_forward(x, mask, params, bt=None):
    B, S, IN = x.shape
    H = HIDDEN
    if bt is None:
        bt = _choose_bt(B)
    nb = -(-B // bt)
    B_pad = nb * bt

    # Wrapper-side layout plumbing (free): time-major, bf16 activations, zero-pad batch.
    x_tm = jnp.swapaxes(x, 0, 1).astype(jnp.bfloat16)        # (S, B, IN)
    m_tm = jnp.swapaxes(mask, 0, 1).astype(jnp.bfloat16)     # (S, B, 1)
    if B_pad != B:
        x_tm = jnp.pad(x_tm, ((0, 0), (0, B_pad - B), (0, 0)))
        m_tm = jnp.pad(m_tm, ((0, 0), (0, B_pad - B), (0, 0)))

    # bf16 weights for the MXU; f32 biases; output weight/bias lane-padded to OUT_PAD.
    wih = params["wih_t"].astype(jnp.bfloat16)
    whh = params["whh_t"].astype(jnp.bfloat16)
    wattn = params["w_attn"].astype(jnp.bfloat16)
    wlin = params["wlin_t"].astype(jnp.bfloat16)
    wout = jnp.zeros((H, OUT_PAD), jnp.bfloat16).at[:, :OUT_SIZE].set(
        params["wout_t"].astype(jnp.bfloat16))
    bout = jnp.zeros((1, OUT_PAD), jnp.float32).at[:, :OUT_SIZE].set(params["b_out"])

    rep = lambda shape: pl.BlockSpec(shape, lambda i: (0,) * len(shape))

    y_pad = pl.pallas_call(
        model3_kernel,
        out_shape=jax.ShapeDtypeStruct((B_pad, S, OUT_PAD), jnp.float32),
        grid_spec=pltpu.PrefetchScalarGridSpec(
            num_scalar_prefetch=0,
            grid=(nb,),
            in_specs=[
                pl.BlockSpec((S, bt, IN), lambda i: (0, i, 0)),   # x (time-major, bf16)
                pl.BlockSpec((S, bt, 1), lambda i: (0, i, 0)),    # mask (time-major, bf16)
                rep((IN, 4 * H)),                                 # W_ih^T (bf16)
                rep((H, 4 * H)),                                  # W_hh^T (bf16)
                rep((1, 4 * H)),                                  # b_ih + b_hh (f32)
                rep((H, H)),                                      # W_attn (bf16)
                rep((H, H)),                                      # W_lin^T (bf16)
                rep((1, H)),                                      # b_lin (f32)
                rep((H, OUT_PAD)),                                # W_out^T padded (bf16)
                rep((1, OUT_PAD)),                                # b_out padded (f32)
            ],
            out_specs=pl.BlockSpec((bt, S, OUT_PAD), lambda i: (i, 0, 0)),
            scratch_shapes=[
                pltpu.VMEM((S, bt, 4 * H), jnp.float32),          # hoisted gates_x (time-major)
                pltpu.VMEM((S, bt, H), jnp.float32),              # LSTM hidden sequence
            ],
        ),
        compiler_params=pltpu.CompilerParams(
            dimension_semantics=("parallel",),                    # independent batch tiles
            vmem_limit_bytes=_vmem_limit_bytes(bt, S, IN, H, OUT_PAD)),
    )(x_tm, m_tm, wih, whh, params["b_lstm"], wattn, wlin, params["b_lin"],
      wout, bout)

    return y_pad[:B, :, :OUT_SIZE]


def model3_reference(x, mask, params):
    """Pure-JAX f32 reference mirroring the PyTorch forward."""
    H = HIDDEN
    xm = x * mask  # (B, S, IN) * (B, S, 1)

    def cell(carry, x_t):
        h, c = carry
        gates = x_t @ params["wih_t"] + h @ params["whh_t"] + params["b_lstm"][0]
        i = jax.nn.sigmoid(gates[:, 0:H])
        f = jax.nn.sigmoid(gates[:, H:2 * H])
        g = jnp.tanh(gates[:, 2 * H:3 * H])
        o = jax.nn.sigmoid(gates[:, 3 * H:4 * H])
        c = f * c + i * g
        h = o * jnp.tanh(c)
        return (h, c), h

    B = x.shape[0]
    h0 = jnp.zeros((B, H), jnp.float32)
    _, hs = lax.scan(cell, (h0, h0), jnp.swapaxes(xm, 0, 1))
    hs = jnp.swapaxes(hs, 0, 1)                     # (B, S, H)
    henc = jnp.maximum(hs, 0.0)
    scores = jnp.einsum("bsh,hk,btk->bst", henc, params["w_attn"], henc)
    scores = jax.nn.softmax(scores, axis=-1)
    attn = jnp.einsum("bst,bth->bsh", scores, henc)
    lin = jnp.maximum(attn @ params["wlin_t"] + params["b_lin"][0], 0.0)
    return lin @ params["wout_t"] + params["b_out"][0]


def make_params(key):
    ks = jax.random.split(key, 9)
    H, IN = HIDDEN, INPUT_SIZE
    s_lstm = 1.0 / np.sqrt(H)
    wih = jax.random.uniform(ks[0], (4 * H, IN), jnp.float32, -s_lstm, s_lstm)
    whh = jax.random.uniform(ks[1], (4 * H, H), jnp.float32, -s_lstm, s_lstm)
    b_ih = jax.random.uniform(ks[2], (4 * H,), jnp.float32, -s_lstm, s_lstm)
    b_hh = jax.random.uniform(ks[3], (4 * H,), jnp.float32, -s_lstm, s_lstm)
    s_attn = np.sqrt(6.0 / (H + H))                 # xavier_uniform
    w_attn = jax.random.uniform(ks[4], (H, H), jnp.float32, -s_attn, s_attn)
    s_lin = 1.0 / np.sqrt(H)
    w_lin = jax.random.uniform(ks[5], (H, H), jnp.float32, -s_lin, s_lin)
    b_lin = jax.random.uniform(ks[6], (H,), jnp.float32, -s_lin, s_lin)
    w_out = jax.random.uniform(ks[7], (OUT_SIZE, H), jnp.float32, -s_lin, s_lin)
    b_out = jax.random.uniform(ks[8], (OUT_SIZE,), jnp.float32, -s_lin, s_lin)
    return {
        "wih_t": wih.T,                             # (IN, 4H)
        "whh_t": whh.T,                             # (H, 4H)
        "b_lstm": (b_ih + b_hh)[None, :],           # (1, 4H)
        "w_attn": w_attn,                           # (H, H)
        "wlin_t": w_lin.T,                          # (H, H)
        "b_lin": b_lin[None, :],                    # (1, H)
        "wout_t": w_out.T,                          # (H, OUT)
        "b_out": b_out[None, :],                    # (1, OUT)
    }


if __name__ == "__main__":
    key = jax.random.PRNGKey(0)
    kx, km, kp = jax.random.split(key, 3)
    B, S = 2, 8
    x = jax.random.normal(kx, (B, S, INPUT_SIZE), jnp.float32)
    mask = (jax.random.uniform(km, (B, S, 1)) > 0.2).astype(jnp.float32)
    params = make_params(kp)

    y = jax.block_until_ready(model3_forward(x, mask, params))
    y_ref = jax.block_until_ready(model3_reference(x, mask, params))

    # Tolerance accounts for bf16 MXU operands (f32 accumulation) and the approx
    # EUP reciprocal in the softmax; the reference is pure f32.
    np.testing.assert_allclose(np.asarray(y), np.asarray(y_ref), rtol=5e-2, atol=5e-2)

    print("KERNEL_OK")
</pallas_src>

<mosaic_0001>
module attributes {stable_mosaic.version = 11 : i64} {
  func.func @model3_kernel(%arg0: i32, %arg1: memref<8x2x512xbf16, #tpu.memory_space<vmem>>, %arg2: memref<8x2x1xbf16, #tpu.memory_space<vmem>>, %arg3: memref<512x512xbf16, #tpu.memory_space<vmem>>, %arg4: memref<128x512xbf16, #tpu.memory_space<vmem>>, %arg5: memref<1x512xf32, #tpu.memory_space<vmem>>, %arg6: memref<128x128xbf16, #tpu.memory_space<vmem>>, %arg7: memref<128x128xbf16, #tpu.memory_space<vmem>>, %arg8: memref<1x128xf32, #tpu.memory_space<vmem>>, %arg9: memref<128x128xbf16, #tpu.memory_space<vmem>>, %arg10: memref<1x128xf32, #tpu.memory_space<vmem>>, %arg11: memref<2x8x128xf32, #tpu.memory_space<vmem>>, %arg12: memref<8x2x512xf32, #tpu.memory_space<vmem>>, %arg13: memref<8x2x128xf32, #tpu.memory_space<vmem>>) attributes {dimension_semantics = [#tpu.dimension_semantics<parallel>], iteration_bounds = array<i64: 1>, scalar_prefetch = 0 : i64, scratch_operands = 2 : i64, tpu.core_type = #tpu.core_type<tc>, window_params = [{transform_indices = @transform_0, window_bounds = array<i64: 8, 2, 512>}, {transform_indices = @transform_1, window_bounds = array<i64: 8, 2, 1>}, {pipeline_mode = #tpu.pipeline_mode<synchronous>, transform_indices = @transform_2, window_bounds = array<i64: 512, 512>}, {pipeline_mode = #tpu.pipeline_mode<synchronous>, transform_indices = @transform_3, window_bounds = array<i64: 128, 512>}, {pipeline_mode = #tpu.pipeline_mode<synchronous>, transform_indices = @transform_4, window_bounds = array<i64: 1, 512>}, {pipeline_mode = #tpu.pipeline_mode<synchronous>, transform_indices = @transform_5, window_bounds = array<i64: 128, 128>}, {pipeline_mode = #tpu.pipeline_mode<synchronous>, transform_indices = @transform_6, window_bounds = array<i64: 128, 128>}, {pipeline_mode = #tpu.pipeline_mode<synchronous>, transform_indices = @transform_7, window_bounds = array<i64: 1, 128>}, {pipeline_mode = #tpu.pipeline_mode<synchronous>, transform_indices = @transform_8, window_bounds = array<i64: 128, 128>}, {pipeline_mode = #tpu.pipeline_mode<synchronous>, transform_indices = @transform_9, window_bounds = array<i64: 1, 128>}, {transform_indices = @transform_10, window_bounds = array<i64: 2, 8, 128>}]} {
    %c0 = arith.constant 0 : index
    %c0_0 = arith.constant 0 : index
    %0 = vector.load %arg4[%c0, %c0_0] : memref<128x512xbf16, #tpu.memory_space<vmem>>, vector<128x512xbf16>
    %c0_1 = arith.constant 0 : index
    %c0_2 = arith.constant 0 : index
    %c0_3 = arith.constant 0 : index
    %1 = vector.load %arg1[%c0_1, %c0_2, %c0_3] : memref<8x2x512xbf16, #tpu.memory_space<vmem>>, vector<8x2x512xbf16>
    %c0_4 = arith.constant 0 : index
    %c0_5 = arith.constant 0 : index
    %c0_6 = arith.constant 0 : index
    %2 = vector.load %arg2[%c0_4, %c0_5, %c0_6] : memref<8x2x1xbf16, #tpu.memory_space<vmem>>, vector<8x2x1xbf16>
    %3 = vector.broadcast %2 : vector<8x2x1xbf16> to vector<8x2x512xbf16>
    %4 = arith.mulf %1, %3 : vector<8x2x512xbf16>
    %5 = vector.shape_cast %4 : vector<8x2x512xbf16> to vector<16x512xbf16>
    %c0_7 = arith.constant 0 : index
    %c0_8 = arith.constant 0 : index
    %6 = vector.load %arg3[%c0_7, %c0_8] : memref<512x512xbf16, #tpu.memory_space<vmem>>, vector<512x512xbf16>
    %cst = arith.constant dense<0.000000e+00> : vector<16x512xf32>
    %7 = tpu.matmul %5, %6, %cst {dimension_numbers = #tpu.dot_dimension_numbers<[1], [0], [0], [1], [0, 0, 1, 1], [], []>} : vector<16x512xbf16>, vector<512x512xbf16>, vector<16x512xf32> -> vector<16x512xf32>
    %c0_9 = arith.constant 0 : index
    %c0_10 = arith.constant 0 : index
    %8 = vector.load %arg5[%c0_9, %c0_10] : memref<1x512xf32, #tpu.memory_space<vmem>>, vector<1x512xf32>
    %9 = vector.broadcast %8 : vector<1x512xf32> to vector<16x512xf32>
    %10 = arith.addf %7, %9 : vector<16x512xf32>
    %11 = vector.shape_cast %10 : vector<16x512xf32> to vector<8x2x512xf32>
    %c0_11 = arith.constant 0 : index
    %c0_12 = arith.constant 0 : index
    %c0_13 = arith.constant 0 : index
    %12 = vector.load %arg12[%c0_11, %c0_12, %c0_13] : memref<8x2x512xf32, #tpu.memory_space<vmem>>, vector<8x2x512xf32>
    tpu.vector_store %arg12[%c0_11, %c0_12, %c0_13], %11 {strides = array<i32>} : memref<8x2x512xf32, #tpu.memory_space<vmem>>, vector<8x2x512xf32>,
    %cst_14 = arith.constant 0.000000e+00 : f32
    %13 = vector.broadcast %cst_14 : f32 to vector<2x128xf32>
    %c0_i32 = arith.constant 0 : i32
    %14 = arith.index_cast %c0_i32 : i32 to index
    %c0_15 = arith.constant 0 : index
    %c0_16 = arith.constant 0 : index
    %15 = vector.load %arg12[%14, %c0_15, %c0_16] : memref<8x2x512xf32, #tpu.memory_space<vmem>>, vector<1x2x512xf32>
    %16 = vector.shape_cast %15 : vector<1x2x512xf32> to vector<2x512xf32>
    %17 = arith.truncf %13 : vector<2x128xf32> to vector<2x128xbf16>
    %cst_17 = arith.constant dense<0.000000e+00> : vector<2x512xf32>
    %18 = tpu.matmul %17, %0, %cst_17 {dimension_numbers = #tpu.dot_dimension_numbers<[1], [0], [0], [1], [0, 0, 1, 1], [], []>} : vector<2x128xbf16>, vector<128x512xbf16>, vector<2x512xf32> -> vector<2x512xf32>
    %19 = arith.addf %16, %18 : vector<2x512xf32>
    %20 = vector.extract_strided_slice %19 {offsets = [0, 0], sizes = [2, 128], strides = [1, 1]} : vector<2x512xf32> to vector<2x128xf32>
    %21 = arith.negf %20 : vector<2x128xf32>
    %22 = math.exp %21 : vector<2x128xf32>
    %cst_18 = arith.constant 1.000000e+00 : f32
    %23 = vector.broadcast %cst_18 : f32 to vector<2x128xf32>
    %24 = arith.addf %23, %22 : vector<2x128xf32>
    %25 = arith.divf %23, %24 : vector<2x128xf32>
    %26 = vector.extract_strided_slice %19 {offsets = [0, 128], sizes = [2, 128], strides = [1, 1]} : vector<2x512xf32> to vector<2x128xf32>
    %27 = arith.negf %26 : vector<2x128xf32>
    %28 = math.exp %27 : vector<2x128xf32>
    %cst_19 = arith.constant 1.000000e+00 : f32
    %29 = vector.broadcast %cst_19 : f32 to vector<2x128xf32>
    %30 = arith.addf %29, %28 : vector<2x128xf32>
    %31 = arith.divf %29, %30 : vector<2x128xf32>
    %32 = vector.extract_strided_slice %19 {offsets = [0, 256], sizes = [2, 128], strides = [1, 1]} : vector<2x512xf32> to vector<2x128xf32>
    %33 = math.tanh %32 : vector<2x128xf32>
    %34 = vector.extract_strided_slice %19 {offsets = [0, 384], sizes = [2, 128], strides = [1, 1]} : vector<2x512xf32> to vector<2x128xf32>
    %35 = arith.negf %34 : vector<2x128xf32>
    %36 = math.exp %35 : vector<2x128xf32>
    %cst_20 = arith.constant 1.000000e+00 : f32
    %37 = vector.broadcast %cst_20 : f32 to vector<2x128xf32>
    %38 = arith.addf %37, %36 : vector<2x128xf32>
    %39 = arith.divf %37, %38 : vector<2x128xf32>
    %40 = arith.mulf %31, %13 : vector<2x128xf32>
    %41 = arith.mulf %25, %33 : vector<2x128xf32>
    %42 = arith.addf %40, %41 : vector<2x128xf32>
    %43 = math.tanh %42 : vector<2x128xf32>
    %44 = arith.mulf %39, %43 : vector<2x128xf32>
    %45 = arith.index_cast %c0_i32 : i32 to index
    %c0_21 = arith.constant 0 : index
    %c0_22 = arith.constant 0 : index
    %46 = vector.load %arg13[%45, %c0_21, %c0_22] : memref<8x2x128xf32, #tpu.memory_space<vmem>>, vector<1x2x128xf32>
    %47 = vector.shape_cast %46 : vector<1x2x128xf32> to vector<2x128xf32>
    %48 = vector.shape_cast %44 : vector<2x128xf32> to vector<1x2x128xf32>
    tpu.vector_store %arg13[%45, %c0_21, %c0_22], %48 {strides = array<i32>} : memref<8x2x128xf32, #tpu.memory_space<vmem>>, vector<1x2x128xf32>,
    %c1_i32 = arith.constant 1 : i32
    %49 = arith.index_cast %c1_i32 : i32 to index
    %c0_23 = arith.constant 0 : index
    %c0_24 = arith.constant 0 : index
    %50 = vector.load %arg12[%49, %c0_23, %c0_24] : memref<8x2x512xf32, #tpu.memory_space<vmem>>, vector<1x2x512xf32>
    %51 = vector.shape_cast %50 : vector<1x2x512xf32> to vector<2x512xf32>
    %52 = arith.truncf %44 : vector<2x128xf32> to vector<2x128xbf16>
    %cst_25 = arith.constant dense<0.000000e+00> : vector<2x512xf32>
    %53 = tpu.matmul %52, %0, %cst_25 {dimension_numbers = #tpu.dot_dimension_numbers<[1], [0], [0], [1], [0, 0, 1, 1], [], []>} : vector<2x128xbf16>, vector<128x512xbf16>, vector<2x512xf32> -> vector<2x512xf32>
    %54 = arith.addf %51, %53 : vector<2x512xf32>
    %55 = vector.extract_strided_slice %54 {offsets = [0, 0], sizes = [2, 128], strides = [1, 1]} : vector<2x512xf32> to vector<2x128xf32>
    %56 = arith.negf %55 : vector<2x128xf32>
    %57 = math.exp %56 : vector<2x128xf32>
    %cst_26 = arith.constant 1.000000e+00 : f32
    %58 = vector.broadcast %cst_26 : f32 to vector<2x128xf32>
    %59 = arith.addf %58, %57 : vector<2x128xf32>
    %60 = arith.divf %58, %59 : vector<2x128xf32>
    %61 = vector.extract_strided_slice %54 {offsets = [0, 128], sizes = [2, 128], strides = [1, 1]} : vector<2x512xf32> to vector<2x128xf32>
    %62 = arith.negf %61 : vector<2x128xf32>
    %63 = math.exp %62 : vector<2x128xf32>
    %cst_27 = arith.constant 1.000000e+00 : f32
    %64 = vector.broadcast %cst_27 : f32 to vector<2x128xf32>
    %65 = arith.addf %64, %63 : vector<2x128xf32>
    %66 = arith.divf %64, %65 : vector<2x128xf32>
    %67 = vector.extract_strided_slice %54 {offsets = [0, 256], sizes = [2, 128], strides = [1, 1]} : vector<2x512xf32> to vector<2x128xf32>
    %68 = math.tanh %67 : vector<2x128xf32>
    %69 = vector.extract_strided_slice %54 {offsets = [0, 384], sizes = [2, 128], strides = [1, 1]} : vector<2x512xf32> to vector<2x128xf32>
    %70 = arith.negf %69 : vector<2x128xf32>
    %71 = math.exp %70 : vector<2x128xf32>
    %cst_28 = arith.constant 1.000000e+00 : f32
    %72 = vector.broadcast %cst_28 : f32 to vector<2x128xf32>
    %73 = arith.addf %72, %71 : vector<2x128xf32>
    %74 = arith.divf %72, %73 : vector<2x128xf32>
    %75 = arith.mulf %66, %42 : vector<2x128xf32>
    %76 = arith.mulf %60, %68 : vector<2x128xf32>
    %77 = arith.addf %75, %76 : vector<2x128xf32>
    %78 = math.tanh %77 : vector<2x128xf32>
    %79 = arith.mulf %74, %78 : vector<2x128xf32>
    %80 = arith.index_cast %c1_i32 : i32 to index
    %c0_29 = arith.constant 0 : index
    %c0_30 = arith.constant 0 : index
    %81 = vector.load %arg13[%80, %c0_29, %c0_30] : memref<8x2x128xf32, #tpu.memory_space<vmem>>, vector<1x2x128xf32>
    %82 = vector.shape_cast %81 : vector<1x2x128xf32> to vector<2x128xf32>
    %83 = vector.shape_cast %79 : vector<2x128xf32> to vector<1x2x128xf32>
    tpu.vector_store %arg13[%80, %c0_29, %c0_30], %83 {strides = array<i32>} : memref<8x2x128xf32, #tpu.memory_space<vmem>>, vector<1x2x128xf32>,
    %c2_i32 = arith.constant 2 : i32
    %84 = arith.index_cast %c2_i32 : i32 to index
    %c0_31 = arith.constant 0 : index
    %c0_32 = arith.constant 0 : index
    %85 = vector.load %arg12[%84, %c0_31, %c0_32] : memref<8x2x512xf32, #tpu.memory_space<vmem>>, vector<1x2x512xf32>
    %86 = vector.shape_cast %85 : vector<1x2x512xf32> to vector<2x512xf32>
    %87 = arith.truncf %79 : vector<2x128xf32> to vector<2x128xbf16>
    %cst_33 = arith.constant dense<0.000000e+00> : vector<2x512xf32>
    %88 = tpu.matmul %87, %0, %cst_33 {dimension_numbers = #tpu.dot_dimension_numbers<[1], [0], [0], [1], [0, 0, 1, 1], [], []>} : vector<2x128xbf16>, vector<128x512xbf16>, vector<2x512xf32> -> vector<2x512xf32>
    %89 = arith.addf %86, %88 : vector<2x512xf32>
    %90 = vector.extract_strided_slice %89 {offsets = [0, 0], sizes = [2, 128], strides = [1, 1]} : vector<2x512xf32> to vector<2x128xf32>
    %91 = arith.negf %90 : vector<2x128xf32>
    %92 = math.exp %91 : vector<2x128xf32>
    %cst_34 = arith.constant 1.000000e+00 : f32
    %93 = vector.broadcast %cst_34 : f32 to vector<2x128xf32>
    %94 = arith.addf %93, %92 : vector<2x128xf32>
    %95 = arith.divf %93, %94 : vector<2x128xf32>
    %96 = vector.extract_strided_slice %89 {offsets = [0, 128], sizes = [2, 128], strides = [1, 1]} : vector<2x512xf32> to vector<2x128xf32>
    %97 = arith.negf %96 : vector<2x128xf32>
    %98 = math.exp %97 : vector<2x128xf32>
    %cst_35 = arith.constant 1.000000e+00 : f32
    %99 = vector.broadcast %cst_35 : f32 to vector<2x128xf32>
    %100 = arith.addf %99, %98 : vector<2x128xf32>
    %101 = arith.divf %99, %100 : vector<2x128xf32>
    %102 = vector.extract_strided_slice %89 {offsets = [0, 256], sizes = [2, 128], strides = [1, 1]} : vector<2x512xf32> to vector<2x128xf32>
    %103 = math.tanh %102 : vector<2x128xf32>
    %104 = vector.extract_strided_slice %89 {offsets = [0, 384], sizes = [2, 128], strides = [1, 1]} : vector<2x512xf32> to vector<2x128xf32>
    %105 = arith.negf %104 : vector<2x128xf32>
    %106 = math.exp %105 : vector<2x128xf32>
    %cst_36 = arith.constant 1.000000e+00 : f32
    %107 = vector.broadcast %cst_36 : f32 to vector<2x128xf32>
    %108 = arith.addf %107, %106 : vector<2x128xf32>
    %109 = arith.divf %107, %108 : vector<2x128xf32>
    %110 = arith.mulf %101, %77 : vector<2x128xf32>
    %111 = arith.mulf %95, %103 : vector<2x128xf32>
    %112 = arith.addf %110, %111 : vector<2x128xf32>
    %113 = math.tanh %112 : vector<2x128xf32>
    %114 = arith.mulf %109, %113 : vector<2x128xf32>
    %115 = arith.index_cast %c2_i32 : i32 to index
    %c0_37 = arith.constant 0 : index
    %c0_38 = arith.constant 0 : index
    %116 = vector.load %arg13[%115, %c0_37, %c0_38] : memref<8x2x128xf32, #tpu.memory_space<vmem>>, vector<1x2x128xf32>
    %117 = vector.shape_cast %116 : vector<1x2x128xf32> to vector<2x128xf32>
    %118 = vector.shape_cast %114 : vector<2x128xf32> to vector<1x2x128xf32>
    tpu.vector_store %arg13[%115, %c0_37, %c0_38], %118 {strides = array<i32>} : memref<8x2x128xf32, #tpu.memory_space<vmem>>, vector<1x2x128xf32>,
    %c3_i32 = arith.constant 3 : i32
    %119 = arith.index_cast %c3_i32 : i32 to index
    %c0_39 = arith.constant 0 : index
    %c0_40 = arith.constant 0 : index
    %120 = vector.load %arg12[%119, %c0_39, %c0_40] : memref<8x2x512xf32, #tpu.memory_space<vmem>>, vector<1x2x512xf32>
    %121 = vector.shape_cast %120 : vector<1x2x512xf32> to vector<2x512xf32>
    %122 = arith.truncf %114 : vector<2x128xf32> to vector<2x128xbf16>
    %cst_41 = arith.constant dense<0.000000e+00> : vector<2x512xf32>
    %123 = tpu.matmul %122, %0, %cst_41 {dimension_numbers = #tpu.dot_dimension_numbers<[1], [0], [0], [1], [0, 0, 1, 1], [], []>} : vector<2x128xbf16>, vector<128x512xbf16>, vector<2x512xf32> -> vector<2x512xf32>
    %124 = arith.addf %121, %123 : vector<2x512xf32>
    %125 = vector.extract_strided_slice %124 {offsets = [0, 0], sizes = [2, 128], strides = [1, 1]} : vector<2x512xf32> to vector<2x128xf32>
    %126 = arith.negf %125 : vector<2x128xf32>
    %127 = math.exp %126 : vector<2x128xf32>
    %cst_42 = arith.constant 1.000000e+00 : f32
    %128 = vector.broadcast %cst_42 : f32 to vector<2x128xf32>
    %129 = arith.addf %128, %127 : vector<2x128xf32>
    %130 = arith.divf %128, %129 : vector<2x128xf32>
    %131 = vector.extract_strided_slice %124 {offsets = [0, 128], sizes = [2, 128], strides = [1, 1]} : vector<2x512xf32> to vector<2x128xf32>
    %132 = arith.negf %131 : vector<2x128xf32>
    %133 = math.exp %132 : vector<2x128xf32>
    %cst_43 = arith.constant 1.000000e+00 : f32
    %134 = vector.broadcast %cst_43 : f32 to vector<2x128xf32>
    %135 = arith.addf %134, %133 : vector<2x128xf32>
    %136 = arith.divf %134, %135 : vector<2x128xf32>
    %137 = vector.extract_strided_slice %124 {offsets = [0, 256], sizes = [2, 128], strides = [1, 1]} : vector<2x512xf32> to vector<2x128xf32>
    %138 = math.tanh %137 : vector<2x128xf32>
    %139 = vector.extract_strided_slice %124 {offsets = [0, 384], sizes = [2, 128], strides = [1, 1]} : vector<2x512xf32> to vector<2x128xf32>
    %140 = arith.negf %139 : vector<2x128xf32>
    %141 = math.exp %140 : vector<2x128xf32>
    %cst_44 = arith.constant 1.000000e+00 : f32
    %142 = vector.broadcast %cst_44 : f32 to vector<2x128xf32>
    %143 = arith.addf %142, %141 : vector<2x128xf32>
    %144 = arith.divf %142, %143 : vector<2x128xf32>
    %145 = arith.mulf %136, %112 : vector<2x128xf32>
    %146 = arith.mulf %130, %138 : vector<2x128xf32>
    %147 = arith.addf %145, %146 : vector<2x128xf32>
    %148 = math.tanh %147 : vector<2x128xf32>
    %149 = arith.mulf %144, %148 : vector<2x128xf32>
    %150 = arith.index_cast %c3_i32 : i32 to index
    %c0_45 = arith.constant 0 : index
    %c0_46 = arith.constant 0 : index
    %151 = vector.load %arg13[%150, %c0_45, %c0_46] : memref<8x2x128xf32, #tpu.memory_space<vmem>>, vector<1x2x128xf32>
    %152 = vector.shape_cast %151 : vector<1x2x128xf32> to vector<2x128xf32>
    %153 = vector.shape_cast %149 : vector<2x128xf32> to vector<1x2x128xf32>
    tpu.vector_store %arg13[%150, %c0_45, %c0_46], %153 {strides = array<i32>} : memref<8x2x128xf32, #tpu.memory_space<vmem>>, vector<1x2x128xf32>,
    %c4_i32 = arith.constant 4 : i32
    %154 = arith.index_cast %c4_i32 : i32 to index
    %c0_47 = arith.constant 0 : index
    %c0_48 = arith.constant 0 : index
    %155 = vector.load %arg12[%154, %c0_47, %c0_48] : memref<8x2x512xf32, #tpu.memory_space<vmem>>, vector<1x2x512xf32>
    %156 = vector.shape_cast %155 : vector<1x2x512xf32> to vector<2x512xf32>
    %157 = arith.truncf %149 : vector<2x128xf32> to vector<2x128xbf16>
    %cst_49 = arith.constant dense<0.000000e+00> : vector<2x512xf32>
    %158 = tpu.matmul %157, %0, %cst_49 {dimension_numbers = #tpu.dot_dimension_numbers<[1], [0], [0], [1], [0, 0, 1, 1], [], []>} : vector<2x128xbf16>, vector<128x512xbf16>, vector<2x512xf32> -> vector<2x512xf32>
    %159 = arith.addf %156, %158 : vector<2x512xf32>
    %160 = vector.extract_strided_slice %159 {offsets = [0, 0], sizes = [2, 128], strides = [1, 1]} : vector<2x512xf32> to vector<2x128xf32>
    %161 = arith.negf %160 : vector<2x128xf32>
    %162 = math.exp %161 : vector<2x128xf32>
    %cst_50 = arith.constant 1.000000e+00 : f32
    %163 = vector.broadcast %cst_50 : f32 to vector<2x128xf32>
    %164 = arith.addf %163, %162 : vector<2x128xf32>
    %165 = arith.divf %163, %164 : vector<2x128xf32>
    %166 = vector.extract_strided_slice %159 {offsets = [0, 128], sizes = [2, 128], strides = [1, 1]} : vector<2x512xf32> to vector<2x128xf32>
    %167 = arith.negf %166 : vector<2x128xf32>
    %168 = math.exp %167 : vector<2x128xf32>
    %cst_51 = arith.constant 1.000000e+00 : f32
    %169 = vector.broadcast %cst_51 : f32 to vector<2x128xf32>
    %170 = arith.addf %169, %168 : vector<2x128xf32>
    %171 = arith.divf %169, %170 : vector<2x128xf32>
    %172 = vector.extract_strided_slice %159 {offsets = [0, 256], sizes = [2, 128], strides = [1, 1]} : vector<2x512xf32> to vector<2x128xf32>
    %173 = math.tanh %172 : vector<2x128xf32>
    %174 = vector.extract_strided_slice %159 {offsets = [0, 384], sizes = [2, 128], strides = [1, 1]} : vector<2x512xf32> to vector<2x128xf32>
    %175 = arith.negf %174 : vector<2x128xf32>
    %176 = math.exp %175 : vector<2x128xf32>
    %cst_52 = arith.constant 1.000000e+00 : f32
    %177 = vector.broadcast %cst_52 : f32 to vector<2x128xf32>
    %178 = arith.addf %177, %176 : vector<2x128xf32>
    %179 = arith.divf %177, %178 : vector<2x128xf32>
    %180 = arith.mulf %171, %147 : vector<2x128xf32>
    %181 = arith.mulf %165, %173 : vector<2x128xf32>
    %182 = arith.addf %180, %181 : vector<2x128xf32>
    %183 = math.tanh %182 : vector<2x128xf32>
    %184 = arith.mulf %179, %183 : vector<2x128xf32>
    %185 = arith.index_cast %c4_i32 : i32 to index
    %c0_53 = arith.constant 0 : index
    %c0_54 = arith.constant 0 : index
    %186 = vector.load %arg13[%185, %c0_53, %c0_54] : memref<8x2x128xf32, #tpu.memory_space<vmem>>, vector<1x2x128xf32>
    %187 = vector.shape_cast %186 : vector<1x2x128xf32> to vector<2x128xf32>
    %188 = vector.shape_cast %184 : vector<2x128xf32> to vector<1x2x128xf32>
    tpu.vector_store %arg13[%185, %c0_53, %c0_54], %188 {strides = array<i32>} : memref<8x2x128xf32, #tpu.memory_space<vmem>>, vector<1x2x128xf32>,
    %c5_i32 = arith.constant 5 : i32
    %189 = arith.index_cast %c5_i32 : i32 to index
    %c0_55 = arith.constant 0 : index
    %c0_56 = arith.constant 0 : index
    %190 = vector.load %arg12[%189, %c0_55, %c0_56] : memref<8x2x512xf32, #tpu.memory_space<vmem>>, vector<1x2x512xf32>
    %191 = vector.shape_cast %190 : vector<1x2x512xf32> to vector<2x512xf32>
    %192 = arith.truncf %184 : vector<2x128xf32> to vector<2x128xbf16>
    %cst_57 = arith.constant dense<0.000000e+00> : vector<2x512xf32>
    %193 = tpu.matmul %192, %0, %cst_57 {dimension_numbers = #tpu.dot_dimension_numbers<[1], [0], [0], [1], [0, 0, 1, 1], [], []>} : vector<2x128xbf16>, vector<128x512xbf16>, vector<2x512xf32> -> vector<2x512xf32>
    %194 = arith.addf %191, %193 : vector<2x512xf32>
    %195 = vector.extract_strided_slice %194 {offsets = [0, 0], sizes = [2, 128], strides = [1, 1]} : vector<2x512xf32> to vector<2x128xf32>
    %196 = arith.negf %195 : vector<2x128xf32>
    %197 = math.exp %196 : vector<2x128xf32>
    %cst_58 = arith.constant 1.000000e+00 : f32
    %198 = vector.broadcast %cst_58 : f32 to vector<2x128xf32>
    %199 = arith.addf %198, %197 : vector<2x128xf32>
    %200 = arith.divf %198, %199 : vector<2x128xf32>
    %201 = vector.extract_strided_slice %194 {offsets = [0, 128], sizes = [2, 128], strides = [1, 1]} : vector<2x512xf32> to vector<2x128xf32>
    %202 = arith.negf %201 : vector<2x128xf32>
    %203 = math.exp %202 : vector<2x128xf32>
    %cst_59 = arith.constant 1.000000e+00 : f32
    %204 = vector.broadcast %cst_59 : f32 to vector<2x128xf32>
    %205 = arith.addf %204, %203 : vector<2x128xf32>
    %206 = arith.divf %204, %205 : vector<2x128xf32>
    %207 = vector.extract_strided_slice %194 {offsets = [0, 256], sizes = [2, 128], strides = [1, 1]} : vector<2x512xf32> to vector<2x128xf32>
    %208 = math.tanh %207 : vector<2x128xf32>
    %209 = vector.extract_strided_slice %194 {offsets = [0, 384], sizes = [2, 128], strides = [1, 1]} : vector<2x512xf32> to vector<2x128xf32>
    %210 = arith.negf %209 : vector<2x128xf32>
    %211 = math.exp %210 : vector<2x128xf32>
    %cst_60 = arith.constant 1.000000e+00 : f32
    %212 = vector.broadcast %cst_60 : f32 to vector<2x128xf32>
    %213 = arith.addf %212, %211 : vector<2x128xf32>
    %214 = arith.divf %212, %213 : vector<2x128xf32>
    %215 = arith.mulf %206, %182 : vector<2x128xf32>
    %216 = arith.mulf %200, %208 : vector<2x128xf32>
    %217 = arith.addf %215, %216 : vector<2x128xf32>
    %218 = math.tanh %217 : vector<2x128xf32>
    %219 = arith.mulf %214, %218 : vector<2x128xf32>
    %220 = arith.index_cast %c5_i32 : i32 to index
    %c0_61 = arith.constant 0 : index
    %c0_62 = arith.constant 0 : index
    %221 = vector.load %arg13[%220, %c0_61, %c0_62] : memref<8x2x128xf32, #tpu.memory_space<vmem>>, vector<1x2x128xf32>
    %222 = vector.shape_cast %221 : vector<1x2x128xf32> to vector<2x128xf32>
    %223 = vector.shape_cast %219 : vector<2x128xf32> to vector<1x2x128xf32>
    tpu.vector_store %arg13[%220, %c0_61, %c0_62], %223 {strides = array<i32>} : memref<8x2x128xf32, #tpu.memory_space<vmem>>, vector<1x2x128xf32>,
    %c6_i32 = arith.constant 6 : i32
    %224 = arith.index_cast %c6_i32 : i32 to index
    %c0_63 = arith.constant 0 : index
    %c0_64 = arith.constant 0 : index
    %225 = vector.load %arg12[%224, %c0_63, %c0_64] : memref<8x2x512xf32, #tpu.memory_space<vmem>>, vector<1x2x512xf32>
    %226 = vector.shape_cast %225 : vector<1x2x512xf32> to vector<2x512xf32>
    %227 = arith.truncf %219 : vector<2x128xf32> to vector<2x128xbf16>
    %cst_65 = arith.constant dense<0.000000e+00> : vector<2x512xf32>
    %228 = tpu.matmul %227, %0, %cst_65 {dimension_numbers = #tpu.dot_dimension_numbers<[1], [0], [0], [1], [0, 0, 1, 1], [], []>} : vector<2x128xbf16>, vector<128x512xbf16>, vector<2x512xf32> -> vector<2x512xf32>
    %229 = arith.addf %226, %228 : vector<2x512xf32>
    %230 = vector.extract_strided_slice %229 {offsets = [0, 0], sizes = [2, 128], strides = [1, 1]} : vector<2x512xf32> to vector<2x128xf32>
    %231 = arith.negf %230 : vector<2x128xf32>
    %232 = math.exp %231 : vector<2x128xf32>
    %cst_66 = arith.constant 1.000000e+00 : f32
    %233 = vector.broadcast %cst_66 : f32 to vector<2x128xf32>
    %234 = arith.addf %233, %232 : vector<2x128xf32>
    %235 = arith.divf %233, %234 : vector<2x128xf32>
    %236 = vector.extract_strided_slice %229 {offsets = [0, 128], sizes = [2, 128], strides = [1, 1]} : vector<2x512xf32> to vector<2x128xf32>
    %237 = arith.negf %236 : vector<2x128xf32>
    %238 = math.exp %237 : vector<2x128xf32>
    %cst_67 = arith.constant 1.000000e+00 : f32
    %239 = vector.broadcast %cst_67 : f32 to vector<2x128xf32>
    %240 = arith.addf %239, %238 : vector<2x128xf32>
    %241 = arith.divf %239, %240 : vector<2x128xf32>
    %242 = vector.extract_strided_slice %229 {offsets = [0, 256], sizes = [2, 128], strides = [1, 1]} : vector<2x512xf32> to vector<2x128xf32>
    %243 = math.tanh %242 : vector<2x128xf32>
    %244 = vector.extract_strided_slice %229 {offsets = [0, 384], sizes = [2, 128], strides = [1, 1]} : vector<2x512xf32> to vector<2x128xf32>
    %245 = arith.negf %244 : vector<2x128xf32>
    %246 = math.exp %245 : vector<2x128xf32>
    %cst_68 = arith.constant 1.000000e+00 : f32
    %247 = vector.broadcast %cst_68 : f32 to vector<2x128xf32>
    %248 = arith.addf %247, %246 : vector<2x128xf32>
    %249 = arith.divf %247, %248 : vector<2x128xf32>
    %250 = arith.mulf %241, %217 : vector<2x128xf32>
    %251 = arith.mulf %235, %243 : vector<2x128xf32>
    %252 = arith.addf %250, %251 : vector<2x128xf32>
    %253 = math.tanh %252 : vector<2x128xf32>
    %254 = arith.mulf %249, %253 : vector<2x128xf32>
    %255 = arith.index_cast %c6_i32 : i32 to index
    %c0_69 = arith.constant 0 : index
    %c0_70 = arith.constant 0 : index
    %256 = vector.load %arg13[%255, %c0_69, %c0_70] : memref<8x2x128xf32, #tpu.memory_space<vmem>>, vector<1x2x128xf32>
    %257 = vector.shape_cast %256 : vector<1x2x128xf32> to vector<2x128xf32>
    %258 = vector.shape_cast %254 : vector<2x128xf32> to vector<1x2x128xf32>
    tpu.vector_store %arg13[%255, %c0_69, %c0_70], %258 {strides = array<i32>} : memref<8x2x128xf32, #tpu.memory_space<vmem>>, vector<1x2x128xf32>,
    %c7_i32 = arith.constant 7 : i32
    %259 = arith.index_cast %c7_i32 : i32 to index
    %c0_71 = arith.constant 0 : index
    %c0_72 = arith.constant 0 : index
    %260 = vector.load %arg12[%259, %c0_71, %c0_72] : memref<8x2x512xf32, #tpu.memory_space<vmem>>, vector<1x2x512xf32>
    %261 = vector.shape_cast %260 : vector<1x2x512xf32> to vector<2x512xf32>
    %262 = arith.truncf %254 : vector<2x128xf32> to vector<2x128xbf16>
    %cst_73 = arith.constant dense<0.000000e+00> : vector<2x512xf32>
    %263 = tpu.matmul %262, %0, %cst_73 {dimension_numbers = #tpu.dot_dimension_numbers<[1], [0], [0], [1], [0, 0, 1, 1], [], []>} : vector<2x128xbf16>, vector<128x512xbf16>, vector<2x512xf32> -> vector<2x512xf32>
    %264 = arith.addf %261, %263 : vector<2x512xf32>
    %265 = vector.extract_strided_slice %264 {offsets = [0, 0], sizes = [2, 128], strides = [1, 1]} : vector<2x512xf32> to vector<2x128xf32>
    %266 = arith.negf %265 : vector<2x128xf32>
    %267 = math.exp %266 : vector<2x128xf32>
    %cst_74 = arith.constant 1.000000e+00 : f32
    %268 = vector.broadcast %cst_74 : f32 to vector<2x128xf32>
    %269 = arith.addf %268, %267 : vector<2x128xf32>
    %270 = arith.divf %268, %269 : vector<2x128xf32>
    %271 = vector.extract_strided_slice %264 {offsets = [0, 128], sizes = [2, 128], strides = [1, 1]} : vector<2x512xf32> to vector<2x128xf32>
    %272 = arith.negf %271 : vector<2x128xf32>
    %273 = math.exp %272 : vector<2x128xf32>
    %cst_75 = arith.constant 1.000000e+00 : f32
    %274 = vector.broadcast %cst_75 : f32 to vector<2x128xf32>
    %275 = arith.addf %274, %273 : vector<2x128xf32>
    %276 = arith.divf %274, %275 : vector<2x128xf32>
    %277 = vector.extract_strided_slice %264 {offsets = [0, 256], sizes = [2, 128], strides = [1, 1]} : vector<2x512xf32> to vector<2x128xf32>
    %278 = math.tanh %277 : vector<2x128xf32>
    %279 = vector.extract_strided_slice %264 {offsets = [0, 384], sizes = [2, 128], strides = [1, 1]} : vector<2x512xf32> to vector<2x128xf32>
    %280 = arith.negf %279 : vector<2x128xf32>
    %281 = math.exp %280 : vector<2x128xf32>
    %cst_76 = arith.constant 1.000000e+00 : f32
    %282 = vector.broadcast %cst_76 : f32 to vector<2x128xf32>
    %283 = arith.addf %282, %281 : vector<2x128xf32>
    %284 = arith.divf %282, %283 : vector<2x128xf32>
    %285 = arith.mulf %276, %252 : vector<2x128xf32>
    %286 = arith.mulf %270, %278 : vector<2x128xf32>
    %287 = arith.addf %285, %286 : vector<2x128xf32>
    %288 = math.tanh %287 : vector<2x128xf32>
    %289 = arith.mulf %284, %288 : vector<2x128xf32>
    %290 = arith.index_cast %c7_i32 : i32 to index
    %c0_77 = arith.constant 0 : index
    %c0_78 = arith.constant 0 : index
    %291 = vector.load %arg13[%290, %c0_77, %c0_78] : memref<8x2x128xf32, #tpu.memory_space<vmem>>, vector<1x2x128xf32>
    %292 = vector.shape_cast %291 : vector<1x2x128xf32> to vector<2x128xf32>
    %293 = vector.shape_cast %289 : vector<2x128xf32> to vector<1x2x128xf32>
    tpu.vector_store %arg13[%290, %c0_77, %c0_78], %293 {strides = array<i32>} : memref<8x2x128xf32, #tpu.memory_space<vmem>>, vector<1x2x128xf32>,
    %c8_i32 = arith.constant 8 : i32
    %c0_79 = arith.constant 0 : index
    %c0_80 = arith.constant 0 : index
    %c0_81 = arith.constant 0 : index
    %294 = vector.load %arg13[%c0_79, %c0_80, %c0_81] : memref<8x2x128xf32, #tpu.memory_space<vmem>>, vector<8x2x128xf32>
    %295 = tpu.transpose %294, [1, 0, 2] : vector<8x2x128xf32> -> vector<2x8x128xf32>
    %cst_82 = arith.constant 0.000000e+00 : f32
    %296 = vector.broadcast %cst_82 : f32 to vector<2x8x128xf32>
    %297 = arith.maximumf %295, %296 : vector<2x8x128xf32>
    %298 = arith.truncf %297 : vector<2x8x128xf32> to vector<2x8x128xbf16>
    %299 = vector.shape_cast %298 : vector<2x8x128xbf16> to vector<16x128xbf16>
    %c0_83 = arith.constant 0 : index
    %c0_84 = arith.constant 0 : index
    %300 = vector.load %arg6[%c0_83, %c0_84] : memref<128x128xbf16, #tpu.memory_space<vmem>>, vector<128x128xbf16>
    %cst_85 = arith.constant dense<0.000000e+00> : vector<16x128xf32>
    %301 = tpu.matmul %299, %300, %cst_85 {dimension_numbers = #tpu.dot_dimension_numbers<[1], [0], [0], [1], [0, 0, 1, 1], [], []>} : vector<16x128xbf16>, vector<128x128xbf16>, vector<16x128xf32> -> vector<16x128xf32>
    %302 = vector.shape_cast %301 : vector<16x128xf32> to vector<2x8x128xf32>
    %303 = arith.truncf %302 : vector<2x8x128xf32> to vector<2x8x128xbf16>
    %cst_86 = arith.constant dense<0.000000e+00> : vector<2x8x8xf32>
    %304 = tpu.matmul %303, %298, %cst_86 {dimension_numbers = #tpu.dot_dimension_numbers<[2], [2], [1], [1], [0, 0, 0, 1, 1, 1], [0], [0]>} : vector<2x8x128xbf16>, vector<2x8x128xbf16>, vector<2x8x8xf32> -> vector<2x8x8xf32>
    %cst_87 = arith.constant dense<0xFF800000> : vector<2x8xf32>
    %305 = vector.multi_reduction <maximumf>, %304, %cst_87 [2] : vector<2x8x8xf32> to vector<2x8xf32>
    %306 = vector.shape_cast %305 : vector<2x8xf32> to vector<2x8x1xf32>
    %307 = vector.broadcast %306 : vector<2x8x1xf32> to vector<2x8x8xf32>
    %308 = arith.subf %304, %307 : vector<2x8x8xf32>
    %309 = math.exp %308 : vector<2x8x8xf32>
    %cst_88 = arith.constant dense<0.000000e+00> : vector<2x8xf32>
    %310 = vector.multi_reduction <add>, %309, %cst_88 [2] : vector<2x8x8xf32> to vector<2x8xf32>
    %311 = vector.shape_cast %310 : vector<2x8xf32> to vector<2x8x1xf32>
    %312 = tpu.reciprocal %311 {approx = true} : vector<2x8x1xf32> -> vector<2x8x1xf32>
    %313 = vector.broadcast %312 : vector<2x8x1xf32> to vector<2x8x8xf32>
    %314 = arith.mulf %309, %313 : vector<2x8x8xf32>
    %315 = arith.truncf %314 : vector<2x8x8xf32> to vector<2x8x8xbf16>
    %cst_89 = arith.constant dense<0.000000e+00> : vector<2x8x128xf32>
    %316 = tpu.matmul %315, %298, %cst_89 {dimension_numbers = #tpu.dot_dimension_numbers<[2], [1], [1], [2], [0, 0, 0, 1, 1, 2], [0], [0]>} : vector<2x8x8xbf16>, vector<2x8x128xbf16>, vector<2x8x128xf32> -> vector<2x8x128xf32>
    %317 = vector.shape_cast %316 : vector<2x8x128xf32> to vector<16x128xf32>
    %318 = arith.truncf %317 : vector<16x128xf32> to vector<16x128xbf16>
    %c0_90 = arith.constant 0 : index
    %c0_91 = arith.constant 0 : index
    %319 = vector.load %arg7[%c0_90, %c0_91] : memref<128x128xbf16, #tpu.memory_space<vmem>>, vector<128x128xbf16>
    %cst_92 = arith.constant dense<0.000000e+00> : vector<16x128xf32>
    %320 = tpu.matmul %318, %319, %cst_92 {dimension_numbers = #tpu.dot_dimension_numbers<[1], [0], [0], [1], [0, 0, 1, 1], [], []>} : vector<16x128xbf16>, vector<128x128xbf16>, vector<16x128xf32> -> vector<16x128xf32>
    %c0_93 = arith.constant 0 : index
    %c0_94 = arith.constant 0 : index
    %321 = vector.load %arg8[%c0_93, %c0_94] : memref<1x128xf32, #tpu.memory_space<vmem>>, vector<1x128xf32>
    %322 = vector.broadcast %321 : vector<1x128xf32> to vector<16x128xf32>
    %323 = arith.addf %320, %322 : vector<16x128xf32>
    %cst_95 = arith.constant 0.000000e+00 : f32
    %324 = vector.broadcast %cst_95 : f32 to vector<16x128xf32>
    %325 = arith.maximumf %323, %324 : vector<16x128xf32>
    %326 = arith.truncf %325 : vector<16x128xf32> to vector<16x128xbf16>
    %c0_96 = arith.constant 0 : index
    %c0_97 = arith.constant 0 : index
    %327 = vector.load %arg9[%c0_96, %c0_97] : memref<128x128xbf16, #tpu.memory_space<vmem>>, vector<128x128xbf16>
    %cst_98 = arith.constant dense<0.000000e+00> : vector<16x128xf32>
    %328 = tpu.matmul %326, %327, %cst_98 {dimension_numbers = #tpu.dot_dimension_numbers<[1], [0], [0], [1], [0, 0, 1, 1], [], []>} : vector<16x128xbf16>, vector<128x128xbf16>, vector<16x128xf32> -> vector<16x128xf32>
    %c0_99 = arith.constant 0 : index
    %c0_100 = arith.constant 0 : index
    %329 = vector.load %arg10[%c0_99, %c0_100] : memref<1x128xf32, #tpu.memory_space<vmem>>, vector<1x128xf32>
    %330 = vector.broadcast %329 : vector<1x128xf32> to vector<16x128xf32>
    %331 = arith.addf %328, %330 : vector<16x128xf32>
    %332 = vector.shape_cast %331 : vector<16x128xf32> to vector<2x8x128xf32>
    %c0_101 = arith.constant 0 : index
    %c0_102 = arith.constant 0 : index
    %c0_103 = arith.constant 0 : index
    %333 = vector.load %arg11[%c0_101, %c0_102, %c0_103] : memref<2x8x128xf32, #tpu.memory_space<vmem>>, vector<2x8x128xf32>
    tpu.vector_store %arg11[%c0_101, %c0_102, %c0_103], %332 {strides = array<i32>} : memref<2x8x128xf32, #tpu.memory_space<vmem>>, vector<2x8x128xf32>,
    return
  }
  func.func @transform_0(%arg0: i32) -> (i32, i32, i32) {
    %c0_i32 = arith.constant 0 : i32
    %c0_i32_0 = arith.constant 0 : i32
    %c0_i32_1 = arith.constant 0 : i32
    return %c0_i32, %arg0, %c0_i32_0 : i32, i32, i32
  }
  func.func @transform_1(%arg0: i32) -> (i32, i32, i32) {
    %c0_i32 = arith.constant 0 : i32
    %c0_i32_0 = arith.constant 0 : i32
    %c0_i32_1 = arith.constant 0 : i32
    return %c0_i32, %arg0, %c0_i32_0 : i32, i32, i32
  }
  func.func @transform_2(%arg0: i32) -> (i32, i32) {
    %c0_i32 = arith.constant 0 : i32
    %c0_i32_0 = arith.constant 0 : i32
    %c0_i32_1 = arith.constant 0 : i32
    return %c0_i32, %c0_i32_0 : i32, i32
  }
  func.func @transform_3(%arg0: i32) -> (i32, i32) {
    %c0_i32 = arith.constant 0 : i32
    %c0_i32_0 = arith.constant 0 : i32
    %c0_i32_1 = arith.constant 0 : i32
    return %c0_i32, %c0_i32_0 : i32, i32
  }
  func.func @transform_4(%arg0: i32) -> (i32, i32) {
    %c0_i32 = arith.constant 0 : i32
    %c0_i32_0 = arith.constant 0 : i32
    %c0_i32_1 = arith.constant 0 : i32
    return %c0_i32, %c0_i32_0 : i32, i32
  }
  func.func @transform_5(%arg0: i32) -> (i32, i32) {
    %c0_i32 = arith.constant 0 : i32
    %c0_i32_0 = arith.constant 0 : i32
    %c0_i32_1 = arith.constant 0 : i32
    return %c0_i32, %c0_i32_0 : i32, i32
  }
  func.func @transform_6(%arg0: i32) -> (i32, i32) {
    %c0_i32 = arith.constant 0 : i32
    %c0_i32_0 = arith.constant 0 : i32
    %c0_i32_1 = arith.constant 0 : i32
    return %c0_i32, %c0_i32_0 : i32, i32
  }
  func.func @transform_7(%arg0: i32) -> (i32, i32) {
    %c0_i32 = arith.constant 0 : i32
    %c0_i32_0 = arith.constant 0 : i32
    %c0_i32_1 = arith.constant 0 : i32
    return %c0_i32, %c0_i32_0 : i32, i32
  }
  func.func @transform_8(%arg0: i32) -> (i32, i32) {
    %c0_i32 = arith.constant 0 : i32
    %c0_i32_0 = arith.constant 0 : i32
    %c0_i32_1 = arith.constant 0 : i32
    return %c0_i32, %c0_i32_0 : i32, i32
  }
  func.func @transform_9(%arg0: i32) -> (i32, i32) {
    %c0_i32 = arith.constant 0 : i32
    %c0_i32_0 = arith.constant 0 : i32
    %c0_i32_1 = arith.constant 0 : i32
    return %c0_i32, %c0_i32_0 : i32, i32
  }
  func.func @transform_10(%arg0: i32) -> (i32, i32, i32) {
    %c0_i32 = arith.constant 0 : i32
    %c0_i32_0 = arith.constant 0 : i32
    %c0_i32_1 = arith.constant 0 : i32
    return %arg0, %c0_i32, %c0_i32_0 : i32, i32, i32
  }
}

</mosaic_0001>

<bundles_post_ra>
// kernel: tpu_custom_call.1
= control target key start
LH: loop header
LB: loop body
LE: loop exit
PB: predicated region body
PF: predicated region fallthrough
CT: control target
= control target key end

     0   :  { %15 = vsyncpa [#allocation5], 0  ;;  %s5276_s0 = inlined_call_operand.hbm [shape: bf16[8,2,512], index: 0, kind: input, shape index: {}]   ;;  %s5277_s1 = inlined_call_operand.vmem [shape: bf16[8,2,1], index: 1, kind: input, shape index: {}]   ;;  %s5278_s2 = inlined_call_operand.hbm [shape: bf16[512,512], index: 2, kind: input, shape index: {}]   ;;  %s5279_s3 = inlined_call_operand.hbm [shape: bf16[128,512], index: 3, kind: input, shape index: {}]   ;;  %s5280_s4 = inlined_call_operand.vmem [shape: f32[1,512], index: 4, kind: input, shape index: {}]   ;;  %s5281_s5 = inlined_call_operand.hbm [shape: bf16[128,128], index: 5, kind: input, shape index: {}]   ;;  %s5282_s6 = inlined_call_operand.hbm [shape: bf16[128,128], index: 6, kind: input, shape index: {}]   ;;  %s5283_s7 = inlined_call_operand.vmem [shape: f32[1,128], index: 7, kind: input, shape index: {}]   ;;  %s5284_s8 = inlined_call_operand.hbm [shape: bf16[128,128], index: 8, kind: input, shape index: {}]   ;;  %s5285_s9 = inlined_call_operand.vmem [shape: f32[1,128], index: 9, kind: input, shape index: {}]   ;;  %s5286_s10 = inlined_call_operand.hbm [shape: f32[2,8,128], index: 10, kind: output, shape index: {}]  }
   0x1   :  { %16 = vsyncpa [#allocation8], 0 }
   0x2   :  { %17 = vsyncpa [#allocation11], 0 }
   0x3   :  { %18 = vsyncpa [#allocation14], 0  ;;  %s39_s15 = sshll.u32 %s5278_s2, 4  ;;  %s40_s15 = int_to_ptr.hbm [resolvable:$true] %s39_s15 }
   0x4   :  { %19 = vsyncpa [#allocation6], 0  ;;  %s4526_s16 = smov [#allocation7]   ;;  %s4527_s18 = smov 256  }
   0x5   :  { %s41_s17 = sshll.u32 %s4526_s16, 4  ;;  %s4528_s19 = smov 16   ;;  %s42_s17 = int_to_ptr.vmem [resolvable:$true] %s41_s17 }
   0x6   :  { %47 = dma.hbm_to_vmem [thread:$0]  %s40_s15, 16384, %s42_s17, [#allocation8], %s4527_s18, %s4527_s18, %s4528_s19  }
   0x7   :  { %s67_s22 = sshll.u32 %s5281_s5, 4  ;;  %s4529_s23 = smov [#allocation10]   ;;  %s68_s22 = int_to_ptr.hbm [resolvable:$true] %s67_s22 }
   0x8   :  { %s69_s24 = sshll.u32 %s4529_s23, 4  ;;  %s24_s27 = sshll.u32 %s5276_s0, 4  ;;  %s70_s24 = int_to_ptr.vmem [resolvable:$true] %s69_s24  ;;  %s25_s27 = int_to_ptr.hbm [resolvable:$true] %s24_s27 }
   0x9   :  { %s4530_s2 = smov 64   ;;  %s4531_s28 = smov 4  }
   0xa   :  { %75 = dma.hbm_to_vmem [thread:$0]  %s68_s22, 1024, %s70_s24, [#allocation11], %s4530_s2, %s4530_s2, %s4531_s28  }
   0xb   :  { %s52_s11 = sshll.u32 %s5279_s3, 4  ;;  %s4532_s12 = smov [#allocation4]   ;;  %s53_s11 = int_to_ptr.hbm [resolvable:$true] %s52_s11 }
   0xc   :  { %s26_s13 = sshll.u32 %s4532_s12, 4  ;;  %s4533_s5 = smov [#allocation9]   ;;  %s27_s13 = int_to_ptr.vmem [resolvable:$true] %s26_s13 }
   0xd   :  { %32 = dma.hbm_to_vmem [thread:$0]  %s25_s27, 512, %s27_s13, [#allocation5], %s4530_s2, %s4530_s2, %s4531_s28  }
   0xe   :  { %s54_s14 = sshll.u32 %s4533_s5, 4  ;;  %s80_s0 = sshll.u32 %s5282_s6, 4  ;;  %s55_s14 = int_to_ptr.vmem [resolvable:$true] %s54_s14  ;;  %s81_s0 = int_to_ptr.hbm [resolvable:$true] %s80_s0 }
   0xf   :  { %60 = dma.hbm_to_vmem [thread:$0]  %s53_s11, 4096, %s55_s14, [#allocation8], %s4527_s18, %s4527_s18, %s4528_s19  }
  0x10   :  { %s95_s21 = sshll.u32 %s5284_s8, 4  ;;  %s4534_s22 = smov [#allocation12]   ;;  %s96_s21 = int_to_ptr.hbm [resolvable:$true] %s95_s21 }
  0x11   :  { %s82_s3 = sshll.u32 %s4534_s22, 4  ;;  %s4535_s23 = smov [#allocation13]   ;;  %s83_s3 = int_to_ptr.vmem [resolvable:$true] %s82_s3 }
  0x12   :  { %88 = dma.hbm_to_vmem [thread:$0]  %s81_s0, 1024, %s83_s3, [#allocation11], %s4530_s2, %s4530_s2, %s4531_s28  }
  0x13   :  { %s97_s24 = sshll.u32 %s4535_s23, 4  ;;  %s98_s24 = int_to_ptr.vmem [resolvable:$true] %s97_s24 }
  0x14   :  { %103 = dma.hbm_to_vmem [thread:$0]  %s96_s21, 1024, %s98_s24, [#allocation14], %s4530_s2, %s4530_s2, %s4531_s28  }
  0x15   :  { %4516 = dma.done.wait [#allocation5], 512  }
  0x16   :  { %4517 = vsyncadd [#allocation5], 4294966784 }
  0x17   :  { %4518 = dma.done.wait [#allocation8], 20480  }
  0x18   :  { %4519 = vsyncadd [#allocation8], 4294946816 }
  0x19   :  { %4520 = dma.done.wait [#allocation11], 2048  }
  0x1a   :  { %4521 = vsyncadd [#allocation11], 4294965248 }
  0x1b   :  { %4522 = dma.done.wait [#allocation14], 1024  }
  0x1c   :  { %4523 = vsyncadd [#allocation14], 4294966272  ;;  %v4536_v0 = vmov 0   ;;  %v173_v1 = vld [vmem:[%s5277_s1 + $0x2] sm:$0x1]  ;;  %v4642_v57 = vld [vmem:[#allocation4] sm:$0xff]  }
  0x1d   :  { %4208 = vset.pattern.permute.xlu1 %v4536_v0  ;;  %4207 = vset.pattern.permute.xlu0 %v4536_v0  ;;  %v171_v2 = vld [vmem:[%s5277_s1] sm:$0x1]  ;;  %v175_v3 = vld [vmem:[%s5277_s1 + $0x4] sm:$0x1]  ;;  %v174_v4 = vld [vmem:[%s5277_s1 + $0x3] sm:$0x1]  ;;  %v4174_v62 = vunpack.c.l.bf16 %v4642_v57 }
  0x1e   :  { %4209 = vset.pattern.permute.xlu2 %v4536_v0  ;;  %193 = vperm.xlu1 %4208, %v173_v1   ;;  %v172_v5 = vld [vmem:[%s5277_s1 + $0x1] sm:$0x1]  ;;  %v176_v6 = vld [vmem:[%s5277_s1 + $0x5] sm:$0x1]  ;;  %v178_v7 = vld [vmem:[%s5277_s1 + $0x7] sm:$0x1] }
  0x1f   :  { %181 = vperm.xlu0 %4207, %v171_v2   ;;  %205 = vperm.xlu2 %4209, %v175_v3   ;;  %v177_v8 = vld [vmem:[%s5277_s1 + $0x6] sm:$0x1]  ;;  %v3340_v9 = vld [vmem:[#allocation7 + $0xe0] sm:$0xf]  ;;  %v4050_v10 = vld [vmem:[#allocation7 + $0xec] sm:$0xf0] }
  0x20   :  { %v3341_v11 = vor.u32 %v4050_v10, %v3340_v9  ;;  %v3468_v12 = vld [vmem:[#allocation7 + $0x1e0] sm:$0xf]  ;;  %v4082_v13 = vld [vmem:[#allocation7 + $0x1ec] sm:$0xf0]  ;;  %v4645_v9 = vld [vmem:[#allocation4 + $0x8] sm:$0xff]   ;;  %vm388_vm0 = vcmask 1040384  }
  0x21   :  { %v3596_v14 = vld [vmem:[#allocation7 + $0x2e0] sm:$0xf]  ;;  %v3469_v15 = vor.u32 %v4082_v13, %v3468_v12  ;;  %v4114_v16 = vld [vmem:[#allocation7 + $0x2ec] sm:$0xf0]  ;;  %vm392_vm1 = vcmask 1042434   ;;  %vm396_vm2 = vcmask 1041408  }
  0x22   :  { %v3724_v17 = vld [vmem:[#allocation7 + $0x3e0] sm:$0xf]  ;;  %v4146_v18 = vld [vmem:[#allocation7 + $0x3ec] sm:$0xf0]  ;;  %1248 = vmatpush.bf16.msra.mxu0 %v3341_v11  ;;  %v3597_v19 = vor.u32 %v4114_v16, %v3596_v14  ;;  %vm1487_vm3 = vcmask 1045508   ;;  %vm1491_vm4 = vcmask 1043458  }
  0x23   :  { %1262 = vmatpush.bf16.msra.mxu1 %v3469_v15  ;;  %v3725_v20 = vor.u32 %v4146_v18, %v3724_v17  ;;  %v3324_v21 = vld [vmem:[#allocation7 + $0xc0] sm:$0xf]  ;;  %v4046_v22 = vld [vmem:[#allocation7 + $0xcc] sm:$0xf0]  ;;  %vm1493_vm5 = vcmask 1045504   ;;  %vm1489_vm6 = vcmask 1043456  }
  0x24   :  { %v3452_v23 = vld [vmem:[#allocation7 + $0x1c0] sm:$0xf]  ;;  %1276 = vmatpush.bf16.msra.mxu2 %v3597_v19  ;;  %v3325_v24 = vor.u32 %v4046_v22, %v3324_v21  ;;  %v4078_v25 = vld [vmem:[#allocation7 + $0x1cc] sm:$0xf0]  ;;  %vm1495_vm7 = vcmask 1045506   ;;  %s4539_s20 = smov [#allocation15]  }
  0x25   :  { %v3580_v26 = vld [vmem:[#allocation7 + $0x2c0] sm:$0xf]  ;;  %v4110_v27 = vld [vmem:[#allocation7 + $0x2cc] sm:$0xf0]  ;;  %1290 = vmatpush.bf16.msra.mxu3 %v3725_v20  ;;  %v3453_v28 = vor.u32 %v4078_v25, %v3452_v23  ;;  %s3208_s21 = sshll.u32 %s4539_s20, 4  ;;  %s4540_s23 = smov 128   ;;  %s3209_s21 = int_to_ptr.vmem [resolvable:$true] %s3208_s21 }
  0x26   :  { %199 = vperm.xlu1 %4208, %v174_v4   ;;  %v3581_v29 = vor.u32 %v4110_v27, %v3580_v26  ;;  %v3708_v30 = vld [vmem:[#allocation7 + $0x3c0] sm:$0xf]  ;;  %v4142_v31 = vld [vmem:[#allocation7 + $0x3cc] sm:$0xf0]  ;;  %1249 = vmatpush.bf16.msra.mxu0 %v3325_v24  ;;  %v4178_v27 = vunpack.c.l.bf16 %v4645_v9  ;;  %s4541_s24 = smov 8  }
  0x27   :  { %187 = vperm.xlu0 %4207, %v172_v5   ;;  %211 = vperm.xlu2 %4209, %v176_v6   ;;  %v3709_v32 = vor.u32 %v4142_v31, %v3708_v30  ;;  %v3308_v33 = vld [vmem:[#allocation7 + $0xa0] sm:$0xf]  ;;  %v4042_v34 = vld [vmem:[#allocation7 + $0xac] sm:$0xf0] }
  0x28   :  { %1263 = vmatpush.bf16.msra.mxu1 %v3453_v28  ;;  %1277 = vmatpush.bf16.msra.mxu2 %v3581_v29  ;;  %v3436_v35 = vld [vmem:[#allocation7 + $0x1a0] sm:$0xf]  ;;  %v3309_v36 = vor.u32 %v4042_v34, %v3308_v33  ;;  %v4074_v37 = vld [vmem:[#allocation7 + $0x1ac] sm:$0xf0]  ;;  %v4175_v33 = vunpack.c.h.bf16 %v4642_v57 }
  0x29   :  { %1291 = vmatpush.bf16.msra.mxu3 %v3709_v32  ;;  %v3564_v38 = vld [vmem:[#allocation7 + $0x2a0] sm:$0xf]  ;;  %v4106_v39 = vld [vmem:[#allocation7 + $0x2ac] sm:$0xf0]  ;;  %v3437_v40 = vor.u32 %v4074_v37, %v3436_v35 }
  0x2a   :  { %v3565_v41 = vor.u32 %v4106_v39, %v3564_v38  ;;  %v3692_v42 = vld [vmem:[#allocation7 + $0x3a0] sm:$0xf]  ;;  %v4138_v43 = vld [vmem:[#allocation7 + $0x3ac] sm:$0xf0]  ;;  %1250 = vmatpush.bf16.msra.mxu0 %v3309_v36 }
  0x2b   :  { %v3693_v44 = vor.u32 %v4138_v43, %v3692_v42  ;;  %v3292_v45 = vld [vmem:[#allocation7 + $0x80] sm:$0xf]  ;;  %v4038_v46 = vld [vmem:[#allocation7 + $0x8c] sm:$0xf0] }
  0x2c   :  { %1264 = vmatpush.bf16.msra.mxu1 %v3437_v40  ;;  %1278 = vmatpush.bf16.msra.mxu2 %v3565_v41  ;;  %v3293_v47 = vor.u32 %v4038_v46, %v3292_v45  ;;  %v3420_v48 = vld [vmem:[#allocation7 + $0x180] sm:$0xf]  ;;  %v4070_v49 = vld [vmem:[#allocation7 + $0x18c] sm:$0xf0] }
  0x2d   :  { %1292 = vmatpush.bf16.msra.mxu3 %v3693_v44  ;;  %v3548_v50 = vld [vmem:[#allocation7 + $0x280] sm:$0xf]  ;;  %v3421_v51 = vor.u32 %v4070_v49, %v3420_v48  ;;  %v4102_v52 = vld [vmem:[#allocation7 + $0x28c] sm:$0xf0] }
  0x2e   :  { %223 = vperm.xlu1 %4208, %v178_v7   ;;  %v3676_v53 = vld [vmem:[#allocation7 + $0x380] sm:$0xf]  ;;  %v4134_v54 = vld [vmem:[#allocation7 + $0x38c] sm:$0xf0]  ;;  %1251 = vmatpush.bf16.msra.mxu0 %v3293_v47  ;;  %v3549_v55 = vor.u32 %v4102_v52, %v3548_v50 }
  0x2f   :  { %217 = vperm.xlu0 %4207, %v177_v8   ;;  %v3677_v56 = vor.u32 %v4134_v54, %v3676_v53  ;;  %v3276_v59 = vld [vmem:[#allocation7 + $0x60] sm:$0xf]  ;;  %v4034_v60 = vld [vmem:[#allocation7 + $0x6c] sm:$0xf0] }
  0x30   :  { %1265 = vmatpush.bf16.msra.mxu1 %v3421_v51  ;;  %1279 = vmatpush.bf16.msra.mxu2 %v3549_v55  ;;  %v3404_v61 = vld [vmem:[#allocation7 + $0x160] sm:$0xf]  ;;  %v3277_v1 = vor.u32 %v4034_v60, %v3276_v59  ;;  %v4066_v2 = vld [vmem:[#allocation7 + $0x16c] sm:$0xf0] }
  0x31   :  { %1293 = vmatpush.bf16.msra.mxu3 %v3677_v56  ;;  %v3532_v3 = vld [vmem:[#allocation7 + $0x260] sm:$0xf]  ;;  %v3405_v5 = vor.u32 %v4066_v2, %v3404_v61  ;;  %v4098_v6 = vld [vmem:[#allocation7 + $0x26c] sm:$0xf0] }
  0x32   :  { %v3660_v7 = vld [vmem:[#allocation7 + $0x360] sm:$0xf]  ;;  %v4130_v8 = vld [vmem:[#allocation7 + $0x36c] sm:$0xf0]  ;;  %1252 = vmatpush.bf16.msra.mxu0 %v3277_v1  ;;  %v3533_v12 = vor.u32 %v4098_v6, %v3532_v3 }
  0x33   :  { %v3661_v13 = vor.u32 %v4130_v8, %v3660_v7  ;;  %v3260_v14 = vld [vmem:[#allocation7 + $0x40] sm:$0xf]  ;;  %v4030_v15 = vld [vmem:[#allocation7 + $0x4c] sm:$0xf0] }
  0x34   :  { %1266 = vmatpush.bf16.msra.mxu1 %v3405_v5  ;;  %v3388_v16 = vld [vmem:[#allocation7 + $0x140] sm:$0xf]  ;;  %1280 = vmatpush.bf16.msra.mxu2 %v3533_v12  ;;  %v3261_v18 = vor.u32 %v4030_v15, %v3260_v14  ;;  %v4062_v19 = vld [vmem:[#allocation7 + $0x14c] sm:$0xf0]  ;;  %v3470_v14 = vld [vmem:[#allocation7 + $0x1f0] sm:$0xf0] }
  0x35   :  { %1294 = vmatpush.bf16.msra.mxu3 %v3661_v13  ;;  %v3516_v20 = vld [vmem:[#allocation7 + $0x240] sm:$0xf]  ;;  %v4094_v21 = vld [vmem:[#allocation7 + $0x24c] sm:$0xf0]  ;;  %v3389_v22 = vor.u32 %v4062_v19, %v3388_v16  ;;  %v4080_v13 = vld [vmem:[#allocation7 + $0x1e4] sm:$0xf] }
  0x36   :  { %v3517_v23 = vor.u32 %v4094_v21, %v3516_v20  ;;  %v3644_v24 = vld [vmem:[#allocation7 + $0x340] sm:$0xf]  ;;  %v4126_v25 = vld [vmem:[#allocation7 + $0x34c] sm:$0xf0]  ;;  %1253 = vmatpush.bf16.msra.mxu0 %v3261_v18  ;;  %v4112_v15 = vld [vmem:[#allocation7 + $0x2e4] sm:$0xf]  ;;  %v3473_v16 = vor.u32 %v4080_v13, %v3470_v14 }
  0x37   :  { %v3645_v26 = vor.u32 %v4126_v25, %v3644_v24  ;;  %v3244_v30 = vld [vmem:[#allocation7 + $0x20] sm:$0xf]  ;;  %v4026_v31 = vld [vmem:[#allocation7 + $0x2c] sm:$0xf0]  ;;  %v4144_v18 = vld [vmem:[#allocation7 + $0x3e4] sm:$0xf] }
  0x38   :  { %1267 = vmatpush.bf16.msra.mxu1 %v3389_v22  ;;  %v3372_v32 = vld [vmem:[#allocation7 + $0x120] sm:$0xf]  ;;  %1281 = vmatpush.bf16.msra.mxu2 %v3517_v23  ;;  %v3245_v35 = vor.u32 %v4026_v31, %v3244_v30  ;;  %v4058_v36 = vld [vmem:[#allocation7 + $0x12c] sm:$0xf0]  ;;  %v3726_v19 = vld [vmem:[#allocation7 + $0x3f0] sm:$0xf0] }
  0x39   :  { %1295 = vmatpush.bf16.msra.mxu3 %v3645_v26  ;;  %v3500_v37 = vld [vmem:[#allocation7 + $0x220] sm:$0xf]  ;;  %v3373_v39 = vor.u32 %v4058_v36, %v3372_v32  ;;  %v4090_v40 = vld [vmem:[#allocation7 + $0x22c] sm:$0xf0]  ;;  %v4044_v22 = vld [vmem:[#allocation7 + $0xc4] sm:$0xf]  ;;  %v3729_v25 = vor.u32 %v4144_v18, %v3726_v19  ;;  %v4179_v32 = vunpack.c.h.bf16 %v4645_v9 }
  0x3a   :  { %v3628_v41 = vld [vmem:[#allocation7 + $0x320] sm:$0xf]  ;;  %v4122_v42 = vld [vmem:[#allocation7 + $0x32c] sm:$0xf0]  ;;  %1254 = vmatpush.bf16.msra.mxu0 %v3245_v35  ;;  %v3501_v45 = vor.u32 %v4090_v40, %v3500_v37  ;;  %v3326_v23 = vld [vmem:[#allocation7 + $0xd0] sm:$0xf0] }
  0x3b   :  { %v3629_v46 = vor.u32 %v4122_v42, %v3628_v41  ;;  %v4649_v48 = vld [vmem:[#allocation4 + $0x10] sm:$0xff]   ;;  %v3228_v49 = vld [vmem:[#allocation7] sm:$0xf]  ;;  %v4076_v24 = vld [vmem:[#allocation7 + $0x1c4] sm:$0xf]  ;;  %v3329_v26 = vor.u32 %v4044_v22, %v3326_v23 }
  0x3c   :  { %1268 = vmatpush.bf16.msra.mxu1 %v3373_v39  ;;  %v4022_v50 = vld [vmem:[#allocation7 + $0xc] sm:$0xf0]  ;;  %v3356_v51 = vld [vmem:[#allocation7 + $0x100] sm:$0xf]  ;;  %1282 = vmatpush.bf16.msra.mxu2 %v3501_v45  ;;  %v4660_v42 = vld [vmem:[#allocation4 + $0x18] sm:$0xff]   ;;  %v4183_v14 = vunpack.c.h.bf16 %v4649_v48 }
  0x3d   :  { %1296 = vmatpush.bf16.msra.mxu3 %v3629_v46  ;;  %v3229_v53 = vor.u32 %v4022_v50, %v3228_v49  ;;  %v4054_v54 = vld [vmem:[#allocation7 + $0x10c] sm:$0xf0]  ;;  %v3484_v55 = vld [vmem:[#allocation7 + $0x200] sm:$0xf]  ;;  %v4140_v9 = vld [vmem:[#allocation7 + $0x3c4] sm:$0xf] }
  0x3e   :  { %v4086_v56 = vld [vmem:[#allocation7 + $0x20c] sm:$0xf0]  ;;  %v3357_v59 = vor.u32 %v4054_v54, %v3356_v51  ;;  %v3612_v2 = vld [vmem:[#allocation7 + $0x300] sm:$0xf]  ;;  %v3710_v54 = vld [vmem:[#allocation7 + $0x3d0] sm:$0xf0] }
  0x3f   :  { %v3485_v60 = vor.u32 %v4086_v56, %v3484_v55  ;;  %1255 = vmatpush.bf16.msra.mxu0 %v3229_v53  ;;  %v4118_v3 = vld [vmem:[#allocation7 + $0x30c] sm:$0xf0]  ;;  %v3694_v18 = vld [vmem:[#allocation7 + $0x3b0] sm:$0xf0]  ;;  %v4036_v22 = vld [vmem:[#allocation7 + $0x84] sm:$0xf] }
  0x40   :  { %1269 = vmatpush.bf16.msra.mxu1 %v3357_v59  ;;  %v3613_v6 = vor.u32 %v4118_v3, %v3612_v2  ;;  %v3310_v59 = vld [vmem:[#allocation7 + $0xb0] sm:$0xf0]  ;;  %v4104_v3 = vld [vmem:[#allocation7 + $0x2a4] sm:$0xf] }
  0x41   :  { %1283 = vmatpush.bf16.msra.mxu2 %v3485_v60  ;;  %v4072_v60 = vld [vmem:[#allocation7 + $0x1a4] sm:$0xf]  ;;  %v3294_v23 = vld [vmem:[#allocation7 + $0x90] sm:$0xf0] }
  0x42   :  { %1297 = vmatpush.bf16.msra.mxu3 %v3613_v6 }
  0x44   :  { %1318 = vmatpush.bf16.msrb.mxu1 %v3473_v16 }
  0x46   :  { %1346 = vmatpush.bf16.msrb.mxu3 %v3729_v25 }
  0x79   :  { %v206_v38 = vpop.permute.xlu2 %205 }
  0x7a   :  { %v208_v43 = vperm.slane %v206_v38, 0 }
  0x7c   :  { %v239_v5 = vunpack.c.l.bf16 %v208_v43 }
  0x81   :  { %v212_v39 = vpop.permute.xlu2 %211 }
  0x82   :  { %v214_v49 = vperm.slane %v212_v39, 0 }
  0x90   :  { %v194_v4 = vpop.permute.xlu1 %193 }
  0x91   :  { %v182_v58 = vpop.permute.xlu0 %181  ;;  %v196_v10 = vperm.slane %v194_v4, 0  ;;  %v4182_v4 = vunpack.c.l.bf16 %v4649_v48 }
  0x92   :  { %v184_v63 = vperm.slane %v182_v58, 0 }
  0x93   :  { %v237_v28 = vunpack.c.l.bf16 %v196_v10  ;;  %v4048_v10 = vld [vmem:[#allocation7 + $0xe4] sm:$0xf]  ;;  %v247_v20 = vmul.f32 %v4182_v4, %v239_v5  ;;  %v3566_v4 = vld [vmem:[#allocation7 + $0x2b0] sm:$0xf0] }
  0x94   :  { %v235_v11 = vunpack.c.l.bf16 %v184_v63 }
  0x95   :  { %v245_v47 = vmul.f32 %v4178_v27, %v237_v28  ;;  %v3454_v27 = vld [vmem:[#allocation7 + $0x1d0] sm:$0xf0]  ;;  %v4108_v28 = vld [vmem:[#allocation7 + $0x2c4] sm:$0xf] }
  0x96   :  { %v243_v17 = vmul.f32 %v4174_v62, %v235_v11  ;;  %v3342_v11 = vld [vmem:[#allocation7 + $0xf0] sm:$0xf0] }
  0x97   :  { %v3345_v12 = vor.u32 %v4048_v10, %v3342_v11  ;;  %v3569_v11 = vor.u32 %v4104_v3, %v3566_v4 }
  0x98   :  { %259 = vst [vmem:[#allocation1] ss:$4 sm:$0xff] %v243_v17  ;;  %v200_v63 = vpop.permute.xlu1 %199  ;;  %v3598_v17 = vld [vmem:[#allocation7 + $0x2f0] sm:$0xf0] }
  0x99   :  { %v188_v29 = vpop.permute.xlu0 %187  ;;  %v202_v7 = vperm.slane %v200_v63, 0  ;;  %1304 = vmatpush.bf16.msrb.mxu0 %v3345_v12  ;;  %v3601_v21 = vor.u32 %v4112_v15, %v3598_v17  ;;  %v240_v15 = vunpack.c.l.bf16 %v214_v49  ;;  %v4136_v17 = vld [vmem:[#allocation7 + $0x3a4] sm:$0xf] }
  0x9a   :  { %v190_v34 = vperm.slane %v188_v29, 0  ;;  %v3582_v29 = vld [vmem:[#allocation7 + $0x2d0] sm:$0xf0] }
  0x9b   :  { %1332 = vmatpush.bf16.msrb.mxu2 %v3601_v21  ;;  %v3585_v35 = vor.u32 %v4108_v28, %v3582_v29  ;;  %v3697_v21 = vor.u32 %v4136_v17, %v3694_v18 }
  0x9c   :  { %v236_v44 = vunpack.c.l.bf16 %v190_v34  ;;  %v3457_v34 = vor.u32 %v4076_v24, %v3454_v27  ;;  %v3297_v27 = vor.u32 %v4036_v22, %v3294_v23 }
  0x9d   :  { %1305 = vmatpush.bf16.msrb.mxu0 %v3329_v26 }
  0x9e   :  { %v244_v52 = vmul.f32 %v4175_v33, %v236_v44  ;;  %v238_v33 = vunpack.c.l.bf16 %v202_v7  ;;  %1319 = vmatpush.bf16.msrb.mxu1 %v3457_v34 }
  0x9f   :  { %v260_v57 = vld.sshfl [vmem:[#allocation1] sm:$0xff pattern:$0x73625140]  ;;  %v261_v58 = vld.sshfl [vmem:[#allocation1 + $0x8] sm:$0xff pattern:$0x73625140]  ;;  %1333 = vmatpush.bf16.msrb.mxu2 %v3585_v35 }
  0xa0   :  { %v262_v61 = vld.sshfl [vmem:[#allocation1 + $0x10] sm:$0xff pattern:$0x73625140]  ;;  %v263_v62 = vld.sshfl [vmem:[#allocation1 + $0x18] sm:$0xff pattern:$0x73625140]  ;;  %v4656_v38 = vpack.c.bf16 %v261_v58, %v260_v57  ;;  %v4662_v44 = vpop.permute.xlu1 %223  ;;  %v246_v46 = vmul.f32 %v4179_v32, %v238_v33  ;;  %v3713_v57 = vor.u32 %v4140_v9, %v3710_v54 }
  0xa1   :  { %270 = vst [vmem:[#allocation1] ss:$4 sm:$0xff] %v245_v47  ;;  %v4651_v1 = vpop.permute.xlu0 %217  ;;  %v4658_v40 = vpack.c.bf16 %v263_v62, %v262_v61  ;;  %v226_v56 = vperm.slane %v4662_v44, 0  ;;  %v4040_v58 = vld [vmem:[#allocation7 + $0xa4] sm:$0xf] }
  0xa2   :  { %265 = vst [vmem:[#allocation1 + $0x20] ss:$4 sm:$0xff] %v244_v52  ;;  %v220_v8 = vperm.slane %v4651_v1, 0  ;;  %v364_v50 = vrot.slane %v4656_v38, 3  ;;  %v4186_v52 = vunpack.c.l.bf16 %v4660_v42  ;;  %v3438_v61 = vld [vmem:[#allocation7 + $0x1b0] sm:$0xf0]  ;;  %1347 = vmatpush.bf16.msrb.mxu3 %v3713_v57  ;;  %v3313_v2 = vor.u32 %v4040_v58, %v3310_v59 }
  0xa3   :  { %v365_v55 = vrot.slane %v4658_v40, 6  ;;  %v366_v63 = vrot.slane %v4658_v40, 1  ;;  %v3441_v10 = vor.u32 %v4072_v60, %v3438_v61  ;;  %1334 = vmatpush.bf16.msrb.mxu2 %v3569_v11  ;;  %v4068_v33 = vld [vmem:[#allocation7 + $0x184] sm:$0xf]  ;;  %v3422_v35 = vld [vmem:[#allocation7 + $0x190] sm:$0xf0]  ;;  %v242_v54 = vunpack.c.l.bf16 %v226_v56 }
  0xa4   :  { %v241_v53 = vunpack.c.l.bf16 %v220_v8  ;;  %1306 = vmatpush.bf16.msrb.mxu0 %v3313_v2  ;;  %v3550_v9 = vld [vmem:[#allocation7 + $0x290] sm:$0xf0]  ;;  %v4096_v11 = vld [vmem:[#allocation7 + $0x264] sm:$0xf] }
  0xa5   :  { %1320 = vmatpush.bf16.msrb.mxu1 %v3441_v10  ;;  %v3678_v61 = vld [vmem:[#allocation7 + $0x390] sm:$0xf0] }
  0xa6   :  { %v249_v8 = vmul.f32 %v4186_v52, %v241_v53  ;;  %1348 = vmatpush.bf16.msrb.mxu3 %v3697_v21  ;;  %v4132_v52 = vld [vmem:[#allocation7 + $0x384] sm:$0xf]  ;;  %v4187_v53 = vunpack.c.h.bf16 %v4660_v42  ;;  %v3406_v10 = vld [vmem:[#allocation7 + $0x170] sm:$0xf0] }
  0xa7   :  { %v3681_v4 = vor.u32 %v4132_v52, %v3678_v61  ;;  %v4064_v42 = vld [vmem:[#allocation7 + $0x164] sm:$0xf] }
  0xa8   :  { %v271_v30 = vld.sshfl [vmem:[#allocation1] sm:$0xff pattern:$0x73625140]  ;;  %v272_v31 = vld.sshfl [vmem:[#allocation1 + $0x8] sm:$0xff pattern:$0x73625140]  ;;  %1307 = vmatpush.bf16.msrb.mxu0 %v3297_v27 }
  0xa9   :  { %v273_v36 = vld.sshfl [vmem:[#allocation1 + $0x10] sm:$0xff pattern:$0x73625140]  ;;  %v274_v37 = vld.sshfl [vmem:[#allocation1 + $0x18] sm:$0xff pattern:$0x73625140]  ;;  %v4664_v45 = vpack.c.bf16 %v272_v31, %v271_v30  ;;  %v248_v30 = vmul.f32 %v4183_v14, %v240_v15  ;;  %v250_v14 = vmul.f32 %v4187_v53, %v242_v54  ;;  %v3409_v15 = vor.u32 %v4064_v42, %v3406_v10 }
  0xaa   :  { %280 = vst [vmem:[#allocation1] ss:$4 sm:$0xff] %v247_v20  ;;  %v266_v41 = vld.sshfl [vmem:[#allocation1 + $0x20] sm:$0xff pattern:$0x73625140]  ;;  %v4670_v62 = vpack.c.bf16 %v274_v37, %v273_v36  ;;  %1349 = vmatpush.bf16.msrb.mxu3 %v3681_v4 }
  0xab   :  { %v267_v43 = vld.sshfl [vmem:[#allocation1 + $0x28] sm:$0xff pattern:$0x73625140]  ;;  %v268_v47 = vld.sshfl [vmem:[#allocation1 + $0x30] sm:$0xff pattern:$0x73625140] }
  0xac   :  { %v269_v51 = vld.sshfl [vmem:[#allocation1 + $0x38] sm:$0xff pattern:$0x73625140]  ;;  %v370_v1 = vrot.slane %v4664_v45, 3  ;;  %v4674_v7 = vpack.c.bf16 %v267_v43, %v266_v41  ;;  %v371_v19 = vrot.slane %v4670_v62, 6  ;;  %v372_v20 = vrot.slane %v4670_v62, 1 }
  0xad   :  { %275 = vst [vmem:[#allocation1 + $0x20] ss:$4 sm:$0xff] %v246_v46  ;;  %v4677_v16 = vpack.c.bf16 %v269_v51, %v268_v47  ;;  %v4100_v36 = vld [vmem:[#allocation7 + $0x284] sm:$0xf]  ;;  %v3425_v43 = vor.u32 %v4068_v33, %v3422_v35  ;;  %v3534_v27 = vld [vmem:[#allocation7 + $0x270] sm:$0xf0] }
  0xae   :  { %v367_v26 = vrot.slane %v4674_v7, 3  ;;  %v3553_v51 = vor.u32 %v4100_v36, %v3550_v9  ;;  %v3662_v33 = vld [vmem:[#allocation7 + $0x370] sm:$0xf0]  ;;  %v4028_v9 = vld [vmem:[#allocation7 + $0x44] sm:$0xf] }
  0xaf   :  { %v368_v32 = vrot.slane %v4677_v16, 6  ;;  %v369_v41 = vrot.slane %v4677_v16, 1  ;;  %1321 = vmatpush.bf16.msrb.mxu1 %v3425_v43  ;;  %v4060_v52 = vld [vmem:[#allocation7 + $0x144] sm:$0xf]  ;;  %v3390_v53 = vld [vmem:[#allocation7 + $0x150] sm:$0xf0] }
  0xb0   :  { %1335 = vmatpush.bf16.msrb.mxu2 %v3553_v51  ;;  %v4092_v54 = vld [vmem:[#allocation7 + $0x244] sm:$0xf]  ;;  %v3646_v4 = vld [vmem:[#allocation7 + $0x350] sm:$0xf0]  ;;  %v400_v40 = vsel %vm388_vm0, %v4674_v7, %v367_v26 }
  0xb1   :  { %v281_v5 = vld.sshfl [vmem:[#allocation1] sm:$0xff pattern:$0x73625140]  ;;  %v282_v6 = vld.sshfl [vmem:[#allocation1 + $0x8] sm:$0xff pattern:$0x73625140] }
  0xb2   :  { %v283_v12 = vld.sshfl [vmem:[#allocation1 + $0x10] sm:$0xff pattern:$0x73625140]  ;;  %v284_v13 = vld.sshfl [vmem:[#allocation1 + $0x18] sm:$0xff pattern:$0x73625140]  ;;  %v4681_v24 = vpack.c.bf16 %v282_v6, %v281_v5 }
  0xb3   :  { %290 = vst [vmem:[#allocation1] ss:$4 sm:$0xff] %v249_v8  ;;  %v4683_v25 = vpack.c.bf16 %v284_v13, %v283_v12  ;;  %v4032_v5 = vld [vmem:[#allocation7 + $0x64] sm:$0xf]  ;;  %v3278_v6 = vld [vmem:[#allocation7 + $0x70] sm:$0xf0]  ;;  %1322 = vmatpush.bf16.msrb.mxu1 %v3409_v15 }
  0xb4   :  { %v276_v48 = vld.sshfl [vmem:[#allocation1 + $0x20] sm:$0xff pattern:$0x73625140]  ;;  %v277_v28 = vld.sshfl [vmem:[#allocation1 + $0x28] sm:$0xff pattern:$0x73625140]  ;;  %v3281_v8 = vor.u32 %v4032_v5, %v3278_v6 }
  0xb5   :  { %v278_v29 = vld.sshfl [vmem:[#allocation1 + $0x30] sm:$0xff pattern:$0x73625140]  ;;  %v279_v31 = vld.sshfl [vmem:[#allocation1 + $0x38] sm:$0xff pattern:$0x73625140]  ;;  %v4687_v34 = vpack.c.bf16 %v277_v28, %v276_v48 }
  0xb6   :  { %285 = vst [vmem:[#allocation1 + $0x20] ss:$4 sm:$0xff] %v248_v30  ;;  %v376_v37 = vrot.slane %v4681_v24, 3  ;;  %v377_v39 = vrot.slane %v4683_v25, 6  ;;  %v378_v46 = vrot.slane %v4683_v25, 1  ;;  %v4693_v47 = vpack.c.bf16 %v279_v31, %v278_v29  ;;  %1308 = vmatpush.bf16.msrb.mxu0 %v3281_v8 }
  0xb7   :  { %v373_v59 = vrot.slane %v4687_v34, 3  ;;  %v3537_v30 = vor.u32 %v4096_v11, %v3534_v27  ;;  %v4128_v31 = vld [vmem:[#allocation7 + $0x364] sm:$0xf]  ;;  %v3374_v26 = vld [vmem:[#allocation7 + $0x130] sm:$0xf0] }
  0xb8   :  { %v374_v44 = vrot.slane %v4693_v47, 6  ;;  %v375_v56 = vrot.slane %v4693_v47, 1  ;;  %v3665_v43 = vor.u32 %v4128_v31, %v3662_v33  ;;  %v3262_v47 = vld [vmem:[#allocation7 + $0x50] sm:$0xf0]  ;;  %v4124_v61 = vld [vmem:[#allocation7 + $0x344] sm:$0xf] }
  0xb9   :  { %1336 = vmatpush.bf16.msrb.mxu2 %v3537_v30  ;;  %v3265_v51 = vor.u32 %v4028_v9, %v3262_v47  ;;  %v3649_v62 = vor.u32 %v4124_v61, %v3646_v4  ;;  %v4088_v6 = vld [vmem:[#allocation7 + $0x224] sm:$0xf]  ;;  %v3502_v16 = vld [vmem:[#allocation7 + $0x230] sm:$0xf0]  ;;  %v3732_v61 = vld [vmem:[#allocation7 + $0x3e8] sm:$0xf] }
  0xba   :  { %v291_v49 = vld.sshfl [vmem:[#allocation1] sm:$0xff pattern:$0x73625140]  ;;  %v292_v57 = vld.sshfl [vmem:[#allocation1 + $0x8] sm:$0xff pattern:$0x73625140]  ;;  %1350 = vmatpush.bf16.msrb.mxu3 %v3665_v43  ;;  %v417_v5 = vsel %vm392_vm1, %v374_v44, %v375_v56  ;;  %v3505_v10 = vor.u32 %v4088_v6, %v3502_v16 }
  0xbb   :  { %v293_v58 = vld.sshfl [vmem:[#allocation1 + $0x10] sm:$0xff pattern:$0x73625140]  ;;  %v294_v60 = vld.sshfl [vmem:[#allocation1 + $0x18] sm:$0xff pattern:$0x73625140]  ;;  %v4699_v2 = vpack.c.bf16 %v292_v57, %v291_v49  ;;  %v391_v49 = vsel %vm388_vm0, %v4656_v38, %v364_v50  ;;  %v395_v57 = vsel %vm392_vm1, %v365_v55, %v366_v63  ;;  %v410_v38 = vsel %vm392_vm1, %v371_v19, %v372_v20  ;;  %1309 = vmatpush.bf16.msrb.mxu0 %v3265_v51 }
  0xbc   :  { %v4701_v3 = vpack.c.bf16 %v294_v60, %v293_v58  ;;  %v407_v58 = vsel %vm388_vm0, %v4664_v45, %v370_v1  ;;  %v3393_v50 = vor.u32 %v4060_v52, %v3390_v53  ;;  %v3518_v60 = vld [vmem:[#allocation7 + $0x250] sm:$0xf0]  ;;  %v403_v45 = vsel %vm392_vm1, %v368_v32, %v369_v41  ;;  %v4024_v63 = vld [vmem:[#allocation7 + $0x24] sm:$0xf]  ;;  %v4147_v4 = vld [vmem:[#allocation7 + $0x3f4] sm:$0xf0] }
  0xbd   :  { %v286_v12 = vld.sshfl [vmem:[#allocation1 + $0x20] sm:$0xff pattern:$0x73625140]  ;;  %v287_v13 = vld.sshfl [vmem:[#allocation1 + $0x28] sm:$0xff pattern:$0x73625140]  ;;  %v3521_v55 = vor.u32 %v4092_v54, %v3518_v60  ;;  %v414_v20 = vsel %vm388_vm0, %v4687_v34, %v373_v59  ;;  %v397_v32 = vsel %vm396_vm2, %v391_v49, %v395_v57  ;;  %v411_v11 = vsel %vm396_vm2, %v407_v58, %v410_v38 }
  0xbe   :  { %v288_v17 = vld.sshfl [vmem:[#allocation1 + $0x30] sm:$0xff pattern:$0x73625140]  ;;  %v289_v18 = vld.sshfl [vmem:[#allocation1 + $0x38] sm:$0xff pattern:$0x73625140]  ;;  %v4705_v21 = vpack.c.bf16 %v287_v13, %v286_v12  ;;  %1323 = vmatpush.bf16.msrb.mxu1 %v3393_v50  ;;  %v421_v34 = vsel %vm388_vm0, %v4681_v24, %v376_v37  ;;  %v404_v59 = vsel %vm396_vm2, %v400_v40, %v403_v45  ;;  %1351 = vmatpush.bf16.msrb.mxu3 %v3649_v62 }
  0xbf   :  { %v4707_v22 = vpack.c.bf16 %v289_v18, %v288_v17  ;;  %295 = vst [vmem:[#allocation1 + $0x20] ss:$4 sm:$0xff] %v250_v14  ;;  %v382_v23 = vrot.slane %v4699_v2, 3  ;;  %v383_v48 = vrot.slane %v4701_v3, 6  ;;  %v384_v29 = vrot.slane %v4701_v3, 1  ;;  %1337 = vmatpush.bf16.msrb.mxu2 %v3521_v55 }
  0xc0   :  { %v379_v28 = vrot.slane %v4705_v21, 3  ;;  %v3246_v1 = vld [vmem:[#allocation7 + $0x30] sm:$0xf0]  ;;  %v4056_v19 = vld [vmem:[#allocation7 + $0x124] sm:$0xf]  ;;  %v424_v13 = vsel %vm392_vm1, %v377_v39, %v378_v46  ;;  %v418_v14 = vsel %vm396_vm2, %v414_v20, %v417_v5  ;;  %v3733_v16 = vor.u32 %v4147_v4, %v3732_v61 }
  0xc1   :  { %v380_v35 = vrot.slane %v4707_v22, 6  ;;  %v381_v36 = vrot.slane %v4707_v22, 1  ;;  %v3249_v7 = vor.u32 %v4024_v63, %v3246_v1  ;;  %v3377_v8 = vor.u32 %v4056_v19, %v3374_v26  ;;  %v4120_v17 = vld [vmem:[#allocation7 + $0x324] sm:$0xf]  ;;  %v3630_v18 = vld [vmem:[#allocation7 + $0x330] sm:$0xf0] }
  0xc2   :  { %v428_v24 = vsel %vm388_vm0, %v4705_v21, %v379_v28  ;;  %v3633_v27 = vor.u32 %v4120_v17, %v3630_v18  ;;  %v4020_v30 = vld [vmem:[#allocation7 + $0x4] sm:$0xf]  ;;  %v435_v39 = vsel %vm388_vm0, %v4699_v2, %v382_v23  ;;  %v438_v46 = vsel %vm392_vm1, %v383_v48, %v384_v29  ;;  %v3230_v21 = vld [vmem:[#allocation7 + $0x10] sm:$0xf0]  ;;  %v3348_v54 = vld [vmem:[#allocation7 + $0xe8] sm:$0xf] }
  0xc3   :  { %1310 = vmatpush.bf16.msrb.mxu0 %v3249_v7  ;;  %v431_v37 = vsel %vm392_vm1, %v380_v35, %v381_v36  ;;  %1324 = vmatpush.bf16.msrb.mxu1 %v3377_v8  ;;  %v425_v28 = vsel %vm396_vm2, %v421_v34, %v424_v13  ;;  %v3233_v35 = vor.u32 %v4020_v30, %v3230_v21  ;;  %v4052_v36 = vld [vmem:[#allocation7 + $0x104] sm:$0xf]  ;;  %v3358_v43 = vld [vmem:[#allocation7 + $0x110] sm:$0xf0]  ;;  %v4051_v57 = vld [vmem:[#allocation7 + $0xf4] sm:$0xf0] }
  0xc4   :  { %1338 = vmatpush.bf16.msrb.mxu2 %v3505_v10  ;;  %1352 = vmatpush.bf16.msrb.mxu3 %v3633_v27  ;;  %v432_v2 = vsel %vm396_vm2, %v428_v24, %v431_v37  ;;  %v3361_v3 = vor.u32 %v4052_v36, %v3358_v43  ;;  %v4084_v9 = vld [vmem:[#allocation7 + $0x204] sm:$0xf]  ;;  %v3486_v48 = vld [vmem:[#allocation7 + $0x210] sm:$0xf0]  ;;  %v439_v47 = vsel %vm396_vm2, %v435_v39, %v438_v46  ;;  %v3476_v58 = vld [vmem:[#allocation7 + $0x1e8] sm:$0xf] }
  0xc5   :  { %v3489_v49 = vor.u32 %v4084_v9, %v3486_v48  ;;  %v4116_v51 = vld [vmem:[#allocation7 + $0x304] sm:$0xf]  ;;  %v3614_v52 = vld [vmem:[#allocation7 + $0x310] sm:$0xf0]  ;;  %v4083_v38 = vld [vmem:[#allocation7 + $0x1f4] sm:$0xf0]  ;;  %v3349_v62 = vor.u32 %v4051_v57, %v3348_v54 }
  0xc6   :  { %v296_v41 = vld.sshfl [vmem:[#allocation1 + $0x20] sm:$0xff pattern:$0x73625140]  ;;  %v297_v42 = vld.sshfl [vmem:[#allocation1 + $0x28] sm:$0xff pattern:$0x73625140]  ;;  %v3617_v53 = vor.u32 %v4116_v51, %v3614_v52  ;;  %v3477_v63 = vor.u32 %v4083_v38, %v3476_v58 }
  0xc7   :  { %v298_v44 = vld.sshfl [vmem:[#allocation1 + $0x30] sm:$0xff pattern:$0x73625140]  ;;  %v299_v56 = vld.sshfl [vmem:[#allocation1 + $0x38] sm:$0xff pattern:$0x73625140]  ;;  %v346_v12 = vpack.c.bf16 %v297_v42, %v296_v41  ;;  %1311 = vmatpush.bf16.msrb.mxu0 %v3233_v35  ;;  %1325 = vmatpush.bf16.msrb.mxu1 %v3361_v3 }
  0xc8   :  { %v347_v15 = vpack.c.bf16 %v299_v56, %v298_v44  ;;  %585 = vst [vmem:[#allocation1] ss:$9 sm:$0xff] %v397_v32  ;;  %1339 = vmatpush.bf16.msrb.mxu2 %v3489_v49  ;;  %1353 = vmatpush.bf16.msrb.mxu3 %v3617_v53  ;;  %v3604_v50 = vld [vmem:[#allocation7 + $0x2e8] sm:$0xf]  ;;  %v4115_v60 = vld [vmem:[#allocation7 + $0x2f4] sm:$0xf0] }
  0xc9   :  { %v385_v22 = vrot.slane %v346_v12, 3  ;;  %587 = vst [vmem:[#allocation1 + $0x1] ss:$9 sm:$0xff] %v404_v59  ;;  %v3332_v40 = vld [vmem:[#allocation7 + $0xc8] sm:$0xf]  ;;  %v3605_v6 = vor.u32 %v4115_v60, %v3604_v50 }
  0xca   :  { %v386_v25 = vrot.slane %v347_v15, 6  ;;  %v387_v31 = vrot.slane %v347_v15, 1  ;;  %589 = vst [vmem:[#allocation1 + $0x2] ss:$9 sm:$0xff] %v411_v11  ;;  %v4047_v45 = vld [vmem:[#allocation7 + $0xd4] sm:$0xf0] }
  0xcb   :  { %v442_v33 = vsel %vm388_vm0, %v346_v12, %v385_v22  ;;  %591 = vst [vmem:[#allocation1 + $0x3] ss:$9 sm:$0xff] %v418_v14  ;;  %v3460_v55 = vld [vmem:[#allocation7 + $0x1c8] sm:$0xf]  ;;  %v4079_v1 = vld [vmem:[#allocation7 + $0x1d4] sm:$0xf0]  ;;  %v3333_v8 = vor.u32 %v4047_v45, %v3332_v40 }
  0xcc   :  { %v445_v23 = vsel %vm392_vm1, %v386_v25, %v387_v31  ;;  %593 = vst [vmem:[#allocation1 + $0x4] ss:$9 sm:$0xff] %v425_v28  ;;  %v3588_v19 = vld [vmem:[#allocation7 + $0x2c8] sm:$0xf]  ;;  %v4111_v20 = vld [vmem:[#allocation7 + $0x2d4] sm:$0xf0]  ;;  %v3461_v10 = vor.u32 %v4079_v1, %v3460_v55 }
  0xcd   :  { %v446_v29 = vsel %vm396_vm2, %v442_v33, %v445_v23  ;;  %595 = vst [vmem:[#allocation1 + $0x5] ss:$9 sm:$0xff] %v432_v2  ;;  %v3716_v41 = vld [vmem:[#allocation7 + $0x3c8] sm:$0xf]  ;;  %v4143_v42 = vld [vmem:[#allocation7 + $0x3d4] sm:$0xf0]  ;;  %v3589_v59 = vor.u32 %v4111_v20, %v3588_v19 }
  0xce   :  { %597 = vst [vmem:[#allocation1 + $0x6] ss:$9 sm:$0xff] %v439_v47  ;;  %v3316_v11 = vld [vmem:[#allocation7 + $0xa8] sm:$0xf]  ;;  %v4043_v34 = vld [vmem:[#allocation7 + $0xb4] sm:$0xf0]  ;;  %v3717_v44 = vor.u32 %v4143_v42, %v3716_v41 }
  0xcf   :  { %599 = vst [vmem:[#allocation1 + $0x7] ss:$9 sm:$0xff] %v446_v29  ;;  %v3444_v56 = vld [vmem:[#allocation7 + $0x1a8] sm:$0xf]  ;;  %v4075_v12 = vld [vmem:[#allocation7 + $0x1b4] sm:$0xf0]  ;;  %v3317_v18 = vor.u32 %v4043_v34, %v3316_v11 }
  0xd0   :  { %v3572_v13 = vld [vmem:[#allocation7 + $0x2a8] sm:$0xf]  ;;  %v4107_v14 = vld [vmem:[#allocation7 + $0x2b4] sm:$0xf0]  ;;  %v3445_v24 = vor.u32 %v4075_v12, %v3444_v56 }
  0xd1   :  { %v3700_v15 = vld [vmem:[#allocation7 + $0x3a8] sm:$0xf]  ;;  %v4139_v17 = vld [vmem:[#allocation7 + $0x3b4] sm:$0xf0]  ;;  %v3573_v27 = vor.u32 %v4107_v14, %v3572_v13 }
  0xd2   :  { %v3300_v37 = vld [vmem:[#allocation7 + $0x88] sm:$0xf]  ;;  %v4039_v22 = vld [vmem:[#allocation7 + $0x94] sm:$0xf0]  ;;  %v3701_v30 = vor.u32 %v4139_v17, %v3700_v15 }
  0xd3   :  { %v3428_v25 = vld [vmem:[#allocation7 + $0x188] sm:$0xf]  ;;  %v4071_v31 = vld [vmem:[#allocation7 + $0x194] sm:$0xf0]  ;;  %v3301_v33 = vor.u32 %v4039_v22, %v3300_v37  ;;  %v3350_v37 = vld [vmem:[#allocation7 + $0xf8] sm:$0xf0] }
  0xd4   :  { %v3556_v39 = vld [vmem:[#allocation7 + $0x288] sm:$0xf]  ;;  %v4103_v46 = vld [vmem:[#allocation7 + $0x294] sm:$0xf0]  ;;  %v3429_v35 = vor.u32 %v4071_v31, %v3428_v25  ;;  %v4081_v22 = vld [vmem:[#allocation7 + $0x1ec] sm:$0xf] }
  0xd5   :  { %v3684_v21 = vld [vmem:[#allocation7 + $0x388] sm:$0xf]  ;;  %v4135_v28 = vld [vmem:[#allocation7 + $0x394] sm:$0xf0]  ;;  %v3557_v2 = vor.u32 %v4103_v46, %v3556_v39  ;;  %v3606_v39 = vld [vmem:[#allocation7 + $0x2f8] sm:$0xf0] }
  0xd6   :  { %v4778_v5 = vld [vmem:[#allocation1] sm:$0xff]  ;;  %v4780_v7 = vld [vmem:[#allocation1 + $0x9] sm:$0xff]  ;;  %v4782_v26 = vld [vmem:[#allocation1 + $0x12] sm:$0xff]  ;;  %v3685_v23 = vor.u32 %v4135_v28, %v3684_v21 }
  0xd7   :  { %1256 = vmatmul.bf16.vlgmr.msra.gmra.mxu0 %v4778_v5  ;;  %1270 = vmatmul.bf16.vlgmr.msra.gmra.mxu1 %v4780_v7  ;;  %v4786_v32 = vld [vmem:[#allocation1 + $0x1b] sm:$0xff]  ;;  %v4035_v43 = vld [vmem:[#allocation7 + $0x74] sm:$0xf0]  ;;  %v4145_v46 = vld [vmem:[#allocation7 + $0x3ec] sm:$0xf] }
  0xd8   :  { %1284 = vmatmul.bf16.vlgmr.msra.gmra.mxu2 %v4782_v26  ;;  %1298 = vmatmul.bf16.vlgmr.msra.gmra.mxu3 %v4786_v32  ;;  %v3284_v36 = vld [vmem:[#allocation7 + $0x68] sm:$0xf]  ;;  %v4067_v9 = vld [vmem:[#allocation7 + $0x174] sm:$0xf0]  ;;  %v3734_v21 = vld [vmem:[#allocation7 + $0x3f8] sm:$0xf0] }
  0xd9   :  { %1360 = vmatpush.bf16.msra.mxu0 %v3349_v62  ;;  %1374 = vmatpush.bf16.msra.mxu1 %v3477_v63  ;;  %v3412_v3 = vld [vmem:[#allocation7 + $0x168] sm:$0xf]  ;;  %v4099_v29 = vld [vmem:[#allocation7 + $0x274] sm:$0xf0]  ;;  %v3285_v51 = vor.u32 %v4035_v43, %v3284_v36  ;;  %v4045_v43 = vld [vmem:[#allocation7 + $0xcc] sm:$0xf] }
  0xda   :  { %1388 = vmatpush.bf16.msra.mxu2 %v3605_v6  ;;  %1402 = vmatpush.bf16.msra.mxu3 %v3733_v16  ;;  %v3540_v48 = vld [vmem:[#allocation7 + $0x268] sm:$0xf]  ;;  %v4131_v49 = vld [vmem:[#allocation7 + $0x374] sm:$0xf0]  ;;  %v3413_v52 = vor.u32 %v4067_v9, %v3412_v3  ;;  %v3737_v3 = vor.u32 %v4145_v46, %v3734_v21  ;;  %v4077_v9 = vld [vmem:[#allocation7 + $0x1cc] sm:$0xf] }
  0xdb   :  { %v3668_v47 = vld [vmem:[#allocation7 + $0x368] sm:$0xf]  ;;  %v4031_v54 = vld [vmem:[#allocation7 + $0x54] sm:$0xf0]  ;;  %v3541_v57 = vor.u32 %v4099_v29, %v3540_v48  ;;  %v3462_v48 = vld [vmem:[#allocation7 + $0x1d8] sm:$0xf0] }
  0xdc   :  { %v3268_v53 = vld [vmem:[#allocation7 + $0x48] sm:$0xf]  ;;  %v3669_v58 = vor.u32 %v4131_v49, %v3668_v47  ;;  %v4063_v50 = vld [vmem:[#allocation7 + $0x154] sm:$0xf0]  ;;  %v4109_v29 = vld [vmem:[#allocation7 + $0x2cc] sm:$0xf] }
  0xdd   :  { %1361 = vmatpush.bf16.msra.mxu0 %v3333_v8  ;;  %1375 = vmatpush.bf16.msra.mxu1 %v3461_v10  ;;  %v3396_v38 = vld [vmem:[#allocation7 + $0x148] sm:$0xf]  ;;  %v4095_v61 = vld [vmem:[#allocation7 + $0x254] sm:$0xf0]  ;;  %v3269_v45 = vor.u32 %v4031_v54, %v3268_v53  ;;  %v3590_v47 = vld [vmem:[#allocation7 + $0x2d8] sm:$0xf0]  ;;  %v3465_v53 = vor.u32 %v4077_v9, %v3462_v48 }
  0xde   :  { %1389 = vmatpush.bf16.msra.mxu2 %v3589_v59  ;;  %1403 = vmatpush.bf16.msra.mxu3 %v3717_v44  ;;  %v3524_v60 = vld [vmem:[#allocation7 + $0x248] sm:$0xf]  ;;  %v4127_v40 = vld [vmem:[#allocation7 + $0x354] sm:$0xf0]  ;;  %v3397_v55 = vor.u32 %v4063_v50, %v3396_v38  ;;  %v4141_v49 = vld [vmem:[#allocation7 + $0x3cc] sm:$0xf] }
  0xdf   :  { %v3652_v4 = vld [vmem:[#allocation7 + $0x348] sm:$0xf]  ;;  %v4027_v63 = vld [vmem:[#allocation7 + $0x34] sm:$0xf0]  ;;  %v3525_v1 = vor.u32 %v4095_v61, %v3524_v60  ;;  %v4041_v54 = vld [vmem:[#allocation7 + $0xac] sm:$0xf] }
  0xe0   :  { %v3252_v62 = vld [vmem:[#allocation7 + $0x28] sm:$0xf]  ;;  %v3653_v19 = vor.u32 %v4127_v40, %v3652_v4  ;;  %v4059_v6 = vld [vmem:[#allocation7 + $0x134] sm:$0xf0]  ;;  %v4073_v50 = vld [vmem:[#allocation7 + $0x1ac] sm:$0xf] }
  0xe1   :  { %1362 = vmatpush.bf16.msra.mxu0 %v3317_v18  ;;  %1376 = vmatpush.bf16.msra.mxu1 %v3445_v24  ;;  %v3380_v20 = vld [vmem:[#allocation7 + $0x128] sm:$0xf]  ;;  %v4091_v41 = vld [vmem:[#allocation7 + $0x234] sm:$0xf0]  ;;  %v3253_v11 = vor.u32 %v4027_v63, %v3252_v62  ;;  %v4049_v24 = vld [vmem:[#allocation7 + $0xec] sm:$0xf] }
  0xe2   :  { %1390 = vmatpush.bf16.msra.mxu2 %v3573_v27  ;;  %1404 = vmatpush.bf16.msra.mxu3 %v3701_v30  ;;  %v3508_v16 = vld [vmem:[#allocation7 + $0x228] sm:$0xf]  ;;  %v4123_v8 = vld [vmem:[#allocation7 + $0x334] sm:$0xf0]  ;;  %v3381_v34 = vor.u32 %v4059_v6, %v3380_v20  ;;  %v3478_v27 = vld [vmem:[#allocation7 + $0x1f8] sm:$0xf0] }
  0xe3   :  { %v3636_v42 = vld [vmem:[#allocation7 + $0x328] sm:$0xf]  ;;  %v4023_v59 = vld [vmem:[#allocation7 + $0x14] sm:$0xf0]  ;;  %v3509_v12 = vor.u32 %v4091_v41, %v3508_v16  ;;  %v4113_v30 = vld [vmem:[#allocation7 + $0x2ec] sm:$0xf]  ;;  %v3481_v36 = vor.u32 %v4081_v22, %v3478_v27 }
  0xe4   :  { %v3236_v10 = vld [vmem:[#allocation7 + $0x8] sm:$0xf]  ;;  %v4055_v56 = vld [vmem:[#allocation7 + $0x114] sm:$0xf0]  ;;  %v3637_v13 = vor.u32 %v4123_v8, %v3636_v42  ;;  %v3446_v60 = vld [vmem:[#allocation7 + $0x1b8] sm:$0xf0] }
  0xe5   :  { %1363 = vmatpush.bf16.msra.mxu0 %v3301_v33  ;;  %1377 = vmatpush.bf16.msra.mxu1 %v3429_v35  ;;  %v3364_v44 = vld [vmem:[#allocation7 + $0x108] sm:$0xf]  ;;  %v4087_v15 = vld [vmem:[#allocation7 + $0x214] sm:$0xf0]  ;;  %v3237_v25 = vor.u32 %v4023_v59, %v3236_v10  ;;  %v3353_v35 = vor.u32 %v4049_v24, %v3350_v37  ;;  %v4105_v61 = vld [vmem:[#allocation7 + $0x2ac] sm:$0xf]  ;;  %v3449_v62 = vor.u32 %v4073_v50, %v3446_v60 }
  0xe6   :  { %1391 = vmatpush.bf16.msra.mxu2 %v3557_v2  ;;  %1405 = vmatpush.bf16.msra.mxu3 %v3685_v23  ;;  %v3492_v14 = vld [vmem:[#allocation7 + $0x208] sm:$0xf]  ;;  %v4119_v18 = vld [vmem:[#allocation7 + $0x314] sm:$0xf0]  ;;  %v3365_v31 = vor.u32 %v4055_v56, %v3364_v44  ;;  %v3334_v2 = vld [vmem:[#allocation7 + $0xd8] sm:$0xf0]  ;;  %v3609_v23 = vor.u32 %v4113_v30, %v3606_v39 }
  0xe7   :  { %1312 = vmatmul.bf16.vlgmr.msrb.gmra.mxu0 %v4778_v5  ;;  %1326 = vmatmul.bf16.vlgmr.msrb.gmra.mxu1 %v4780_v7  ;;  %v3620_v17 = vld [vmem:[#allocation7 + $0x308] sm:$0xf]  ;;  %v3493_v28 = vor.u32 %v4087_v15, %v3492_v14  ;;  %v3574_v4 = vld [vmem:[#allocation7 + $0x2b8] sm:$0xf0]  ;;  %v4137_v40 = vld [vmem:[#allocation7 + $0x3ac] sm:$0xf] }
  0xe8   :  { %1340 = vmatmul.bf16.vlgmr.msrb.gmra.mxu2 %v4782_v26  ;;  %1354 = vmatmul.bf16.vlgmr.msrb.gmra.mxu3 %v4786_v32  ;;  %v3621_v33 = vor.u32 %v4119_v18, %v3620_v17  ;;  %v4037_v63 = vld [vmem:[#allocation7 + $0x8c] sm:$0xf]  ;;  %v3430_v16 = vld [vmem:[#allocation7 + $0x198] sm:$0xf0] }
  0xe9   :  { %1364 = vmatpush.bf16.msra.mxu0 %v3285_v51  ;;  %1378 = vmatpush.bf16.msra.mxu1 %v3413_v52  ;;  %v3718_v51 = vld [vmem:[#allocation7 + $0x3d8] sm:$0xf0]  ;;  %v3337_v52 = vor.u32 %v4045_v43, %v3334_v2  ;;  %v4069_v6 = vld [vmem:[#allocation7 + $0x18c] sm:$0xf] }
  0xea   :  { %1392 = vmatpush.bf16.msra.mxu2 %v3541_v57  ;;  %1406 = vmatpush.bf16.msra.mxu3 %v3669_v58  ;;  %v3318_v57 = vld [vmem:[#allocation7 + $0xb8] sm:$0xf0]  ;;  %v3593_v58 = vor.u32 %v4109_v29, %v3590_v47  ;;  %v3721_v38 = vor.u32 %v4141_v49, %v3718_v51  ;;  %v4101_v41 = vld [vmem:[#allocation7 + $0x28c] sm:$0xf] }
  0xeb   :  { %v3558_v42 = vld [vmem:[#allocation7 + $0x298] sm:$0xf0]  ;;  %v4133_v8 = vld [vmem:[#allocation7 + $0x38c] sm:$0xf] }
  0xec   :  { %v3686_v10 = vld [vmem:[#allocation7 + $0x398] sm:$0xf0]  ;;  %v4033_v59 = vld [vmem:[#allocation7 + $0x6c] sm:$0xf]  ;;  %v3561_v56 = vor.u32 %v4101_v41, %v3558_v42  ;;  %v4019_v41 = vld [vmem:[#allocation9 + $0xf4] sm:$0xf0] }
  0xed   :  { %1365 = vmatpush.bf16.msra.mxu0 %v3269_v45  ;;  %1379 = vmatpush.bf16.msra.mxu1 %v3397_v55  ;;  %v3702_v45 = vld [vmem:[#allocation7 + $0x3b8] sm:$0xf0]  ;;  %v3321_v55 = vor.u32 %v4041_v54, %v3318_v57  ;;  %v4097_v15 = vld [vmem:[#allocation7 + $0x26c] sm:$0xf] }
  0xee   :  { %1393 = vmatpush.bf16.msra.mxu2 %v3525_v1  ;;  %1407 = vmatpush.bf16.msra.mxu3 %v3653_v19  ;;  %v3302_v1 = vld [vmem:[#allocation7 + $0x98] sm:$0xf0]  ;;  %v3577_v19 = vor.u32 %v4105_v61, %v3574_v4  ;;  %v3705_v20 = vor.u32 %v4137_v40, %v3702_v45  ;;  %v4129_v18 = vld [vmem:[#allocation7 + $0x36c] sm:$0xf] }
  0xef   :  { %v3286_v44 = vld [vmem:[#allocation7 + $0x78] sm:$0xf0]  ;;  %v4029_v27 = vld [vmem:[#allocation7 + $0x4c] sm:$0xf] }
  0xf0   :  { %v3414_v14 = vld [vmem:[#allocation7 + $0x178] sm:$0xf0]  ;;  %v3289_v37 = vor.u32 %v4033_v59, %v3286_v44  ;;  %v4061_v39 = vld [vmem:[#allocation7 + $0x14c] sm:$0xf]  ;;  %v3836_v44 = vld [vmem:[#allocation9 + $0xc0] sm:$0xf] }
  0xf1   :  { %1366 = vmatpush.bf16.msra.mxu0 %v3253_v11  ;;  %1380 = vmatpush.bf16.msra.mxu1 %v3381_v34  ;;  %v3305_v11 = vor.u32 %v4037_v63, %v3302_v1  ;;  %v3433_v34 = vor.u32 %v4069_v6, %v3430_v16  ;;  %v3542_v17 = vld [vmem:[#allocation7 + $0x278] sm:$0xf0]  ;;  %v4093_v21 = vld [vmem:[#allocation7 + $0x24c] sm:$0xf]  ;;  %v4018_v63 = vld [vmem:[#allocation9 + $0xec] sm:$0xf0] }
  0xf2   :  { %1394 = vmatpush.bf16.msra.mxu2 %v3509_v12  ;;  %1408 = vmatpush.bf16.msra.mxu3 %v3637_v13  ;;  %v3689_v12 = vor.u32 %v4133_v8, %v3686_v10  ;;  %v4065_v13 = vld [vmem:[#allocation7 + $0x16c] sm:$0xf]  ;;  %v3670_v24 = vld [vmem:[#allocation7 + $0x378] sm:$0xf0]  ;;  %v4016_v1 = vld [vmem:[#allocation9 + $0xe4] sm:$0xf] }
  0xf3   :  { %v3417_v22 = vor.u32 %v4065_v13, %v3414_v14  ;;  %v3270_v30 = vld [vmem:[#allocation7 + $0x58] sm:$0xf0]  ;;  %v4025_v2 = vld [vmem:[#allocation7 + $0x2c] sm:$0xf]  ;;  %v4012_v14 = vld [vmem:[#allocation9 + $0xc4] sm:$0xf] }
  0xf4   :  { %v3398_v46 = vld [vmem:[#allocation7 + $0x158] sm:$0xf0]  ;;  %v4057_v48 = vld [vmem:[#allocation7 + $0x12c] sm:$0xf] }
  0xf5   :  { %1367 = vmatpush.bf16.msra.mxu0 %v3237_v25  ;;  %1381 = vmatpush.bf16.msra.mxu1 %v3365_v31  ;;  %v3545_v25 = vor.u32 %v4097_v15, %v3542_v17  ;;  %v3673_v31 = vor.u32 %v4129_v18, %v3670_v24  ;;  %v3401_v43 = vor.u32 %v4061_v39, %v3398_v46  ;;  %v3382_v29 = vld [vmem:[#allocation7 + $0x138] sm:$0xf0]  ;;  %v4089_v47 = vld [vmem:[#allocation7 + $0x22c] sm:$0xf]  ;;  %v3838_v15 = vld [vmem:[#allocation9 + $0xd0] sm:$0xf0] }
  0xf6   :  { %1395 = vmatpush.bf16.msra.mxu2 %v3493_v28  ;;  %1409 = vmatpush.bf16.msra.mxu3 %v3621_v33  ;;  %v3526_v28 = vld [vmem:[#allocation7 + $0x258] sm:$0xf0]  ;;  %v4125_v33 = vld [vmem:[#allocation7 + $0x34c] sm:$0xf]  ;;  %v3385_v57 = vor.u32 %v4057_v48, %v3382_v29  ;;  %v3844_v17 = vld [vmem:[#allocation9 + $0xc8] sm:$0xf] }
  0xf7   :  { %v3510_v49 = vld [vmem:[#allocation7 + $0x238] sm:$0xf0]  ;;  %v4121_v51 = vld [vmem:[#allocation7 + $0x32c] sm:$0xf]  ;;  %v4015_v18 = vld [vmem:[#allocation9 + $0xd4] sm:$0xf0] }
  0xf8   :  { %1368 = vmatmul.bf16.vlgmr.msra.gmra.mxu0 %v4778_v5  ;;  %1382 = vmatmul.bf16.vlgmr.msra.gmra.mxu1 %v4780_v7  ;;  %v3366_v50 = vld [vmem:[#allocation7 + $0x118] sm:$0xf0]  ;;  %v3513_v60 = vor.u32 %v4089_v47, %v3510_v49  ;;  %v4085_v4 = vld [vmem:[#allocation7 + $0x20c] sm:$0xf]  ;;  %v4008_v46 = vld [vmem:[#allocation9 + $0xa4] sm:$0xf] }
  0xf9   :  { %1416 = vmatpush.bf16.msrb.mxu0 %v3353_v35  ;;  %1430 = vmatpush.bf16.msrb.mxu1 %v3481_v36  ;;  %v3654_v35 = vld [vmem:[#allocation7 + $0x358] sm:$0xf0]  ;;  %v3273_v36 = vor.u32 %v4029_v27, %v3270_v30  ;;  %v4117_v45 = vld [vmem:[#allocation7 + $0x30c] sm:$0xf]  ;;  %v4810_v27 = vor.u32 %v4012_v14, %v3838_v15  ;;  %v3820_v30 = vld [vmem:[#allocation9 + $0xa0] sm:$0xf] }
  0xfa   :  { %1444 = vmatpush.bf16.msrb.mxu2 %v3609_v23  ;;  %1458 = vmatpush.bf16.msrb.mxu3 %v3737_v3  ;;  %v3254_v23 = vld [vmem:[#allocation7 + $0x38] sm:$0xf0]  ;;  %v3529_v3 = vor.u32 %v4093_v21, %v3526_v28  ;;  %v3657_v9 = vor.u32 %v4125_v33, %v3654_v35  ;;  %v4017_v42 = vld [vmem:[#allocation9 + $0xec] sm:$0xf]  ;;  %v3822_v21 = vld [vmem:[#allocation9 + $0xb0] sm:$0xf0] }
  0xfb   :  { %1396 = vmatmul.bf16.vlgmr.msra.gmra.mxu2 %v4782_v26  ;;  %1410 = vmatmul.bf16.vlgmr.msra.gmra.mxu3 %v4786_v32  ;;  %v3257_v54 = vor.u32 %v4025_v2, %v3254_v23  ;;  %v3494_v40 = vld [vmem:[#allocation7 + $0x218] sm:$0xf0]  ;;  %v4013_v24 = vld [vmem:[#allocation9 + $0xcc] sm:$0xf]  ;;  %v3828_v28 = vld [vmem:[#allocation9 + $0xa8] sm:$0xf]  ;;  %v4826_v2 = vor.u32 %v4008_v46, %v3822_v21 }
  0xfc   :  { %v3862_v8 = vld [vmem:[#allocation9 + $0xf8] sm:$0xf0]  ;;  %v3497_v10 = vor.u32 %v4085_v4, %v3494_v40  ;;  %v4011_v33 = vld [vmem:[#allocation9 + $0xb4] sm:$0xf0]  ;;  %v4009_v35 = vld [vmem:[#allocation9 + $0xac] sm:$0xf] }
  0xfd   :  { %1417 = vmatpush.bf16.msrb.mxu0 %v3337_v52  ;;  %1431 = vmatpush.bf16.msrb.mxu1 %v3465_v53  ;;  %v3638_v52 = vld [vmem:[#allocation7 + $0x338] sm:$0xf0]  ;;  %v4021_v53 = vld [vmem:[#allocation7 + $0xc] sm:$0xf]  ;;  %v4804_v13 = vor.u32 %v4017_v42, %v3862_v8  ;;  %v3804_v23 = vld [vmem:[#allocation9 + $0x80] sm:$0xf] }
  0xfe   :  { %1445 = vmatpush.bf16.msrb.mxu2 %v3593_v58  ;;  %1459 = vmatpush.bf16.msrb.mxu3 %v3721_v38  ;;  %v3238_v58 = vld [vmem:[#allocation7 + $0x18] sm:$0xf0]  ;;  %v4053_v38 = vld [vmem:[#allocation7 + $0x10c] sm:$0xf]  ;;  %v3641_v61 = vor.u32 %v4121_v51, %v3638_v52  ;;  %v4007_v48 = vld [vmem:[#allocation9 + $0x94] sm:$0xf0] }
  0xff   :  { %v3241_v6 = vor.u32 %v4021_v53, %v3238_v58  ;;  %v3369_v16 = vor.u32 %v4053_v38, %v3366_v50  ;;  %v4005_v29 = vld [vmem:[#allocation9 + $0x8c] sm:$0xf]  ;;  %v3814_v47 = vld [vmem:[#allocation9 + $0x98] sm:$0xf0]  ;;  %v3788_v52 = vld [vmem:[#allocation9 + $0x60] sm:$0xf] }
 0x100   :  { %v4002_v53 = vld [vmem:[#allocation9 + $0x6c] sm:$0xf0]  ;;  %v4000_v58 = vld [vmem:[#allocation9 + $0x64] sm:$0xf]  ;;  %v3790_v38 = vld [vmem:[#allocation9 + $0x70] sm:$0xf0] }
 0x101   :  { %1418 = vmatpush.bf16.msrb.mxu0 %v3321_v55  ;;  %1432 = vmatpush.bf16.msrb.mxu1 %v3449_v62  ;;  %v3622_v55 = vld [vmem:[#allocation7 + $0x318] sm:$0xf0]  ;;  %v3852_v62 = vld [vmem:[#allocation9 + $0xe0] sm:$0xf]  ;;  %v3796_v50 = vld [vmem:[#allocation9 + $0x68] sm:$0xf]  ;;  %v4848_v40 = vor.u32 %v4002_v53, %v3788_v52 }
 0x102   :  { %1446 = vmatpush.bf16.msrb.mxu2 %v3577_v19  ;;  %1460 = vmatpush.bf16.msrb.mxu3 %v3705_v20  ;;  %v3854_v19 = vld [vmem:[#allocation9 + $0xf0] sm:$0xf0]  ;;  %v3860_v20 = vld [vmem:[#allocation9 + $0xe8] sm:$0xf]  ;;  %v3798_v4 = vld [vmem:[#allocation9 + $0x78] sm:$0xf0] }
 0x103   :  { %v4800_v59 = vor.u32 %v4016_v1, %v3854_v19  ;;  %v3996_v19 = vld [vmem:[#allocation9 + $0x44] sm:$0xf]  ;;  %v3782_v42 = vld [vmem:[#allocation9 + $0x58] sm:$0xf0]  ;;  %v3740_v21 = vld [vmem:[#allocation9] sm:$0xf] }
 0x104   :  { %v3992_v15 = vld [vmem:[#allocation9 + $0x24] sm:$0xf] }
 0x105   :  { %1419 = vmatpush.bf16.msrb.mxu0 %v3305_v11  ;;  %1433 = vmatpush.bf16.msrb.mxu1 %v3433_v34  ;;  %v3625_v11 = vor.u32 %v4117_v45, %v3622_v55  ;;  %v4798_v34 = vor.u32 %v4018_v63, %v3852_v62  ;;  %v4850_v45 = vor.u32 %v4000_v58, %v3790_v38  ;;  %v3772_v55 = vld [vmem:[#allocation9 + $0x40] sm:$0xf]  ;;  %v3998_v62 = vld [vmem:[#allocation9 + $0x4c] sm:$0xf0] }
 0x106   :  { %1447 = vmatpush.bf16.msrb.mxu2 %v3561_v56  ;;  %1461 = vmatpush.bf16.msrb.mxu3 %v3689_v12  ;;  %v4014_v56 = vld [vmem:[#allocation9 + $0xcc] sm:$0xf0]  ;;  %v4802_v12 = vor.u32 %v4019_v41, %v3860_v20  ;;  %v3774_v20 = vld [vmem:[#allocation9 + $0x50] sm:$0xf0]  ;;  %v3997_v41 = vld [vmem:[#allocation9 + $0x4c] sm:$0xf]  ;;  %v4860_v8 = vor.u32 %v3998_v62, %v3772_v55 }
 0x107   :  { %v4868_v14 = vor.u32 %v3997_v41, %v3782_v42 }
 0x109   :  { %1420 = vmatpush.bf16.msrb.mxu0 %v3289_v37  ;;  %1434 = vmatpush.bf16.msrb.mxu1 %v3417_v22  ;;  %v3846_v37 = vld [vmem:[#allocation9 + $0xd8] sm:$0xf0]  ;;  %v4808_v22 = vor.u32 %v4014_v56, %v3836_v44  ;;  %v3994_v44 = vld [vmem:[#allocation9 + $0x2c] sm:$0xf0] }
 0x10a   :  { %1448 = vmatpush.bf16.msrb.mxu2 %v3545_v25  ;;  %1462 = vmatpush.bf16.msrb.mxu3 %v3673_v31  ;;  %v4010_v25 = vld [vmem:[#allocation9 + $0xac] sm:$0xf0]  ;;  %v4814_v31 = vor.u32 %v4015_v18, %v3844_v17  ;;  %v4816_v39 = vor.u32 %v4013_v24, %v3846_v37  ;;  %v3758_v17 = vld [vmem:[#allocation9 + $0x30] sm:$0xf0]  ;;  %v3764_v18 = vld [vmem:[#allocation9 + $0x28] sm:$0xf] }
 0x10b   :  { %v3995_v24 = vld [vmem:[#allocation9 + $0x34] sm:$0xf0]  ;;  %v3993_v37 = vld [vmem:[#allocation9 + $0x2c] sm:$0xf]  ;;  %v4874_v46 = vor.u32 %v3992_v15, %v3758_v17 }
 0x10d   :  { %1421 = vmatpush.bf16.msrb.mxu0 %v3273_v36  ;;  %1435 = vmatpush.bf16.msrb.mxu1 %v3401_v43  ;;  %v3830_v36 = vld [vmem:[#allocation9 + $0xb8] sm:$0xf0]  ;;  %v4824_v43 = vor.u32 %v4010_v25, %v3820_v30 }
 0x10e   :  { %1449 = vmatpush.bf16.msrb.mxu2 %v3529_v3  ;;  %1463 = vmatpush.bf16.msrb.mxu3 %v3657_v9  ;;  %v4006_v3 = vld [vmem:[#allocation9 + $0x8c] sm:$0xf0]  ;;  %v3812_v9 = vld [vmem:[#allocation9 + $0x88] sm:$0xf]  ;;  %v3766_v30 = vld [vmem:[#allocation9 + $0x38] sm:$0xf0] }
 0x10f   :  { %v4836_v49 = vor.u32 %v4006_v3, %v3804_v23  ;;  %v3742_v23 = vld [vmem:[#allocation9 + $0x10] sm:$0xf0]  ;;  %v3748_v3 = vld [vmem:[#allocation9 + $0x8] sm:$0xf] }
 0x111   :  { %1422 = vmatpush.bf16.msrb.mxu0 %v3257_v54  ;;  %1436 = vmatpush.bf16.msrb.mxu1 %v3385_v57  ;;  %v4842_v54 = vor.u32 %v4007_v48, %v3812_v9  ;;  %v4844_v57 = vor.u32 %v4005_v29, %v3814_v47  ;;  %v3750_v9 = vld [vmem:[#allocation9 + $0x18] sm:$0xf0] }
 0x112   :  { %1450 = vmatpush.bf16.msrb.mxu2 %v3513_v60  ;;  %1464 = vmatpush.bf16.msrb.mxu3 %v3641_v61  ;;  %v4003_v60 = vld [vmem:[#allocation9 + $0x74] sm:$0xf0]  ;;  %v4001_v61 = vld [vmem:[#allocation9 + $0x6c] sm:$0xf] }
 0x113   :  { %v4854_v63 = vor.u32 %v4003_v60, %v3796_v50  ;;  %v4856_v1 = vor.u32 %v4001_v61, %v3798_v4 }
 0x115   :  { %1423 = vmatpush.bf16.msrb.mxu0 %v3241_v6  ;;  %1437 = vmatpush.bf16.msrb.mxu1 %v3369_v16  ;;  %v3780_v6 = vld [vmem:[#allocation9 + $0x48] sm:$0xf]  ;;  %v3999_v16 = vld [vmem:[#allocation9 + $0x54] sm:$0xf0] }
 0x116   :  { %1451 = vmatpush.bf16.msrb.mxu2 %v3497_v10  ;;  %1465 = vmatpush.bf16.msrb.mxu3 %v3625_v11  ;;  %v4862_v10 = vor.u32 %v3996_v19, %v3774_v20  ;;  %v3756_v11 = vld [vmem:[#allocation9 + $0x20] sm:$0xf]  ;;  %v4866_v56 = vor.u32 %v3999_v16, %v3780_v6 }
 0x117   :  { %v4872_v25 = vor.u32 %v3994_v44, %v3756_v11 }
 0x118   :  { %1424 = vmatmul.bf16.vlgmr.msrb.gmra.mxu0 %v4778_v5  ;;  %1438 = vmatmul.bf16.vlgmr.msrb.gmra.mxu1 %v4780_v7  ;;  %v4830_v5 = vor.u32 %v4011_v33, %v3828_v28  ;;  %v4832_v7 = vor.u32 %v4009_v35, %v3830_v36  ;;  %v3990_v28 = vld [vmem:[#allocation9 + $0xc] sm:$0xf0]  ;;  %v4878_v33 = vor.u32 %v3995_v24, %v3764_v18  ;;  %v3988_v36 = vld [vmem:[#allocation9 + $0x4] sm:$0xf] }
 0x119   :  { %1698 = vmatpush.bf16.msra.mxu0 %v4798_v34  ;;  %1711 = vmatpush.bf16.msra.mxu1 %v4800_v59  ;;  %v4880_v35 = vor.u32 %v3993_v37, %v3766_v30  ;;  %v4884_v48 = vor.u32 %v3990_v28, %v3740_v21  ;;  %v4886_v29 = vor.u32 %v3988_v36, %v3742_v23 }
 0x11a   :  { %1724 = vmatpush.bf16.msra.mxu2 %v4802_v12  ;;  %1737 = vmatpush.bf16.msra.mxu3 %v4804_v13 }
 0x11b   :  { %1452 = vmatmul.bf16.vlgmr.msrb.gmra.mxu2 %v4782_v26  ;;  %1466 = vmatmul.bf16.vlgmr.msrb.gmra.mxu3 %v4786_v32  ;;  %v4004_v26 = vld [vmem:[#allocation9 + $0x84] sm:$0xf]  ;;  %v3806_v32 = vld [vmem:[#allocation9 + $0x90] sm:$0xf0]  ;;  %5295 = vst [vmem:[#allocation21_spill] sm:$0xff] %v4884_v48 }
 0x11c   :  { %v4838_v51 = vor.u32 %v4004_v26, %v3806_v32  ;;  %v3991_v26 = vld [vmem:[#allocation9 + $0x14] sm:$0xf0]  ;;  %v3989_v32 = vld [vmem:[#allocation9 + $0xc] sm:$0xf]  ;;  %5296 = vst [vmem:[#allocation22_spill] sm:$0xff] %v4886_v29 }
 0x11d   :  { %1699 = vmatpush.bf16.msra.mxu0 %v4808_v22  ;;  %1712 = vmatpush.bf16.msra.mxu1 %v4810_v27  ;;  %v4890_v47 = vor.u32 %v3991_v26, %v3748_v3  ;;  %v4892_v52 = vor.u32 %v3989_v32, %v3750_v9 }
 0x11e   :  { %1725 = vmatpush.bf16.msra.mxu2 %v4814_v31  ;;  %1738 = vmatpush.bf16.msra.mxu3 %v4816_v39 }
 0x11f   :  { %5297 = vst [vmem:[#allocation23_spill] sm:$0xff] %v4890_v47 }
 0x120   :  { %5298 = vst [vmem:[#allocation24_spill] sm:$0xff] %v4892_v52 }
 0x121   :  { %1700 = vmatpush.bf16.msra.mxu0 %v4824_v43  ;;  %1713 = vmatpush.bf16.msra.mxu1 %v4826_v2 }
 0x122   :  { %1726 = vmatpush.bf16.msra.mxu2 %v4830_v5  ;;  %1739 = vmatpush.bf16.msra.mxu3 %v4832_v7 }
 0x125   :  { %1701 = vmatpush.bf16.msra.mxu0 %v4836_v49  ;;  %1714 = vmatpush.bf16.msra.mxu1 %v4838_v51 }
 0x126   :  { %1727 = vmatpush.bf16.msra.mxu2 %v4842_v54  ;;  %1740 = vmatpush.bf16.msra.mxu3 %v4844_v57 }
 0x129   :  { %1702 = vmatpush.bf16.msra.mxu0 %v4848_v40  ;;  %1715 = vmatpush.bf16.msra.mxu1 %v4850_v45 }
 0x12a   :  { %1728 = vmatpush.bf16.msra.mxu2 %v4854_v63  ;;  %1741 = vmatpush.bf16.msra.mxu3 %v4856_v1 }
 0x12d   :  { %1703 = vmatpush.bf16.msra.mxu0 %v4860_v8  ;;  %1716 = vmatpush.bf16.msra.mxu1 %v4862_v10 }
 0x12e   :  { %1729 = vmatpush.bf16.msra.mxu2 %v4866_v56  ;;  %1742 = vmatpush.bf16.msra.mxu3 %v4868_v14 }
 0x131   :  { %1704 = vmatpush.bf16.msra.mxu0 %v4872_v25  ;;  %1717 = vmatpush.bf16.msra.mxu1 %v4874_v46 }
 0x132   :  { %1730 = vmatpush.bf16.msra.mxu2 %v4878_v33  ;;  %1743 = vmatpush.bf16.msra.mxu3 %v4880_v35 }
 0x135   :  { %1705 = vmatpush.bf16.msra.mxu0 %v4884_v48  ;;  %1718 = vmatpush.bf16.msra.mxu1 %v4886_v29 }
 0x136   :  { %1731 = vmatpush.bf16.msra.mxu2 %v4890_v47  ;;  %1744 = vmatpush.bf16.msra.mxu3 %v4892_v52 }
 0x138   :  { %1706 = vmatmul.bf16.vlgmr.msra.gmra.mxu0 %v4536_v0  ;;  %1719 = vmatmul.bf16.vlgmr.msra.gmra.mxu1 %v4536_v0 }
 0x139   :  { %1836 = vmatpush.bf16.msrb.mxu0 %v4798_v34  ;;  %1849 = vmatpush.bf16.msrb.mxu1 %v4800_v59 }
 0x13a   :  { %1732 = vmatmul.bf16.vlgmr.msra.gmra.mxu2 %v4536_v0  ;;  %1745 = vmatmul.bf16.vlgmr.msra.gmra.mxu3 %v4536_v0  ;;  %v4931_v0 = vld [vmem:[%s5280_s4] sm:$0xf] }
 0x13b   :  { %1862 = vmatpush.bf16.msrb.mxu2 %v4802_v12  ;;  %1875 = vmatpush.bf16.msrb.mxu3 %v4804_v13  ;;  %v577_v53 = vperm.slane %v4931_v0, 0  ;;  %v578_v6 = vperm.slane %v4931_v0, 1 }
 0x13d   :  { %1837 = vmatpush.bf16.msrb.mxu0 %v4808_v22  ;;  %1850 = vmatpush.bf16.msrb.mxu1 %v4810_v27 }
 0x13f   :  { %1863 = vmatpush.bf16.msrb.mxu2 %v4814_v31  ;;  %1876 = vmatpush.bf16.msrb.mxu3 %v4816_v39 }
 0x141   :  { %1838 = vmatpush.bf16.msrb.mxu0 %v4824_v43  ;;  %1851 = vmatpush.bf16.msrb.mxu1 %v4826_v2 }
 0x143   :  { %1864 = vmatpush.bf16.msrb.mxu2 %v4830_v5  ;;  %1877 = vmatpush.bf16.msrb.mxu3 %v4832_v7 }
 0x145   :  { %1839 = vmatpush.bf16.msrb.mxu0 %v4836_v49  ;;  %1852 = vmatpush.bf16.msrb.mxu1 %v4838_v51 }
 0x147   :  { %1865 = vmatpush.bf16.msrb.mxu2 %v4842_v54  ;;  %1878 = vmatpush.bf16.msrb.mxu3 %v4844_v57 }
 0x149   :  { %1840 = vmatpush.bf16.msrb.mxu0 %v4848_v40  ;;  %1853 = vmatpush.bf16.msrb.mxu1 %v4850_v45 }
 0x14b   :  { %1866 = vmatpush.bf16.msrb.mxu2 %v4854_v63  ;;  %1879 = vmatpush.bf16.msrb.mxu3 %v4856_v1 }
 0x14d   :  { %1841 = vmatpush.bf16.msrb.mxu0 %v4860_v8  ;;  %1854 = vmatpush.bf16.msrb.mxu1 %v4862_v10 }
 0x14f   :  { %1867 = vmatpush.bf16.msrb.mxu2 %v4866_v56  ;;  %1880 = vmatpush.bf16.msrb.mxu3 %v4868_v14 }
 0x151   :  { %1842 = vmatpush.bf16.msrb.mxu0 %v4872_v25  ;;  %1855 = vmatpush.bf16.msrb.mxu1 %v4874_v46 }
 0x153   :  { %1868 = vmatpush.bf16.msrb.mxu2 %v4878_v33  ;;  %1881 = vmatpush.bf16.msrb.mxu3 %v4880_v35 }
 0x154   :  { %v1257_v58 = vpop.f32.mrf.mxu0  ;;  %v1271_v38 = vpop.f32.mrf.mxu1 }
 0x155   :  { %1843 = vmatpush.bf16.msrb.mxu0 %v4884_v48  ;;  %1856 = vmatpush.bf16.msrb.mxu1 %v4886_v29  ;;  %v1258_v50 = vadd.f32 %v1257_v58, %v577_v53 }
 0x157   :  { %1869 = vmatpush.bf16.msrb.mxu2 %v4890_v47  ;;  %1882 = vmatpush.bf16.msrb.mxu3 %v4892_v52  ;;  %v1272_v60 = vadd.f32 %v1271_v38, %v1258_v50 }
 0x159   :  { %1975 = vmatpush.bf16.msra.mxu0 %v4798_v34  ;;  %1988 = vmatpush.bf16.msra.mxu1 %v4800_v59 }
 0x15b   :  { %2001 = vmatpush.bf16.msra.mxu2 %v4802_v12  ;;  %2014 = vmatpush.bf16.msra.mxu3 %v4804_v13  ;;  %v1285_v61 = vpop.f32.mrf.mxu2  ;;  %v1299_v4 = vpop.f32.mrf.mxu3 }
 0x15c   :  { %v1286_v55 = vadd.f32 %v1285_v61, %v1272_v60  ;;  %v1259_v62 = vpop.f32.mrf.mxu0  ;;  %v1273_v19 = vpop.f32.mrf.mxu1 }
 0x15d   :  { %1976 = vmatpush.bf16.msra.mxu0 %v4808_v22  ;;  %1989 = vmatpush.bf16.msra.mxu1 %v4810_v27  ;;  %v1260_v21 = vadd.f32 %v1259_v62, %v577_v53 }
 0x15e   :  { %v4954_v20 = vadd.f32 %v1299_v4, %v1286_v55 }
 0x15f   :  { %2002 = vmatpush.bf16.msra.mxu2 %v4814_v31  ;;  %2015 = vmatpush.bf16.msra.mxu3 %v4816_v39  ;;  %v1274_v3 = vadd.f32 %v1273_v19, %v1260_v21 }
 0x161   :  { %1977 = vmatpush.bf16.msra.mxu0 %v4824_v43  ;;  %1990 = vmatpush.bf16.msra.mxu1 %v4826_v2 }
 0x163   :  { %2003 = vmatpush.bf16.msra.mxu2 %v4830_v5  ;;  %2016 = vmatpush.bf16.msra.mxu3 %v4832_v7  ;;  %v1287_v16 = vpop.f32.mrf.mxu2  ;;  %v1301_v41 = vpop.f32.mrf.mxu3 }
 0x164   :  { %v1313_v42 = vpop.f32.mrf.mxu0  ;;  %v1327_v11 = vpop.f32.mrf.mxu1  ;;  %v1288_v50 = vadd.f32 %v1287_v16, %v1274_v3 }
 0x165   :  { %1978 = vmatpush.bf16.msra.mxu0 %v4836_v49  ;;  %1991 = vmatpush.bf16.msra.mxu1 %v4838_v51  ;;  %v1314_v44 = vadd.f32 %v1313_v42, %v578_v6 }
 0x166   :  { %v1302_v62 = vadd.f32 %v1301_v41, %v1288_v50 }
 0x167   :  { %2004 = vmatpush.bf16.msra.mxu2 %v4842_v54  ;;  %2017 = vmatpush.bf16.msra.mxu3 %v4844_v57  ;;  %v1328_v15 = vadd.f32 %v1327_v11, %v1314_v44 }
 0x169   :  { %1979 = vmatpush.bf16.msra.mxu0 %v4848_v40  ;;  %1992 = vmatpush.bf16.msra.mxu1 %v4850_v45 }
 0x16b   :  { %2005 = vmatpush.bf16.msra.mxu2 %v4854_v63  ;;  %2018 = vmatpush.bf16.msra.mxu3 %v4856_v1  ;;  %v1341_v17 = vpop.f32.mrf.mxu2  ;;  %v1355_v18 = vpop.f32.mrf.mxu3 }
 0x16c   :  { %v1342_v24 = vadd.f32 %v1341_v17, %v1328_v15  ;;  %v1315_v37 = vpop.f32.mrf.mxu0  ;;  %v1329_v30 = vpop.f32.mrf.mxu1  ;;  %v579_v15 = vperm.slane %v4931_v0, 2 }
 0x16d   :  { %1980 = vmatpush.bf16.msra.mxu0 %v4860_v8  ;;  %1993 = vmatpush.bf16.msra.mxu1 %v4862_v10  ;;  %v1316_v28 = vadd.f32 %v1315_v37, %v578_v6 }
 0x16e   :  { %v1356_v36 = vadd.f32 %v1355_v18, %v1342_v24 }
 0x16f   :  { %2006 = vmatpush.bf16.msra.mxu2 %v4866_v56  ;;  %2019 = vmatpush.bf16.msra.mxu3 %v4868_v14  ;;  %v1330_v53 = vadd.f32 %v1329_v30, %v1316_v28 }
 0x170   :  { %v4975_v23 = vrot.slane %v1356_v36, 6 }
 0x171   :  { %1981 = vmatpush.bf16.msra.mxu0 %v4872_v25  ;;  %1994 = vmatpush.bf16.msra.mxu1 %v4874_v46 }
 0x172   :  { %v1492_v26 = vsel %vm1491_vm4, %v4954_v20, %v4975_v23  ;;  %v1498_v32 = vsel %vm1487_vm3, %v4954_v20, %v4975_v23  ;;  %v1502_v9 = vsel %vm1493_vm5, %v4975_v23, %v4954_v20 }
 0x173   :  { %2007 = vmatpush.bf16.msra.mxu2 %v4878_v33  ;;  %2020 = vmatpush.bf16.msra.mxu3 %v4880_v35  ;;  %v1343_v58 = vpop.f32.mrf.mxu2  ;;  %v1357_v38 = vpop.f32.mrf.mxu3 }
 0x174   :  { %v1344_v60 = vadd.f32 %v1343_v58, %v1330_v53  ;;  %v580_v53 = vperm.slane %v4931_v0, 3 }
 0x175   :  { %1982 = vmatpush.bf16.msra.mxu0 %v4884_v48  ;;  %1995 = vmatpush.bf16.msra.mxu1 %v4886_v29  ;;  %v1369_v4 = vpop.f32.mrf.mxu0  ;;  %v1383_v55 = vpop.f32.mrf.mxu1 }
 0x176   :  { %v1358_v61 = vadd.f32 %v1357_v38, %v1344_v60  ;;  %v1370_v3 = vadd.f32 %v1369_v4, %v579_v15 }
 0x177   :  { %2008 = vmatpush.bf16.msra.mxu2 %v4890_v47  ;;  %2021 = vmatpush.bf16.msra.mxu3 %v4892_v52 }
 0x178   :  { %v1483_v19 = vrot.slane %v1358_v61, 6  ;;  %v1384_v50 = vadd.f32 %v1383_v55, %v1370_v3 }
 0x17a   :  { %v1506_v6 = vsel %vm396_vm2, %v1302_v62, %v1483_v19  ;;  %v1509_v42 = vsel %vm1491_vm4, %v1302_v62, %v1483_v19  ;;  %v1513_v11 = vsel %vm1487_vm3, %v1302_v62, %v1483_v19  ;;  %v1517_v44 = vsel %vm1493_vm5, %v1483_v19, %v1302_v62 }
 0x17d   :  { %v1371_v24 = vpop.f32.mrf.mxu0  ;;  %v1385_v37 = vpop.f32.mrf.mxu1 }
 0x17e   :  { %v1397_v17 = vpop.f32.mrf.mxu2  ;;  %v1411_v18 = vpop.f32.mrf.mxu3  ;;  %v1372_v16 = vadd.f32 %v1371_v24, %v579_v15 }
 0x17f   :  { %v1398_v61 = vadd.f32 %v1397_v17, %v1384_v50 }
 0x180   :  { %v1386_v30 = vadd.f32 %v1385_v37, %v1372_v16 }
 0x181   :  { %v1412_v47 = vadd.f32 %v1411_v18, %v1398_v61 }
 0x186   :  { %v1399_v21 = vpop.f32.mrf.mxu2  ;;  %v1413_v41 = vpop.f32.mrf.mxu3 }
 0x187   :  { %v1400_v28 = vadd.f32 %v1399_v21, %v1386_v30  ;;  %v1481_v21 = vrot.slane %v1412_v47, 4 }
 0x189   :  { %v1414_v36 = vadd.f32 %v1413_v41, %v1400_v28 }
 0x18b   :  { %v1484_v41 = vrot.slane %v1414_v36, 4 }
 0x195   :  { %v1425_v58 = vpop.f32.mrf.mxu0  ;;  %v1439_v38 = vpop.f32.mrf.mxu1 }
 0x196   :  { %v1426_v60 = vadd.f32 %v1425_v58, %v580_v53 }
 0x198   :  { %v1440_v62 = vadd.f32 %v1439_v38, %v1426_v60 }
 0x19d   :  { %v1427_v24 = vpop.f32.mrf.mxu0  ;;  %v1441_v37 = vpop.f32.mrf.mxu1 }
 0x19e   :  { %v1453_v19 = vpop.f32.mrf.mxu2  ;;  %v1467_v52 = vpop.f32.mrf.mxu3  ;;  %v1428_v48 = vadd.f32 %v1427_v24, %v580_v53 }
 0x19f   :  { %v1454_v29 = vadd.f32 %v1453_v19, %v1440_v62 }
 0x1a0   :  { %v1442_v30 = vadd.f32 %v1441_v37, %v1428_v48 }
 0x1a1   :  { %v1468_v16 = vadd.f32 %v1467_v52, %v1454_v29 }
 0x1a3   :  { %v1482_v28 = vrot.slane %v1468_v16, 2 }
 0x1a5   :  { %v1494_v0 = vsel %vm1493_vm5, %v1482_v28, %v1481_v21  ;;  %v1499_v4 = vsel %vm396_vm2, %v1481_v21, %v1482_v28  ;;  %v1503_v55 = vsel %vm1491_vm4, %v1481_v21, %v1482_v28  ;;  %v1488_v16 = vsel %vm1487_vm3, %v1481_v21, %v1482_v28 }
 0x1a6   :  { %v1455_v15 = vpop.f32.mrf.mxu2  ;;  %v4996_v17 = vsel %vm1495_vm7, %v1492_v26, %v1494_v0  ;;  %v4999_v18 = vsel %vm1489_vm6, %v1499_v4, %v1498_v32  ;;  %v5002_v29 = vsel %vm1495_vm7, %v1503_v55, %v1502_v9  ;;  %v1469_v47 = vpop.f32.mrf.mxu3 }
 0x1a7   :  { %v1456_v48 = vadd.f32 %v1455_v15, %v1442_v30 }
 0x1a9   :  { %v1470_v52 = vadd.f32 %v1469_v47, %v1456_v48 }
 0x1ab   :  { %v1485_v3 = vrot.slane %v1470_v52, 2 }
 0x1ad   :  { %v1507_v53 = vsel %vm1487_vm3, %v1484_v41, %v1485_v3  ;;  %v1510_v58 = vsel %vm1493_vm5, %v1485_v3, %v1484_v41  ;;  %v1514_v38 = vsel %vm396_vm2, %v1484_v41, %v1485_v3  ;;  %v1518_v26 = vsel %vm1491_vm4, %v1484_v41, %v1485_v3 }
 0x1ae   :  { %v5009_v50 = vsel %vm1489_vm6, %v1506_v6, %v1507_v53  ;;  %v5012_v32 = vsel %vm1495_vm7, %v1509_v42, %v1510_v58  ;;  %v5015_v9 = vsel %vm1489_vm6, %v1514_v38, %v1513_v11  ;;  %v5018_v36 = vsel %vm1495_vm7, %v1518_v26, %v1517_v44 }
 0x1af   :  { %5299 = vst [vmem:[#allocation25_spill] sm:$0xff] %v5018_v36  ;;  %v1486_v11 = vsel %vm396_vm2, %v4954_v20, %v4975_v23 }
 0x1b0   :  { %v1490_v4 = vsel %vm1489_vm6, %v1486_v11, %v1488_v16 }
 0x1b5   :  { %v1707_v60 = vpop.f32.mrf.mxu0  ;;  %v1720_v61 = vpop.f32.mrf.mxu1 }
 0x1b6   :  { %v1754_v62 = vrot.slane %v1720_v61, 6 }
 0x1b8   :  { %v1757_v37 = vsel %vm396_vm2, %v1707_v60, %v1754_v62 }
 0x1bd   :  { %v1733_v19 = vpop.f32.mrf.mxu2  ;;  %v1746_v24 = vpop.f32.mrf.mxu3 }
 0x1be   :  { %v1755_v6 = vrot.slane %v1733_v19, 4  ;;  %v1756_v30 = vrot.slane %v1746_v24, 2  ;;  %v1709_v0 = vpop.f32.mrf.mxu0  ;;  %v1722_v42 = vpop.f32.mrf.mxu1 }
 0x1c0   :  { %v1758_v44 = vsel %vm1487_vm3, %v1755_v6, %v1756_v30 }
 0x1c1   :  { %v1759_v55 = vsel %vm1489_vm6, %v1757_v37, %v1758_v44 }
 0x1c2   :  { %v1761_v15 = vadd.f32 %v1759_v55, %v1490_v4 }
 0x1c4   :  { %v3866_v48 = vmul.f32 -1.442695, %v1761_v15  ;;  %v1782_v47 = vrot.slane %v1761_v15, 2  ;;  %v1806_v21 = vrot.slane %v1761_v15, 6  ;;  %v1803_v19 = vrot.slane %v1761_v15, 4 }
 0x1c5   :  { %v1735_v28 = vpop.f32.mrf.mxu2  ;;  %v1748_v52 = vpop.f32.mrf.mxu3 }
 0x1c6   :  { %4212 = vpow2.f32 %v3866_v48  ;;  %v3867_v41 = vmul.f32 -1.442695, %v1782_v47  ;;  %v3868_v3 = vmul.f32 -1.442695, %v1806_v21 }
 0x1c8   :  { %4214 = vpow2.f32 %v3867_v41 }
 0x1c9   :  { %4216 = vpow2.f32 %v3868_v3 }
 0x1cc   :  { %v4213_v53 = vpop.eup %4212 }
 0x1cd   :  { %v1765_v58 = vadd.f32 1.0, %v4213_v53 }
 0x1ce   :  { %v4215_v20 = vpop.eup %4214 }
 0x1cf   :  { %v4217_v23 = vpop.eup %4216  ;;  %4218 = vrcp.f32 %v1765_v58  ;;  %v1787_v38 = vadd.f32 1.0, %v4215_v20  ;;  %v1777_v6 = vand.u32 2147483648, %v1765_v58  ;;  %v1775_v42 = vand.u32 2147483647, %v1765_v58 }
 0x1d0   :  { %v1811_v26 = vadd.f32 1.0, %v4217_v23  ;;  %vm1771_vm9 = vweird.f32 %v1765_v58 }
 0x1d1   :  { %4220 = vrcp.f32 %v1787_v38  ;;  %v1799_v44 = vand.u32 2147483648, %v1787_v38  ;;  %v1797_v48 = vand.u32 2147483647, %v1787_v38  ;;  %v1778_v47 = vor.u32 1.1754944e-38, %v1777_v6 }
 0x1d2   :  { %4222 = vrcp.f32 %v1811_v26  ;;  %vm1776_vm12 = vcmp.eq.f32.partialorder %v1775_v42, 8.507059e+37  ;;  %vm1793_vm13 = vweird.f32 %v1787_v38  ;;  %vm1817_vm1 = vweird.f32 %v1811_v26 }
 0x1d3   :  { %4224 = vtanh.f32 %v1803_v19  ;;  %v1800_v41 = vor.u32 1.1754944e-38, %v1799_v44  ;;  %vm1798_vm15 = vcmp.eq.f32.partialorder %v1797_v48, 8.507059e+37  ;;  %v5303_v44 = vld [vmem:[#allocation24_spill] sm:$0xff] }
 0x1d5   :  { %v4219_v60 = vpop.eup %4218 }
 0x1d6   :  { %v1767_v61 = vmul.f32 %v4219_v60, %v1765_v58  ;;  %vm1772_vm8 = vweird.f32 %v4219_v60 }
 0x1d7   :  { %v4221_v62 = vpop.eup %4220  ;;  %vm1773_vm11 = vmor %vm1771_vm9, %vm1772_vm8 }
 0x1d8   :  { %v4223_v24 = vpop.eup %4222  ;;  %v1768_v16 = vsub.f32 1.0, %v1767_v61  ;;  %v1789_v37 = vmul.f32 %v4221_v62, %v1787_v38  ;;  %vm1794_vm10 = vweird.f32 %v4221_v62 }
 0x1d9   :  { %v1813_v30 = vmul.f32 %v4223_v24, %v1811_v26  ;;  %vm1795_vm14 = vmor %vm1793_vm13, %vm1794_vm10  ;;  %v4225_v53 = vpop.eup %4224  ;;  %vm1818_vm0 = vweird.f32 %v4223_v24 }
 0x1da   :  { %v1769_v0 = vmul.f32 %v4219_v60, %v1768_v16  ;;  %v1790_v11 = vsub.f32 1.0, %v1789_v37  ;;  %v1823_v37 = vand.u32 2147483648, %v1811_v26  ;;  %vm1819_vm4 = vmor %vm1817_vm1, %vm1818_vm0 }
 0x1db   :  { %v1814_v21 = vsub.f32 1.0, %v1813_v30 }
 0x1dc   :  { %v1770_v4 = vadd.f32 %v4219_v60, %v1769_v0  ;;  %v1791_v55 = vmul.f32 %v4221_v62, %v1790_v11  ;;  %v1824_v6 = vor.u32 1.1754944e-38, %v1823_v37  ;;  %v5302_v11 = vld [vmem:[#allocation23_spill] sm:$0xff] }
 0x1dd   :  { %v1815_v58 = vmul.f32 %v4223_v24, %v1814_v21 }
 0x1de   :  { %v1774_v15 = vsel %vm1773_vm11, %v4219_v60, %v1770_v4  ;;  %v1792_v28 = vadd.f32 %v4221_v62, %v1791_v55  ;;  %v1821_v60 = vand.u32 2147483647, %v1811_v26  ;;  %v5300_v26 = vld [vmem:[#allocation21_spill] sm:$0xff] }
 0x1df   :  { %v1779_v52 = vsel %vm1776_vm12, %v1778_v47, %v1774_v15  ;;  %v1816_v16 = vadd.f32 %v4223_v24, %v1815_v58 }
 0x1e0   :  { %v1796_v3 = vsel %vm1795_vm14, %v4221_v62, %v1792_v28  ;;  %v1828_v61 = vmul.f32 %v4225_v53, %v1779_v52  ;;  %vm1822_vm5 = vcmp.eq.f32.partialorder %v1821_v60, 8.507059e+37  ;;  %v1497_v53 = vrot.slane %v4996_v17, 2 }
 0x1e1   :  { %v1801_v20 = vsel %vm1798_vm15, %v1800_v41, %v1796_v3  ;;  %v1820_v38 = vsel %vm1819_vm4, %v4223_v24, %v1816_v16  ;;  %v5301_v24 = vld [vmem:[#allocation22_spill] sm:$0xff] }
 0x1e2   :  { %v1827_v23 = vmul.f32 0.0, %v1801_v20  ;;  %v1825_v30 = vsel %vm1822_vm5, %v1824_v6, %v1820_v38 }
 0x1e4   :  { %v5028_v19 = vadd.f32 %v1828_v61, %v1827_v23 }
 0x1e6   :  { %4226 = vtanh.f32 %v5028_v19 }
 0x1ec   :  { %v4227_v62 = vpop.eup %4226 }
 0x1ed   :  { %v1831_v0 = vmul.f32 %v4227_v62, %v1825_v30 }
 0x1ef   :  { %1832 = vst [vmem:[#allocation3] sm:$0x3] %v1831_v0  ;;  %v1835_v42 = vpack.c.bf16 %v1831_v0, %v1831_v0 }
 0x1f1   :  { %1844 = vmatmul.bf16.vlgmr.msrb.gmra.mxu0 %v1835_v42  ;;  %1857 = vmatmul.bf16.vlgmr.msrb.gmra.mxu1 %v1835_v42 }
 0x1f2   :  { %1870 = vmatmul.bf16.vlgmr.msrb.gmra.mxu2 %v1835_v42  ;;  %1883 = vmatmul.bf16.vlgmr.msrb.gmra.mxu3 %v1835_v42 }
 0x1f3   :  { %2114 = vmatpush.bf16.msrb.mxu0 %v4798_v34  ;;  %2127 = vmatpush.bf16.msrb.mxu1 %v4800_v59 }
 0x1f4   :  { %2140 = vmatpush.bf16.msrb.mxu2 %v4802_v12  ;;  %2153 = vmatpush.bf16.msrb.mxu3 %v4804_v13 }
 0x1f7   :  { %2115 = vmatpush.bf16.msrb.mxu0 %v4808_v22  ;;  %2128 = vmatpush.bf16.msrb.mxu1 %v4810_v27 }
 0x1f8   :  { %2141 = vmatpush.bf16.msrb.mxu2 %v4814_v31  ;;  %2154 = vmatpush.bf16.msrb.mxu3 %v4816_v39 }
 0x1fb   :  { %2116 = vmatpush.bf16.msrb.mxu0 %v4824_v43  ;;  %2129 = vmatpush.bf16.msrb.mxu1 %v4826_v2 }
 0x1fc   :  { %2142 = vmatpush.bf16.msrb.mxu2 %v4830_v5  ;;  %2155 = vmatpush.bf16.msrb.mxu3 %v4832_v7 }
 0x1ff   :  { %2117 = vmatpush.bf16.msrb.mxu0 %v4836_v49  ;;  %2130 = vmatpush.bf16.msrb.mxu1 %v4838_v51 }
 0x200   :  { %2143 = vmatpush.bf16.msrb.mxu2 %v4842_v54  ;;  %2156 = vmatpush.bf16.msrb.mxu3 %v4844_v57 }
 0x203   :  { %2118 = vmatpush.bf16.msrb.mxu0 %v4848_v40  ;;  %2131 = vmatpush.bf16.msrb.mxu1 %v4850_v45 }
 0x204   :  { %2144 = vmatpush.bf16.msrb.mxu2 %v4854_v63  ;;  %2157 = vmatpush.bf16.msrb.mxu3 %v4856_v1 }
 0x207   :  { %2119 = vmatpush.bf16.msrb.mxu0 %v4860_v8  ;;  %2132 = vmatpush.bf16.msrb.mxu1 %v4862_v10 }
 0x208   :  { %2145 = vmatpush.bf16.msrb.mxu2 %v4866_v56  ;;  %2158 = vmatpush.bf16.msrb.mxu3 %v4868_v14 }
 0x20b   :  { %2120 = vmatpush.bf16.msrb.mxu0 %v4872_v25  ;;  %2133 = vmatpush.bf16.msrb.mxu1 %v4874_v46 }
 0x20c   :  { %2146 = vmatpush.bf16.msrb.mxu2 %v4878_v33  ;;  %2159 = vmatpush.bf16.msrb.mxu3 %v4880_v35 }
 0x20f   :  { %2121 = vmatpush.bf16.msrb.mxu0 %v5300_v26  ;;  %2134 = vmatpush.bf16.msrb.mxu1 %v5301_v24 }
 0x210   :  { %2147 = vmatpush.bf16.msrb.mxu2 %v5302_v11  ;;  %2160 = vmatpush.bf16.msrb.mxu3 %v5303_v44 }
 0x26e   :  { %v1845_v4 = vpop.f32.mrf.mxu0  ;;  %v1858_v55 = vpop.f32.mrf.mxu1 }
 0x26f   :  { %v1892_v48 = vrot.slane %v1858_v55, 6 }
 0x271   :  { %v1895_v3 = vsel %vm396_vm2, %v1845_v4, %v1892_v48 }
 0x275   :  { %v1871_v47 = vpop.f32.mrf.mxu2  ;;  %v1884_v21 = vpop.f32.mrf.mxu3 }
 0x276   :  { %v1893_v15 = vrot.slane %v1871_v47, 4  ;;  %v1894_v28 = vrot.slane %v1884_v21, 2  ;;  %v1847_v52 = vpop.f32.mrf.mxu0  ;;  %v1860_v41 = vpop.f32.mrf.mxu1 }
 0x278   :  { %v1896_v20 = vsel %vm1487_vm3, %v1893_v15, %v1894_v28 }
 0x279   :  { %v1897_v58 = vsel %vm1489_vm6, %v1895_v3, %v1896_v20 }
 0x27a   :  { %v1899_v23 = vadd.f32 %v1897_v58, %v1497_v53 }
 0x27c   :  { %v3869_v61 = vmul.f32 -1.442695, %v1899_v23  ;;  %v1920_v16 = vrot.slane %v1899_v23, 2  ;;  %v1944_v37 = vrot.slane %v1899_v23, 6  ;;  %v1941_v15 = vrot.slane %v1899_v23, 4 }
 0x27d   :  { %v1873_v60 = vpop.f32.mrf.mxu2  ;;  %v1886_v38 = vpop.f32.mrf.mxu3 }
 0x27e   :  { %4228 = vpow2.f32 %v3869_v61  ;;  %v3870_v6 = vmul.f32 -1.442695, %v1920_v16  ;;  %v3871_v62 = vmul.f32 -1.442695, %v1944_v37 }
 0x280   :  { %4230 = vpow2.f32 %v3870_v6 }
 0x281   :  { %4232 = vpow2.f32 %v3871_v62 }
 0x284   :  { %v4229_v30 = vpop.eup %4228 }
 0x285   :  { %v1903_v0 = vadd.f32 1.0, %v4229_v30 }
 0x286   :  { %v4231_v42 = vpop.eup %4230 }
 0x287   :  { %v4233_v4 = vpop.eup %4232  ;;  %4234 = vrcp.f32 %v1903_v0  ;;  %v1925_v17 = vadd.f32 1.0, %v4231_v42  ;;  %v1915_v3 = vand.u32 2147483648, %v1903_v0  ;;  %v1913_v61 = vand.u32 2147483647, %v1903_v0 }
 0x288   :  { %v1949_v55 = vadd.f32 1.0, %v4233_v4  ;;  %vm1909_vm8 = vweird.f32 %v1903_v0 }
 0x289   :  { %4236 = vrcp.f32 %v1925_v17  ;;  %v1937_v16 = vand.u32 2147483648, %v1925_v17  ;;  %v1935_v38 = vand.u32 2147483647, %v1925_v17  ;;  %v1916_v6 = vor.u32 1.1754944e-38, %v1915_v3 }
 0x28a   :  { %4238 = vrcp.f32 %v1949_v55  ;;  %vm1914_vm11 = vcmp.eq.f32.partialorder %v1913_v61, 8.507059e+37  ;;  %vm1931_vm12 = vweird.f32 %v1925_v17  ;;  %v1961_v3 = vand.u32 2147483648, %v1949_v55 }
 0x28b   :  { %4240 = vtanh.f32 %v1941_v15  ;;  %v1938_v4 = vor.u32 1.1754944e-38, %v1937_v16  ;;  %vm1936_vm14 = vcmp.eq.f32.partialorder %v1935_v38, 8.507059e+37  ;;  %vm1955_vm0 = vweird.f32 %v1949_v55 }
 0x28d   :  { %v4235_v48 = vpop.eup %4234 }
 0x28e   :  { %v1905_v47 = vmul.f32 %v4235_v48, %v1903_v0  ;;  %vm1910_vm7 = vweird.f32 %v4235_v48 }
 0x28f   :  { %v4237_v21 = vpop.eup %4236  ;;  %vm1911_vm10 = vmor %vm1909_vm8, %vm1910_vm7 }
 0x290   :  { %v4239_v28 = vpop.eup %4238  ;;  %v1906_v52 = vsub.f32 1.0, %v1905_v47  ;;  %v1927_v41 = vmul.f32 %v4237_v21, %v1925_v17  ;;  %vm1932_vm9 = vweird.f32 %v4237_v21  ;;  %v1959_v17 = vand.u32 2147483647, %v1949_v55 }
 0x291   :  { %v1951_v53 = vmul.f32 %v4239_v28, %v1949_v55  ;;  %vm1933_vm13 = vmor %vm1931_vm12, %vm1932_vm9  ;;  %vm1956_vm15 = vweird.f32 %v4239_v28 }
 0x292   :  { %v1928_v20 = vsub.f32 1.0, %v1927_v41  ;;  %v1907_v58 = vmul.f32 %v4235_v48, %v1906_v52  ;;  %v4241_v52 = vpop.eup %4240  ;;  %vm1957_vm1 = vmor %vm1955_vm0, %vm1956_vm15  ;;  %vm1960_vm4 = vcmp.eq.f32.partialorder %v1959_v17, 8.507059e+37 }
 0x293   :  { %v1952_v62 = vsub.f32 1.0, %v1951_v53  ;;  %v1962_v53 = vor.u32 1.1754944e-38, %v1961_v3 }
 0x294   :  { %v1908_v37 = vadd.f32 %v4235_v48, %v1907_v58  ;;  %v1929_v60 = vmul.f32 %v4237_v21, %v1928_v20 }
 0x295   :  { %v1953_v0 = vmul.f32 %v4239_v28, %v1952_v62 }
 0x296   :  { %v1912_v23 = vsel %vm1911_vm10, %v4235_v48, %v1908_v37  ;;  %v1930_v30 = vadd.f32 %v4237_v21, %v1929_v60 }
 0x297   :  { %v1917_v42 = vsel %vm1914_vm11, %v1916_v6, %v1912_v23  ;;  %v1954_v36 = vadd.f32 %v4239_v28, %v1953_v0 }
 0x298   :  { %v1934_v47 = vsel %vm1933_vm13, %v4237_v21, %v1930_v30  ;;  %v1966_v20 = vmul.f32 %v4241_v52, %v1917_v42  ;;  %v1501_v42 = vrot.slane %v4999_v18, 4 }
 0x299   :  { %v1939_v15 = vsel %vm1936_vm14, %v1938_v4, %v1934_v47  ;;  %v1958_v48 = vsel %vm1957_vm1, %v4239_v28, %v1954_v36 }
 0x29a   :  { %v1965_v41 = vmul.f32 %v1939_v15, %v5028_v19  ;;  %v1963_v61 = vsel %vm1960_vm4, %v1962_v53, %v1958_v48 }
 0x29c   :  { %v5068_v58 = vadd.f32 %v1966_v20, %v1965_v41 }
 0x29e   :  { %4242 = vtanh.f32 %v5068_v58 }
 0x2a4   :  { %v4243_v21 = vpop.eup %4242 }
 0x2a5   :  { %v1969_v16 = vmul.f32 %v4243_v21, %v1963_v61 }
 0x2a7   :  { %1971 = vst [vmem:[#allocation3 + $0x2] sm:$0x3] %v1969_v16  ;;  %v1974_v37 = vpack.c.bf16 %v1969_v16, %v1969_v16 }
 0x2a9   :  { %1983 = vmatmul.bf16.vlgmr.msra.gmra.mxu0 %v1974_v37  ;;  %1996 = vmatmul.bf16.vlgmr.msra.gmra.mxu1 %v1974_v37 }
 0x2aa   :  { %2009 = vmatmul.bf16.vlgmr.msra.gmra.mxu2 %v1974_v37  ;;  %2022 = vmatmul.bf16.vlgmr.msra.gmra.mxu3 %v1974_v37 }
 0x2ab   :  { %2253 = vmatpush.bf16.msra.mxu0 %v4798_v34  ;;  %2266 = vmatpush.bf16.msra.mxu1 %v4800_v59 }
 0x2ac   :  { %2279 = vmatpush.bf16.msra.mxu2 %v4802_v12  ;;  %2292 = vmatpush.bf16.msra.mxu3 %v4804_v13 }
 0x2af   :  { %2254 = vmatpush.bf16.msra.mxu0 %v4808_v22  ;;  %2267 = vmatpush.bf16.msra.mxu1 %v4810_v27 }
 0x2b0   :  { %2280 = vmatpush.bf16.msra.mxu2 %v4814_v31  ;;  %2293 = vmatpush.bf16.msra.mxu3 %v4816_v39 }
 0x2b3   :  { %2255 = vmatpush.bf16.msra.mxu0 %v4824_v43  ;;  %2268 = vmatpush.bf16.msra.mxu1 %v4826_v2 }
 0x2b4   :  { %2281 = vmatpush.bf16.msra.mxu2 %v4830_v5  ;;  %2294 = vmatpush.bf16.msra.mxu3 %v4832_v7 }
 0x2b7   :  { %2256 = vmatpush.bf16.msra.mxu0 %v4836_v49  ;;  %2269 = vmatpush.bf16.msra.mxu1 %v4838_v51 }
 0x2b8   :  { %2282 = vmatpush.bf16.msra.mxu2 %v4842_v54  ;;  %2295 = vmatpush.bf16.msra.mxu3 %v4844_v57 }
 0x2bb   :  { %2257 = vmatpush.bf16.msra.mxu0 %v4848_v40  ;;  %2270 = vmatpush.bf16.msra.mxu1 %v4850_v45 }
 0x2bc   :  { %2283 = vmatpush.bf16.msra.mxu2 %v4854_v63  ;;  %2296 = vmatpush.bf16.msra.mxu3 %v4856_v1 }
 0x2bf   :  { %2258 = vmatpush.bf16.msra.mxu0 %v4860_v8  ;;  %2271 = vmatpush.bf16.msra.mxu1 %v4862_v10 }
 0x2c0   :  { %2284 = vmatpush.bf16.msra.mxu2 %v4866_v56  ;;  %2297 = vmatpush.bf16.msra.mxu3 %v4868_v14 }
 0x2c3   :  { %2259 = vmatpush.bf16.msra.mxu0 %v4872_v25  ;;  %2272 = vmatpush.bf16.msra.mxu1 %v4874_v46 }
 0x2c4   :  { %2285 = vmatpush.bf16.msra.mxu2 %v4878_v33  ;;  %2298 = vmatpush.bf16.msra.mxu3 %v4880_v35 }
 0x2c7   :  { %2260 = vmatpush.bf16.msra.mxu0 %v5300_v26  ;;  %2273 = vmatpush.bf16.msra.mxu1 %v5301_v24 }
 0x2c8   :  { %2286 = vmatpush.bf16.msra.mxu2 %v5302_v11  ;;  %2299 = vmatpush.bf16.msra.mxu3 %v5303_v44 }
 0x326   :  { %v1984_v36 = vpop.f32.mrf.mxu0  ;;  %v1997_v19 = vpop.f32.mrf.mxu1 }
 0x327   :  { %v2031_v55 = vrot.slane %v1997_v19, 6 }
 0x329   :  { %v2034_v30 = vsel %vm396_vm2, %v1984_v36, %v2031_v55 }
 0x32d   :  { %v2010_v28 = vpop.f32.mrf.mxu2  ;;  %v2023_v60 = vpop.f32.mrf.mxu3 }
 0x32e   :  { %v2032_v38 = vrot.slane %v2010_v28, 4  ;;  %v2033_v6 = vrot.slane %v2023_v60, 2  ;;  %v1986_v62 = vpop.f32.mrf.mxu0  ;;  %v1999_v23 = vpop.f32.mrf.mxu1 }
 0x330   :  { %v2035_v4 = vsel %vm1487_vm3, %v2032_v38, %v2033_v6 }
 0x331   :  { %v2036_v47 = vsel %vm1489_vm6, %v2034_v30, %v2035_v4 }
 0x332   :  { %v2038_v52 = vadd.f32 %v2036_v47, %v1501_v42 }
 0x334   :  { %v3872_v15 = vmul.f32 -1.442695, %v2038_v52  ;;  %v2059_v0 = vrot.slane %v2038_v52, 2  ;;  %v2083_v41 = vrot.slane %v2038_v52, 6  ;;  %v2080_v28 = vrot.slane %v2038_v52, 4 }
 0x335   :  { %v2012_v20 = vpop.f32.mrf.mxu2  ;;  %v2025_v3 = vpop.f32.mrf.mxu3 }
 0x336   :  { %4244 = vpow2.f32 %v3872_v15  ;;  %v3873_v17 = vmul.f32 -1.442695, %v2059_v0  ;;  %v3874_v48 = vmul.f32 -1.442695, %v2083_v41 }
 0x338   :  { %4246 = vpow2.f32 %v3873_v17 }
 0x339   :  { %4248 = vpow2.f32 %v3874_v48 }
 0x33c   :  { %v4245_v53 = vpop.eup %4244 }
 0x33d   :  { %v2042_v21 = vadd.f32 1.0, %v4245_v53 }
 0x33e   :  { %v4247_v61 = vpop.eup %4246 }
 0x33f   :  { %v4249_v16 = vpop.eup %4248  ;;  %4250 = vrcp.f32 %v2042_v21  ;;  %v2064_v18 = vadd.f32 1.0, %v4247_v61  ;;  %v2054_v62 = vand.u32 2147483648, %v2042_v21  ;;  %v2052_v4 = vand.u32 2147483647, %v2042_v21 }
 0x340   :  { %v2088_v37 = vadd.f32 1.0, %v4249_v16  ;;  %vm2048_vm7 = vweird.f32 %v2042_v21 }
 0x341   :  { %4252 = vrcp.f32 %v2064_v18  ;;  %v2076_v47 = vand.u32 2147483648, %v2064_v18  ;;  %v2074_v41 = vand.u32 2147483647, %v2064_v18  ;;  %v2055_v20 = vor.u32 1.1754944e-38, %v2054_v62 }
 0x342   :  { %4254 = vrcp.f32 %v2088_v37  ;;  %vm2053_vm10 = vcmp.eq.f32.partialorder %v2052_v4, 8.507059e+37  ;;  %vm2070_vm11 = vweird.f32 %v2064_v18  ;;  %v2100_v62 = vand.u32 2147483648, %v2088_v37 }
 0x343   :  { %4256 = vtanh.f32 %v2080_v28  ;;  %v2077_v53 = vor.u32 1.1754944e-38, %v2076_v47  ;;  %vm2075_vm13 = vcmp.eq.f32.partialorder %v2074_v41, 8.507059e+37  ;;  %vm2094_vm15 = vweird.f32 %v2088_v37 }
 0x345   :  { %v4251_v36 = vpop.eup %4250 }
 0x346   :  { %v2044_v19 = vmul.f32 %v4251_v36, %v2042_v21  ;;  %vm2049_vm5 = vweird.f32 %v4251_v36 }
 0x347   :  { %v4253_v55 = vpop.eup %4252  ;;  %vm2050_vm9 = vmor %vm2048_vm7, %vm2049_vm5 }
 0x348   :  { %v4255_v60 = vpop.eup %4254  ;;  %v2045_v38 = vsub.f32 1.0, %v2044_v19  ;;  %v2066_v6 = vmul.f32 %v4253_v55, %v2064_v18  ;;  %vm2071_vm8 = vweird.f32 %v4253_v55  ;;  %v2098_v18 = vand.u32 2147483647, %v2088_v37 }
 0x349   :  { %v2090_v23 = vmul.f32 %v4255_v60, %v2088_v37  ;;  %vm2072_vm12 = vmor %vm2070_vm11, %vm2071_vm8  ;;  %v4257_v16 = vpop.eup %4256  ;;  %vm2095_vm14 = vweird.f32 %v4255_v60 }
 0x34a   :  { %v2067_v30 = vsub.f32 1.0, %v2066_v6  ;;  %v2046_v42 = vmul.f32 %v4251_v36, %v2045_v38  ;;  %vm2096_vm0 = vmor %vm2094_vm15, %vm2095_vm14  ;;  %vm2099_vm1 = vcmp.eq.f32.partialorder %v2098_v18, 8.507059e+37 }
 0x34b   :  { %v2091_v3 = vsub.f32 1.0, %v2090_v23  ;;  %v2101_v23 = vor.u32 1.1754944e-38, %v2100_v62 }
 0x34c   :  { %v2047_v15 = vadd.f32 %v4251_v36, %v2046_v42  ;;  %v2068_v0 = vmul.f32 %v4253_v55, %v2067_v30 }
 0x34d   :  { %v2092_v21 = vmul.f32 %v4255_v60, %v2091_v3 }
 0x34e   :  { %v2051_v52 = vsel %vm2050_vm9, %v4251_v36, %v2047_v15  ;;  %v2069_v17 = vadd.f32 %v4253_v55, %v2068_v0 }
 0x34f   :  { %v2056_v48 = vsel %vm2053_vm10, %v2055_v20, %v2051_v52  ;;  %v2093_v30 = vadd.f32 %v4255_v60, %v2092_v21 }
 0x350   :  { %v2073_v61 = vsel %vm2072_vm12, %v4253_v55, %v2069_v17  ;;  %v2105_v38 = vmul.f32 %v4257_v16, %v2056_v48  ;;  %v1505_v48 = vrot.slane %v5002_v29, 6 }
 0x351   :  { %v2078_v19 = vsel %vm2075_vm13, %v2077_v53, %v2073_v61  ;;  %v2097_v36 = vsel %vm2096_vm0, %v4255_v60, %v2093_v30 }
 0x352   :  { %v2104_v28 = vmul.f32 %v2078_v19, %v5068_v58  ;;  %v2102_v42 = vsel %vm2099_vm1, %v2101_v23, %v2097_v36 }
 0x354   :  { %v5108_v6 = vadd.f32 %v2105_v38, %v2104_v28 }
 0x356   :  { %4258 = vtanh.f32 %v5108_v6 }
 0x35c   :  { %v4259_v55 = vpop.eup %4258 }
 0x35d   :  { %v2108_v4 = vmul.f32 %v4259_v55, %v2102_v42 }
 0x35f   :  { %2110 = vst [vmem:[#allocation3 + $0x4] sm:$0x3] %v2108_v4  ;;  %v2113_v47 = vpack.c.bf16 %v2108_v4, %v2108_v4 }
 0x361   :  { %2122 = vmatmul.bf16.vlgmr.msrb.gmra.mxu0 %v2113_v47  ;;  %2135 = vmatmul.bf16.vlgmr.msrb.gmra.mxu1 %v2113_v47 }
 0x362   :  { %2148 = vmatmul.bf16.vlgmr.msrb.gmra.mxu2 %v2113_v47  ;;  %2161 = vmatmul.bf16.vlgmr.msrb.gmra.mxu3 %v2113_v47 }
 0x363   :  { %2392 = vmatpush.bf16.msrb.mxu0 %v4798_v34  ;;  %2405 = vmatpush.bf16.msrb.mxu1 %v4800_v59 }
 0x364   :  { %2418 = vmatpush.bf16.msrb.mxu2 %v4802_v12  ;;  %2431 = vmatpush.bf16.msrb.mxu3 %v4804_v13 }
 0x367   :  { %2393 = vmatpush.bf16.msrb.mxu0 %v4808_v22  ;;  %2406 = vmatpush.bf16.msrb.mxu1 %v4810_v27 }
 0x368   :  { %2419 = vmatpush.bf16.msrb.mxu2 %v4814_v31  ;;  %2432 = vmatpush.bf16.msrb.mxu3 %v4816_v39 }
 0x36b   :  { %2394 = vmatpush.bf16.msrb.mxu0 %v4824_v43  ;;  %2407 = vmatpush.bf16.msrb.mxu1 %v4826_v2 }
 0x36c   :  { %2420 = vmatpush.bf16.msrb.mxu2 %v4830_v5  ;;  %2433 = vmatpush.bf16.msrb.mxu3 %v4832_v7 }
 0x36f   :  { %2395 = vmatpush.bf16.msrb.mxu0 %v4836_v49  ;;  %2408 = vmatpush.bf16.msrb.mxu1 %v4838_v51 }
 0x370   :  { %2421 = vmatpush.bf16.msrb.mxu2 %v4842_v54  ;;  %2434 = vmatpush.bf16.msrb.mxu3 %v4844_v57 }
 0x373   :  { %2396 = vmatpush.bf16.msrb.mxu0 %v4848_v40  ;;  %2409 = vmatpush.bf16.msrb.mxu1 %v4850_v45 }
 0x374   :  { %2422 = vmatpush.bf16.msrb.mxu2 %v4854_v63  ;;  %2435 = vmatpush.bf16.msrb.mxu3 %v4856_v1 }
 0x377   :  { %2397 = vmatpush.bf16.msrb.mxu0 %v4860_v8  ;;  %2410 = vmatpush.bf16.msrb.mxu1 %v4862_v10 }
 0x378   :  { %2423 = vmatpush.bf16.msrb.mxu2 %v4866_v56  ;;  %2436 = vmatpush.bf16.msrb.mxu3 %v4868_v14 }
 0x37b   :  { %2398 = vmatpush.bf16.msrb.mxu0 %v4872_v25  ;;  %2411 = vmatpush.bf16.msrb.mxu1 %v4874_v46 }
 0x37c   :  { %2424 = vmatpush.bf16.msrb.mxu2 %v4878_v33  ;;  %2437 = vmatpush.bf16.msrb.mxu3 %v4880_v35 }
 0x37f   :  { %2399 = vmatpush.bf16.msrb.mxu0 %v5300_v26  ;;  %2412 = vmatpush.bf16.msrb.mxu1 %v5301_v24 }
 0x380   :  { %2425 = vmatpush.bf16.msrb.mxu2 %v5302_v11  ;;  %2438 = vmatpush.bf16.msrb.mxu3 %v5303_v44 }
 0x3de   :  { %v2123_v58 = vpop.f32.mrf.mxu0  ;;  %v2136_v37 = vpop.f32.mrf.mxu1 }
 0x3df   :  { %v2170_v60 = vrot.slane %v2136_v37, 6 }
 0x3e1   :  { %v2173_v17 = vsel %vm396_vm2, %v2123_v58, %v2170_v60 }
 0x3e5   :  { %v2149_v15 = vpop.f32.mrf.mxu2  ;;  %v2162_v0 = vpop.f32.mrf.mxu3 }
 0x3e6   :  { %v2171_v41 = vrot.slane %v2149_v15, 4  ;;  %v2172_v20 = vrot.slane %v2162_v0, 2  ;;  %v2125_v3 = vpop.f32.mrf.mxu0  ;;  %v2138_v52 = vpop.f32.mrf.mxu1 }
 0x3e8   :  { %v2174_v53 = vsel %vm1487_vm3, %v2171_v41, %v2172_v20 }
 0x3e9   :  { %v2175_v61 = vsel %vm1489_vm6, %v2173_v17, %v2174_v53 }
 0x3ea   :  { %v2177_v16 = vadd.f32 %v2175_v61, %v1505_v48 }
 0x3ec   :  { %v3875_v19 = vmul.f32 -1.442695, %v2177_v16  ;;  %v2198_v21 = vrot.slane %v2177_v16, 2  ;;  %v2222_v28 = vrot.slane %v2177_v16, 6  ;;  %v2219_v60 = vrot.slane %v2177_v16, 4 }
 0x3ed   :  { %v2151_v38 = vpop.f32.mrf.mxu2  ;;  %v2164_v30 = vpop.f32.mrf.mxu3 }
 0x3ee   :  { %4260 = vpow2.f32 %v3875_v19  ;;  %v3876_v62 = vmul.f32 -1.442695, %v2198_v21  ;;  %v3877_v18 = vmul.f32 -1.442695, %v2222_v28 }
 0x3f0   :  { %4262 = vpow2.f32 %v3876_v62 }
 0x3f1   :  { %4264 = vpow2.f32 %v3877_v18 }
 0x3f4   :  { %v4261_v36 = vpop.eup %4260 }
 0x3f5   :  { %v2181_v23 = vadd.f32 1.0, %v4261_v36 }
 0x3f6   :  { %v4263_v55 = vpop.eup %4262 }
 0x3f7   :  { %v4265_v42 = vpop.eup %4264  ;;  %4266 = vrcp.f32 %v2181_v23  ;;  %v2203_v29 = vadd.f32 1.0, %v4263_v55  ;;  %v2193_v20 = vand.u32 2147483648, %v2181_v23  ;;  %v2191_v48 = vand.u32 2147483647, %v2181_v23 }
 0x3f8   :  { %v2227_v4 = vadd.f32 1.0, %v4265_v42  ;;  %vm2187_vm5 = vweird.f32 %v2181_v23 }
 0x3f9   :  { %4268 = vrcp.f32 %v2203_v29  ;;  %v2215_v53 = vand.u32 2147483648, %v2203_v29  ;;  %v2213_v21 = vand.u32 2147483647, %v2203_v29  ;;  %v2194_v28 = vor.u32 1.1754944e-38, %v2193_v20 }
 0x3fa   :  { %4270 = vrcp.f32 %v2227_v4  ;;  %vm2192_vm9 = vcmp.eq.f32.partialorder %v2191_v48, 8.507059e+37  ;;  %vm2209_vm10 = vweird.f32 %v2203_v29  ;;  %v2239_v20 = vand.u32 2147483648, %v2227_v4 }
 0x3fb   :  { %4272 = vtanh.f32 %v2219_v60  ;;  %v2216_v18 = vor.u32 1.1754944e-38, %v2215_v53  ;;  %vm2214_vm12 = vcmp.eq.f32.partialorder %v2213_v21, 8.507059e+37  ;;  %vm2233_vm14 = vweird.f32 %v2227_v4 }
 0x3fd   :  { %v4267_v47 = vpop.eup %4266 }
 0x3fe   :  { %v2183_v58 = vmul.f32 %v4267_v47, %v2181_v23  ;;  %vm2188_vm4 = vweird.f32 %v4267_v47 }
 0x3ff   :  { %v4269_v37 = vpop.eup %4268  ;;  %vm2189_vm8 = vmor %vm2187_vm5, %vm2188_vm4 }
 0x400   :  { %v4271_v15 = vpop.eup %4270  ;;  %v2184_v0 = vsub.f32 1.0, %v2183_v58  ;;  %v2205_v41 = vmul.f32 %v4269_v37, %v2203_v29  ;;  %vm2210_vm7 = vweird.f32 %v4269_v37  ;;  %v2237_v29 = vand.u32 2147483647, %v2227_v4 }
 0x401   :  { %v2229_v3 = vmul.f32 %v4271_v15, %v2227_v4  ;;  %vm2211_vm11 = vmor %vm2209_vm10, %vm2210_vm7  ;;  %v4273_v55 = vpop.eup %4272  ;;  %vm2234_vm13 = vweird.f32 %v4271_v15 }
 0x402   :  { %v2206_v52 = vsub.f32 1.0, %v2205_v41  ;;  %v2185_v17 = vmul.f32 %v4267_v47, %v2184_v0  ;;  %vm2235_vm15 = vmor %vm2233_vm14, %vm2234_vm13  ;;  %vm2238_vm0 = vcmp.eq.f32.partialorder %v2237_v29, 8.507059e+37 }
 0x403   :  { %v2230_v38 = vsub.f32 1.0, %v2229_v3  ;;  %v2240_v3 = vor.u32 1.1754944e-38, %v2239_v20 }
 0x404   :  { %v2186_v61 = vadd.f32 %v4267_v47, %v2185_v17  ;;  %v2207_v19 = vmul.f32 %v4269_v37, %v2206_v52 }
 0x405   :  { %v2231_v23 = vmul.f32 %v4271_v15, %v2230_v38 }
 0x406   :  { %v2190_v16 = vsel %vm2189_vm8, %v4267_v47, %v2186_v61  ;;  %v2208_v30 = vadd.f32 %v4269_v37, %v2207_v19 }
 0x407   :  { %v2195_v62 = vsel %vm2192_vm9, %v2194_v28, %v2190_v16  ;;  %v2232_v41 = vadd.f32 %v4271_v15, %v2231_v23 }
 0x408   :  { %v2212_v36 = vsel %vm2211_vm11, %v4269_v37, %v2208_v30  ;;  %v2244_v60 = vmul.f32 %v4273_v55, %v2195_v62 }
 0x409   :  { %v2217_v42 = vsel %vm2214_vm12, %v2216_v18, %v2212_v36  ;;  %v2236_v47 = vsel %vm2235_vm15, %v4271_v15, %v2232_v41 }
 0x40a   :  { %v2243_v58 = vmul.f32 %v2217_v42, %v5108_v6  ;;  %v2241_v52 = vsel %vm2238_vm0, %v2240_v3, %v2236_v47 }
 0x40c   :  { %v5148_v0 = vadd.f32 %v2244_v60, %v2243_v58 }
 0x40e   :  { %4274 = vtanh.f32 %v5148_v0 }
 0x414   :  { %v4275_v37 = vpop.eup %4274 }
 0x415   :  { %v2247_v17 = vmul.f32 %v4275_v37, %v2241_v52 }
 0x417   :  { %2249 = vst [vmem:[#allocation3 + $0x6] sm:$0x3] %v2247_v17  ;;  %v2252_v48 = vpack.c.bf16 %v2247_v17, %v2247_v17 }
 0x419   :  { %2261 = vmatmul.bf16.vlgmr.msra.gmra.mxu0 %v2252_v48  ;;  %2274 = vmatmul.bf16.vlgmr.msra.gmra.mxu1 %v2252_v48 }
 0x41a   :  { %2287 = vmatmul.bf16.vlgmr.msra.gmra.mxu2 %v2252_v48  ;;  %2300 = vmatmul.bf16.vlgmr.msra.gmra.mxu3 %v2252_v48 }
 0x41b   :  { %2531 = vmatpush.bf16.msra.mxu0 %v4798_v34  ;;  %2544 = vmatpush.bf16.msra.mxu1 %v4800_v59 }
 0x41c   :  { %2557 = vmatpush.bf16.msra.mxu2 %v4802_v12  ;;  %2570 = vmatpush.bf16.msra.mxu3 %v4804_v13 }
 0x41f   :  { %2532 = vmatpush.bf16.msra.mxu0 %v4808_v22  ;;  %2545 = vmatpush.bf16.msra.mxu1 %v4810_v27 }
 0x420   :  { %2558 = vmatpush.bf16.msra.mxu2 %v4814_v31  ;;  %2571 = vmatpush.bf16.msra.mxu3 %v4816_v39 }
 0x423   :  { %2533 = vmatpush.bf16.msra.mxu0 %v4824_v43  ;;  %2546 = vmatpush.bf16.msra.mxu1 %v4826_v2 }
 0x424   :  { %2559 = vmatpush.bf16.msra.mxu2 %v4830_v5  ;;  %2572 = vmatpush.bf16.msra.mxu3 %v4832_v7 }
 0x427   :  { %2534 = vmatpush.bf16.msra.mxu0 %v4836_v49  ;;  %2547 = vmatpush.bf16.msra.mxu1 %v4838_v51 }
 0x428   :  { %2560 = vmatpush.bf16.msra.mxu2 %v4842_v54  ;;  %2573 = vmatpush.bf16.msra.mxu3 %v4844_v57 }
 0x42b   :  { %2535 = vmatpush.bf16.msra.mxu0 %v4848_v40  ;;  %2548 = vmatpush.bf16.msra.mxu1 %v4850_v45 }
 0x42c   :  { %2561 = vmatpush.bf16.msra.mxu2 %v4854_v63  ;;  %2574 = vmatpush.bf16.msra.mxu3 %v4856_v1 }
 0x42f   :  { %2536 = vmatpush.bf16.msra.mxu0 %v4860_v8  ;;  %2549 = vmatpush.bf16.msra.mxu1 %v4862_v10 }
 0x430   :  { %2562 = vmatpush.bf16.msra.mxu2 %v4866_v56  ;;  %2575 = vmatpush.bf16.msra.mxu3 %v4868_v14 }
 0x433   :  { %2537 = vmatpush.bf16.msra.mxu0 %v4872_v25  ;;  %2550 = vmatpush.bf16.msra.mxu1 %v4874_v46 }
 0x434   :  { %2563 = vmatpush.bf16.msra.mxu2 %v4878_v33  ;;  %2576 = vmatpush.bf16.msra.mxu3 %v4880_v35 }
 0x437   :  { %2538 = vmatpush.bf16.msra.mxu0 %v5300_v26  ;;  %2551 = vmatpush.bf16.msra.mxu1 %v5301_v24 }
 0x438   :  { %2564 = vmatpush.bf16.msra.mxu2 %v5302_v11  ;;  %2577 = vmatpush.bf16.msra.mxu3 %v5303_v44 }
 0x496   :  { %v2262_v6 = vpop.f32.mrf.mxu0  ;;  %v2275_v4 = vpop.f32.mrf.mxu1 }
 0x497   :  { %v2309_v15 = vrot.slane %v2275_v4, 6 }
 0x499   :  { %v2312_v16 = vsel %vm396_vm2, %v2262_v6, %v2309_v15 }
 0x49d   :  { %v2288_v53 = vpop.f32.mrf.mxu2  ;;  %v2301_v61 = vpop.f32.mrf.mxu3 }
 0x49e   :  { %v2310_v19 = vrot.slane %v2288_v53, 4  ;;  %v2311_v21 = vrot.slane %v2301_v61, 2  ;;  %v2264_v28 = vpop.f32.mrf.mxu0  ;;  %v2277_v38 = vpop.f32.mrf.mxu1 }
 0x4a0   :  { %v2313_v30 = vsel %vm1487_vm3, %v2310_v19, %v2311_v21 }
 0x4a1   :  { %v2314_v62 = vsel %vm1489_vm6, %v2312_v16, %v2313_v30 }
 0x4a2   :  { %v2316_v18 = vadd.f32 %v2314_v62, %v5009_v50 }
 0x4a4   :  { %v3878_v36 = vmul.f32 -1.442695, %v2316_v18  ;;  %v2337_v55 = vrot.slane %v2316_v18, 2  ;;  %v2361_v42 = vrot.slane %v2316_v18, 6  ;;  %v2358_v6 = vrot.slane %v2316_v18, 4 }
 0x4a5   :  { %v2290_v23 = vpop.f32.mrf.mxu2  ;;  %v2303_v58 = vpop.f32.mrf.mxu3 }
 0x4a6   :  { %4276 = vpow2.f32 %v3878_v36  ;;  %v3879_v60 = vmul.f32 -1.442695, %v2337_v55  ;;  %v3880_v41 = vmul.f32 -1.442695, %v2361_v42 }
 0x4a8   :  { %4278 = vpow2.f32 %v3879_v60 }
 0x4a9   :  { %4280 = vpow2.f32 %v3880_v41 }
 0x4ac   :  { %v4277_v20 = vpop.eup %4276 }
 0x4ad   :  { %v2320_v29 = vadd.f32 1.0, %v4277_v20 }
 0x4ae   :  { %v4279_v47 = vpop.eup %4278 }
 0x4af   :  { %v4281_v3 = vpop.eup %4280  ;;  %4282 = vrcp.f32 %v2320_v29  ;;  %v2342_v37 = vadd.f32 1.0, %v4279_v47  ;;  %v2332_v61 = vand.u32 2147483648, %v2320_v29  ;;  %v2330_v38 = vand.u32 2147483647, %v2320_v29 }
 0x4b0   :  { %v2366_v52 = vadd.f32 1.0, %v4281_v3  ;;  %vm2326_vm4 = vweird.f32 %v2320_v29 }
 0x4b1   :  { %4284 = vrcp.f32 %v2342_v37  ;;  %v2354_v16 = vand.u32 2147483648, %v2342_v37  ;;  %v2352_v36 = vand.u32 2147483647, %v2342_v37  ;;  %v2333_v55 = vor.u32 1.1754944e-38, %v2332_v61 }
 0x4b2   :  { %4286 = vrcp.f32 %v2366_v52  ;;  %vm2331_vm8 = vcmp.eq.f32.partialorder %v2330_v38, 8.507059e+37  ;;  %vm2348_vm9 = vweird.f32 %v2342_v37  ;;  %vm2372_vm13 = vweird.f32 %v2366_v52 }
 0x4b3   :  { %4288 = vtanh.f32 %v2358_v6  ;;  %v2355_v60 = vor.u32 1.1754944e-38, %v2354_v16  ;;  %vm2353_vm11 = vcmp.eq.f32.partialorder %v2352_v36, 8.507059e+37 }
 0x4b5   :  { %v4283_v50 = vpop.eup %4282 }
 0x4b6   :  { %v2322_v17 = vmul.f32 %v4283_v50, %v2320_v29  ;;  %vm2327_vm1 = vweird.f32 %v4283_v50 }
 0x4b7   :  { %v4285_v48 = vpop.eup %4284  ;;  %vm2328_vm7 = vmor %vm2326_vm4, %vm2327_vm1 }
 0x4b8   :  { %v4287_v4 = vpop.eup %4286  ;;  %v2323_v15 = vsub.f32 1.0, %v2322_v17  ;;  %v2344_v53 = vmul.f32 %v4285_v48, %v2342_v37  ;;  %vm2349_vm5 = vweird.f32 %v4285_v48  ;;  %v2376_v37 = vand.u32 2147483647, %v2366_v52 }
 0x4b9   :  { %v2368_v19 = vmul.f32 %v4287_v4, %v2366_v52  ;;  %vm2350_vm10 = vmor %vm2348_vm9, %vm2349_vm5  ;;  %v4289_v20 = vpop.eup %4288  ;;  %vm2373_vm12 = vweird.f32 %v4287_v4 }
 0x4ba   :  { %v2345_v21 = vsub.f32 1.0, %v2344_v53  ;;  %v2324_v28 = vmul.f32 %v4283_v50, %v2323_v15  ;;  %v2378_v53 = vand.u32 2147483648, %v2366_v52  ;;  %vm2374_vm14 = vmor %vm2372_vm13, %vm2373_vm12  ;;  %vm2377_vm15 = vcmp.eq.f32.partialorder %v2376_v37, 8.507059e+37 }
 0x4bb   :  { %v2369_v42 = vsub.f32 1.0, %v2368_v19 }
 0x4bc   :  { %v2325_v30 = vadd.f32 %v4283_v50, %v2324_v28  ;;  %v2346_v62 = vmul.f32 %v4285_v48, %v2345_v21  ;;  %v2379_v61 = vor.u32 1.1754944e-38, %v2378_v53 }
 0x4bd   :  { %v2370_v29 = vmul.f32 %v4287_v4, %v2369_v42 }
 0x4be   :  { %v2329_v18 = vsel %vm2328_vm7, %v4283_v50, %v2325_v30  ;;  %v2347_v23 = vadd.f32 %v4285_v48, %v2346_v62 }
 0x4bf   :  { %v2334_v58 = vsel %vm2331_vm8, %v2333_v55, %v2329_v18  ;;  %v2371_v15 = vadd.f32 %v4287_v4, %v2370_v29 }
 0x4c0   :  { %v2351_v41 = vsel %vm2350_vm10, %v4285_v48, %v2347_v23  ;;  %v2383_v17 = vmul.f32 %v4289_v20, %v2334_v58 }
 0x4c1   :  { %v2356_v47 = vsel %vm2353_vm11, %v2355_v60, %v2351_v41  ;;  %v2375_v50 = vsel %vm2374_vm14, %v4287_v4, %v2371_v15 }
 0x4c2   :  { %v2382_v3 = vmul.f32 %v2356_v47, %v5148_v0  ;;  %v2380_v19 = vsel %vm2377_vm15, %v2379_v61, %v2375_v50 }
 0x4c4   :  { %v5188_v6 = vadd.f32 %v2383_v17, %v2382_v3 }
 0x4c6   :  { %4290 = vtanh.f32 %v5188_v6 }
 0x4cc   :  { %v4291_v48 = vpop.eup %4290 }
 0x4cd   :  { %v2386_v21 = vmul.f32 %v4291_v48, %v2380_v19 }
 0x4cf   :  { %2388 = vst [vmem:[#allocation3 + $0x8] sm:$0x3] %v2386_v21  ;;  %v2391_v28 = vpack.c.bf16 %v2386_v21, %v2386_v21 }
 0x4d1   :  { %2400 = vmatmul.bf16.vlgmr.msrb.gmra.mxu0 %v2391_v28  ;;  %2413 = vmatmul.bf16.vlgmr.msrb.gmra.mxu1 %v2391_v28 }
 0x4d2   :  { %2426 = vmatmul.bf16.vlgmr.msrb.gmra.mxu2 %v2391_v28  ;;  %2439 = vmatmul.bf16.vlgmr.msrb.gmra.mxu3 %v2391_v28 }
 0x4d3   :  { %2670 = vmatpush.bf16.msrb.mxu0 %v4798_v34  ;;  %2683 = vmatpush.bf16.msrb.mxu1 %v4800_v59 }
 0x4d4   :  { %2696 = vmatpush.bf16.msrb.mxu2 %v4802_v12  ;;  %2709 = vmatpush.bf16.msrb.mxu3 %v4804_v13 }
 0x4d7   :  { %2671 = vmatpush.bf16.msrb.mxu0 %v4808_v22  ;;  %2684 = vmatpush.bf16.msrb.mxu1 %v4810_v27 }
 0x4d8   :  { %2697 = vmatpush.bf16.msrb.mxu2 %v4814_v31  ;;  %2710 = vmatpush.bf16.msrb.mxu3 %v4816_v39 }
 0x4db   :  { %2672 = vmatpush.bf16.msrb.mxu0 %v4824_v43  ;;  %2685 = vmatpush.bf16.msrb.mxu1 %v4826_v2 }
 0x4dc   :  { %2698 = vmatpush.bf16.msrb.mxu2 %v4830_v5  ;;  %2711 = vmatpush.bf16.msrb.mxu3 %v4832_v7  ;;  %v1512_v5 = vrot.slane %v5012_v32, 2 }
 0x4df   :  { %2673 = vmatpush.bf16.msrb.mxu0 %v4836_v49  ;;  %2686 = vmatpush.bf16.msrb.mxu1 %v4838_v51 }
 0x4e0   :  { %2699 = vmatpush.bf16.msrb.mxu2 %v4842_v54  ;;  %2712 = vmatpush.bf16.msrb.mxu3 %v4844_v57 }
 0x4e3   :  { %2674 = vmatpush.bf16.msrb.mxu0 %v4848_v40  ;;  %2687 = vmatpush.bf16.msrb.mxu1 %v4850_v45 }
 0x4e4   :  { %2700 = vmatpush.bf16.msrb.mxu2 %v4854_v63  ;;  %2713 = vmatpush.bf16.msrb.mxu3 %v4856_v1 }
 0x4e7   :  { %2675 = vmatpush.bf16.msrb.mxu0 %v4860_v8  ;;  %2688 = vmatpush.bf16.msrb.mxu1 %v4862_v10 }
 0x4e8   :  { %2701 = vmatpush.bf16.msrb.mxu2 %v4866_v56  ;;  %2714 = vmatpush.bf16.msrb.mxu3 %v4868_v14 }
 0x4eb   :  { %2676 = vmatpush.bf16.msrb.mxu0 %v4872_v25  ;;  %2689 = vmatpush.bf16.msrb.mxu1 %v4874_v46 }
 0x4ec   :  { %2702 = vmatpush.bf16.msrb.mxu2 %v4878_v33  ;;  %2715 = vmatpush.bf16.msrb.mxu3 %v4880_v35 }
 0x4ef   :  { %2677 = vmatpush.bf16.msrb.mxu0 %v5300_v26  ;;  %2690 = vmatpush.bf16.msrb.mxu1 %v5301_v24 }
 0x4f0   :  { %2703 = vmatpush.bf16.msrb.mxu2 %v5302_v11  ;;  %2716 = vmatpush.bf16.msrb.mxu3 %v5303_v44 }
 0x54e   :  { %v2401_v34 = vpop.f32.mrf.mxu0  ;;  %v2414_v59 = vpop.f32.mrf.mxu1 }
 0x54f   :  { %v2448_v12 = vrot.slane %v2414_v59, 6 }
 0x551   :  { %v2451_v2 = vsel %vm396_vm2, %v2401_v34, %v2448_v12 }
 0x555   :  { %v2427_v13 = vpop.f32.mrf.mxu2  ;;  %v2440_v22 = vpop.f32.mrf.mxu3 }
 0x556   :  { %v2449_v27 = vrot.slane %v2427_v13, 4  ;;  %v2450_v31 = vrot.slane %v2440_v22, 2  ;;  %v2403_v39 = vpop.f32.mrf.mxu0  ;;  %v2416_v43 = vpop.f32.mrf.mxu1 }
 0x558   :  { %v2452_v7 = vsel %vm1487_vm3, %v2449_v27, %v2450_v31 }
 0x559   :  { %v2453_v49 = vsel %vm1489_vm6, %v2451_v2, %v2452_v7 }
 0x55a   :  { %v2455_v51 = vadd.f32 %v2453_v49, %v1512_v5  ;;  %v1516_v49 = vrot.slane %v5015_v9, 4 }
 0x55c   :  { %v3881_v54 = vmul.f32 -1.442695, %v2455_v51  ;;  %v2476_v57 = vrot.slane %v2455_v51, 2  ;;  %v2500_v40 = vrot.slane %v2455_v51, 6  ;;  %v2497_v24 = vrot.slane %v2455_v51, 4 }
 0x55d   :  { %v2429_v45 = vpop.f32.mrf.mxu2  ;;  %v2442_v63 = vpop.f32.mrf.mxu3 }
 0x55e   :  { %4292 = vpow2.f32 %v3881_v54  ;;  %v3882_v1 = vmul.f32 -1.442695, %v2476_v57  ;;  %v3883_v8 = vmul.f32 -1.442695, %v2500_v40 }
 0x560   :  { %4294 = vpow2.f32 %v3882_v1 }
 0x561   :  { %4296 = vpow2.f32 %v3883_v8 }
 0x564   :  { %v4293_v10 = vpop.eup %4292 }
 0x565   :  { %v2459_v56 = vadd.f32 1.0, %v4293_v10 }
 0x566   :  { %v4295_v14 = vpop.eup %4294 }
 0x567   :  { %v4297_v25 = vpop.eup %4296  ;;  %4298 = vrcp.f32 %v2459_v56  ;;  %v2481_v46 = vadd.f32 1.0, %v4295_v14  ;;  %v2471_v52 = vand.u32 2147483648, %v2459_v56  ;;  %v2469_v30 = vand.u32 2147483647, %v2459_v56 }
 0x568   :  { %v2505_v33 = vadd.f32 1.0, %v4297_v25  ;;  %vm2465_vm1 = vweird.f32 %v2459_v56 }
 0x569   :  { %4300 = vrcp.f32 %v2481_v46  ;;  %v2493_v62 = vand.u32 2147483648, %v2481_v46  ;;  %v2491_v42 = vand.u32 2147483647, %v2481_v46  ;;  %v2472_v18 = vor.u32 1.1754944e-38, %v2471_v52 }
 0x56a   :  { %4302 = vrcp.f32 %v2505_v33  ;;  %vm2470_vm7 = vcmp.eq.f32.partialorder %v2469_v30, 8.507059e+37  ;;  %vm2487_vm8 = vweird.f32 %v2481_v46  ;;  %v2517_v61 = vand.u32 2147483648, %v2505_v33 }
 0x56b   :  { %4304 = vtanh.f32 %v2497_v24  ;;  %v2494_v20 = vor.u32 1.1754944e-38, %v2493_v62  ;;  %vm2492_vm10 = vcmp.eq.f32.partialorder %v2491_v42, 8.507059e+37  ;;  %vm2511_vm12 = vweird.f32 %v2505_v33 }
 0x56c   :  { %v2515_v48 = vand.u32 2147483647, %v2505_v33  ;;  %v2518_v21 = vor.u32 1.1754944e-38, %v2517_v61 }
 0x56d   :  { %v4299_v35 = vpop.eup %4298 }
 0x56e   :  { %v2461_v32 = vmul.f32 %v4299_v35, %v2459_v56  ;;  %vm2466_vm0 = vweird.f32 %v4299_v35  ;;  %vm2516_vm14 = vcmp.eq.f32.partialorder %v2515_v48, 8.507059e+37 }
 0x56f   :  { %v4301_v26 = vpop.eup %4300  ;;  %vm2467_vm5 = vmor %vm2465_vm1, %vm2466_vm0 }
 0x570   :  { %v4303_v11 = vpop.eup %4302  ;;  %v2462_v44 = vsub.f32 1.0, %v2461_v32  ;;  %v2483_v0 = vmul.f32 %v4301_v26, %v2481_v46  ;;  %vm2488_vm4 = vweird.f32 %v4301_v26 }
 0x571   :  { %v2507_v4 = vmul.f32 %v4303_v11, %v2505_v33  ;;  %vm2489_vm9 = vmor %vm2487_vm8, %vm2488_vm4  ;;  %v4305_v29 = vpop.eup %4304  ;;  %vm2512_vm11 = vweird.f32 %v4303_v11 }
 0x572   :  { %v2484_v38 = vsub.f32 1.0, %v2483_v0  ;;  %v2463_v16 = vmul.f32 %v4299_v35, %v2462_v44  ;;  %vm2513_vm13 = vmor %vm2511_vm12, %vm2512_vm11 }
 0x573   :  { %v2508_v23 = vsub.f32 1.0, %v2507_v4 }
 0x574   :  { %v2464_v36 = vadd.f32 %v4299_v35, %v2463_v16  ;;  %v2485_v55 = vmul.f32 %v4301_v26, %v2484_v38 }
 0x575   :  { %v2509_v17 = vmul.f32 %v4303_v11, %v2508_v23 }
 0x576   :  { %v2468_v58 = vsel %vm2467_vm5, %v4299_v35, %v2464_v36  ;;  %v2486_v60 = vadd.f32 %v4301_v26, %v2485_v55 }
 0x577   :  { %v2473_v41 = vsel %vm2470_vm7, %v2472_v18, %v2468_v58  ;;  %v2510_v50 = vadd.f32 %v4303_v11, %v2509_v17 }
 0x578   :  { %v2490_v47 = vsel %vm2489_vm9, %v4301_v26, %v2486_v60  ;;  %v2522_v53 = vmul.f32 %v4305_v29, %v2473_v41 }
 0x579   :  { %v2495_v3 = vsel %vm2492_vm10, %v2494_v20, %v2490_v47  ;;  %v2514_v19 = vsel %vm2513_vm13, %v4303_v11, %v2510_v50 }
 0x57a   :  { %v2521_v15 = vmul.f32 %v2495_v3, %v5188_v6  ;;  %v2519_v34 = vsel %vm2516_vm14, %v2518_v21, %v2514_v19 }
 0x57c   :  { %v5228_v37 = vadd.f32 %v2522_v53, %v2521_v15 }
 0x57e   :  { %4306 = vtanh.f32 %v5228_v37 }
 0x584   :  { %v4307_v28 = vpop.eup %4306 }
 0x585   :  { %v2525_v59 = vmul.f32 %v4307_v28, %v2519_v34 }
 0x587   :  { %2527 = vst [vmem:[#allocation3 + $0xa] sm:$0x3] %v2525_v59  ;;  %v2530_v12 = vpack.c.bf16 %v2525_v59, %v2525_v59 }
 0x589   :  { %2539 = vmatmul.bf16.vlgmr.msra.gmra.mxu0 %v2530_v12  ;;  %2552 = vmatmul.bf16.vlgmr.msra.gmra.mxu1 %v2530_v12 }
 0x58a   :  { %2565 = vmatmul.bf16.vlgmr.msra.gmra.mxu2 %v2530_v12  ;;  %2578 = vmatmul.bf16.vlgmr.msra.gmra.mxu3 %v2530_v12 }
 0x606   :  { %v2540_v6 = vpop.f32.mrf.mxu0  ;;  %v2553_v13 = vpop.f32.mrf.mxu1 }
 0x607   :  { %v2587_v22 = vrot.slane %v2553_v13, 6 }
 0x609   :  { %v2590_v7 = vsel %vm396_vm2, %v2540_v6, %v2587_v22 }
 0x60d   :  { %v2566_v27 = vpop.f32.mrf.mxu2  ;;  %v2579_v31 = vpop.f32.mrf.mxu3 }
 0x60e   :  { %v2588_v39 = vrot.slane %v2566_v27, 4  ;;  %v2589_v43 = vrot.slane %v2579_v31, 2  ;;  %v2542_v2 = vpop.f32.mrf.mxu0  ;;  %v2555_v5 = vpop.f32.mrf.mxu1 }
 0x610   :  { %v2591_v51 = vsel %vm1487_vm3, %v2588_v39, %v2589_v43 }
 0x611   :  { %v2592_v54 = vsel %vm1489_vm6, %v2590_v7, %v2591_v51  ;;  %v5304_v51 = vld [vmem:[#allocation25_spill] sm:$0xff] }
 0x612   :  { %v2594_v57 = vadd.f32 %v2592_v54, %v1516_v49  ;;  %v1520_v54 = vrot.slane %v5304_v51, 6 }
 0x614   :  { %v3884_v40 = vmul.f32 -1.442695, %v2594_v57  ;;  %v2615_v45 = vrot.slane %v2594_v57, 2  ;;  %v2639_v63 = vrot.slane %v2594_v57, 6  ;;  %v2636_v11 = vrot.slane %v2594_v57, 4 }
 0x615   :  { %v2568_v1 = vpop.f32.mrf.mxu2  ;;  %v2581_v8 = vpop.f32.mrf.mxu3 }
 0x616   :  { %4308 = vpow2.f32 %v3884_v40  ;;  %v3885_v10 = vmul.f32 -1.442695, %v2615_v45  ;;  %v3886_v56 = vmul.f32 -1.442695, %v2639_v63 }
 0x618   :  { %4310 = vpow2.f32 %v3885_v10 }
 0x619   :  { %4312 = vpow2.f32 %v3886_v56 }
 0x61c   :  { %v4309_v14 = vpop.eup %4308 }
 0x61d   :  { %v2598_v25 = vadd.f32 1.0, %v4309_v14 }
 0x61e   :  { %v4311_v46 = vpop.eup %4310 }
 0x61f   :  { %v4313_v33 = vpop.eup %4312  ;;  %4314 = vrcp.f32 %v2598_v25  ;;  %v2620_v9 = vadd.f32 1.0, %v4311_v46  ;;  %v2610_v4 = vand.u32 2147483648, %v2598_v25  ;;  %v2608_v62 = vand.u32 2147483647, %v2598_v25 }
 0x620   :  { %v2644_v35 = vadd.f32 1.0, %v4313_v33  ;;  %vm2604_vm0 = vweird.f32 %v2598_v25 }
 0x621   :  { %4316 = vrcp.f32 %v2620_v9  ;;  %v2632_v36 = vand.u32 2147483648, %v2620_v9  ;;  %v2630_v18 = vand.u32 2147483647, %v2620_v9  ;;  %v2611_v23 = vor.u32 1.1754944e-38, %v2610_v4  ;;  %v4152_v4 = vld [vmem:[#allocation10 + $0x20] sm:$0xff] }
 0x622   :  { %4318 = vrcp.f32 %v2644_v35  ;;  %vm2609_vm5 = vcmp.eq.f32.partialorder %v2608_v62, 8.507059e+37  ;;  %vm2626_vm7 = vweird.f32 %v2620_v9  ;;  %v2656_v19 = vand.u32 2147483648, %v2644_v35 }
 0x623   :  { %4320 = vtanh.f32 %v2636_v11  ;;  %v2633_v47 = vor.u32 1.1754944e-38, %v2632_v36  ;;  %vm2631_vm9 = vcmp.eq.f32.partialorder %v2630_v18, 8.507059e+37  ;;  %vm2650_vm11 = vweird.f32 %v2644_v35  ;;  %v4154_v11 = vld [vmem:[#allocation10 + $0x30] sm:$0xff] }
 0x624   :  { %v2654_v21 = vand.u32 2147483647, %v2644_v35  ;;  %v2657_v34 = vor.u32 1.1754944e-38, %v2656_v19 }
 0x625   :  { %v4315_v32 = vpop.eup %4314 }
 0x626   :  { %v2600_v26 = vmul.f32 %v4315_v32, %v2598_v25  ;;  %vm2605_vm15 = vweird.f32 %v4315_v32  ;;  %vm2655_vm13 = vcmp.eq.f32.partialorder %v2654_v21, 8.507059e+37 }
 0x627   :  { %v4317_v24 = vpop.eup %4316  ;;  %vm2606_vm4 = vmor %vm2604_vm0, %vm2605_vm15 }
 0x628   :  { %v4319_v44 = vpop.eup %4318  ;;  %v2601_v0 = vsub.f32 1.0, %v2600_v26  ;;  %v2622_v52 = vmul.f32 %v4317_v24, %v2620_v9  ;;  %vm2627_vm1 = vweird.f32 %v4317_v24  ;;  %v4155_v9 = vld [vmem:[#allocation10 + $0x38] sm:$0xff] }
 0x629   :  { %v2646_v38 = vmul.f32 %v4319_v44, %v2644_v35  ;;  %vm2628_vm8 = vmor %vm2626_vm7, %vm2627_vm1  ;;  %v4321_v3 = vpop.eup %4320  ;;  %vm2651_vm10 = vweird.f32 %v4319_v44  ;;  %2929 = vmatpush.bf16.msra.mxu0 %v4155_v9 }
 0x62a   :  { %v2623_v16 = vsub.f32 1.0, %v2622_v52  ;;  %v2602_v30 = vmul.f32 %v4315_v32, %v2601_v0  ;;  %vm2652_vm12 = vmor %vm2650_vm11, %vm2651_vm10  ;;  %vm2815_vm11 = vcmask 1047556  }
 0x62b   :  { %v2647_v58 = vsub.f32 1.0, %v2646_v38 }
 0x62c   :  { %v2603_v55 = vadd.f32 %v4315_v32, %v2602_v30  ;;  %v2624_v42 = vmul.f32 %v4317_v24, %v2623_v16 }
 0x62d   :  { %v2648_v15 = vmul.f32 %v4319_v44, %v2647_v58  ;;  %2930 = vmatpush.bf16.msra.mxu0 %v4154_v11 }
 0x62e   :  { %v2607_v60 = vsel %vm2606_vm4, %v4315_v32, %v2603_v55  ;;  %v2625_v41 = vadd.f32 %v4317_v24, %v2624_v42 }
 0x62f   :  { %v2612_v20 = vsel %vm2609_vm5, %v2611_v23, %v2607_v60  ;;  %v2649_v48 = vadd.f32 %v4319_v44, %v2648_v15  ;;  %v4151_v60 = vld [vmem:[#allocation10 + $0x18] sm:$0xff] }
 0x630   :  { %v2629_v29 = vsel %vm2628_vm8, %v4317_v24, %v2625_v41  ;;  %v2661_v50 = vmul.f32 %v4321_v3, %v2612_v20 }
 0x631   :  { %v2634_v17 = vsel %vm2631_vm9, %v2633_v47, %v2629_v29  ;;  %v2653_v28 = vsel %vm2652_vm12, %v4319_v44, %v2649_v48  ;;  %v4153_v44 = vld [vmem:[#allocation10 + $0x28] sm:$0xff]  ;;  %vm2971_vm12 = vcmask 64512  }
 0x632   :  { %v2660_v53 = vmul.f32 %v2634_v17, %v5228_v37  ;;  %v2658_v12 = vsel %vm2655_vm13, %v2657_v34, %v2653_v28  ;;  %2931 = vmatpush.bf16.msra.mxu0 %v4153_v44  ;;  %v2810_v44 = vld [vmem:[#allocation3 + $0x8] sm:$0x3] }
 0x634   :  { %v5236_v61 = vadd.f32 %v2661_v50, %v2660_v53  ;;  %v4150_v50 = vld [vmem:[#allocation10 + $0x10] sm:$0xff] }
 0x636   :  { %4322 = vtanh.f32 %v5236_v61  ;;  %2932 = vmatpush.bf16.msra.mxu0 %v4152_v4 }
 0x63a   :  { %2933 = vmatpush.bf16.msra.mxu0 %v4151_v60 }
 0x63c   :  { %v4323_v59 = vpop.eup %4322 }
 0x63d   :  { %v2664_v6 = vmul.f32 %v4323_v59, %v2658_v12 }
 0x63e   :  { %2934 = vmatpush.bf16.msra.mxu0 %v4150_v50 }
 0x63f   :  { %2666 = vst [vmem:[#allocation3 + $0xc] sm:$0x3] %v2664_v6  ;;  %v2669_v13 = vpack.c.bf16 %v2664_v6, %v2664_v6 }
 0x641   :  { %2678 = vmatmul.bf16.vlgmr.msrb.gmra.mxu0 %v2669_v13  ;;  %2691 = vmatmul.bf16.vlgmr.msrb.gmra.mxu1 %v2669_v13 }
 0x642   :  { %2704 = vmatmul.bf16.vlgmr.msrb.gmra.mxu2 %v2669_v13  ;;  %2717 = vmatmul.bf16.vlgmr.msrb.gmra.mxu3 %v2669_v13  ;;  %v4149_v13 = vld [vmem:[#allocation10 + $0x8] sm:$0xff] }
 0x643   :  { %2935 = vmatpush.bf16.msra.mxu0 %v4149_v13 }
 0x6be   :  { %v2679_v37 = vpop.f32.mrf.mxu0  ;;  %v2692_v22 = vpop.f32.mrf.mxu1 }
 0x6bf   :  { %v2726_v27 = vrot.slane %v2692_v22, 6 }
 0x6c1   :  { %v2729_v49 = vsel %vm396_vm2, %v2679_v37, %v2726_v27 }
 0x6c5   :  { %v2705_v31 = vpop.f32.mrf.mxu2  ;;  %v2718_v39 = vpop.f32.mrf.mxu3 }
 0x6c6   :  { %v2727_v43 = vrot.slane %v2705_v31, 4  ;;  %v2728_v2 = vrot.slane %v2718_v39, 2  ;;  %v2681_v5 = vpop.f32.mrf.mxu0  ;;  %v2694_v7 = vpop.f32.mrf.mxu1  ;;  %v2809_v31 = vld [vmem:[#allocation3 + $0x6] sm:$0x3] }
 0x6c7   :  { %v2821_v5 = vrot.slane %v2809_v31, 4  ;;  %v4537_v7 = vmov 1983009808  }
 0x6c8   :  { %v2730_v57 = vsel %vm1487_vm3, %v2727_v43, %v2728_v2  ;;  %v4148_v43 = vld [vmem:[#allocation10] sm:$0xff] }
 0x6c9   :  { %v2731_v40 = vsel %vm1489_vm6, %v2729_v49, %v2730_v57  ;;  %v2818_v49 = vunpack.c.l.s4 %v4537_v7  ;;  %2936 = vmatpush.bf16.msra.mxu0 %v4148_v43  ;;  %v2807_v57 = vld [vmem:[#allocation3 + $0x2] sm:$0x3] }
 0x6ca   :  { %v2733_v45 = vadd.f32 %v2731_v40, %v1520_v54  ;;  %v2808_v40 = vld [vmem:[#allocation3 + $0x4] sm:$0x3] }
 0x6cc   :  { %v3887_v63 = vmul.f32 -1.442695, %v2733_v45  ;;  %v2754_v1 = vrot.slane %v2733_v45, 2  ;;  %v2778_v8 = vrot.slane %v2733_v45, 6  ;;  %v2775_v30 = vrot.slane %v2733_v45, 4 }
 0x6cd   :  { %v2707_v10 = vpop.f32.mrf.mxu2  ;;  %v2720_v56 = vpop.f32.mrf.mxu3 }
 0x6ce   :  { %4324 = vpow2.f32 %v3887_v63  ;;  %v3888_v14 = vmul.f32 -1.442695, %v2754_v1  ;;  %v3889_v25 = vmul.f32 -1.442695, %v2778_v8  ;;  %v2822_v63 = vsel %vm2815_vm11, %v2821_v5, %v2807_v57  ;;  %v2806_v56 = vld [vmem:[#allocation3] sm:$0x3] }
 0x6cf   :  { %v2819_v1 = vunpack.c.0.s8 %v2818_v49  ;;  %v2814_v8 = vrot.slane %v2808_v40, 4  ;;  %v4161_v40 = vld [vmem:[#allocation12 + $0x28] sm:$0xff] }
 0x6d0   :  { %4326 = vpow2.f32 %v3888_v14  ;;  %v2812_v14 = vld [vmem:[#allocation3 + $0xc] sm:$0x3] }
 0x6d1   :  { %4328 = vpow2.f32 %v3889_v25  ;;  %v2826_v10 = vperm.slane %v2822_v63, %v2819_v1  ;;  %v2816_v25 = vsel %vm2815_vm11, %v2814_v8, %v2806_v56  ;;  %v4159_v8 = vld [vmem:[#allocation12 + $0x18] sm:$0xff] }
 0x6d3   :  { %v2839_v9 = vrot.slane %v2826_v10, 4 }
 0x6d4   :  { %v4325_v46 = vpop.eup %4324 }
 0x6d5   :  { %v2737_v33 = vadd.f32 1.0, %v4325_v46  ;;  %v4538_v46 = vmov 1934713408  }
 0x6d6   :  { %v4327_v35 = vpop.eup %4326 }
 0x6d7   :  { %v4329_v32 = vpop.eup %4328  ;;  %4330 = vrcp.f32 %v2737_v33  ;;  %v2759_v26 = vadd.f32 1.0, %v4327_v35  ;;  %v2749_v42 = vand.u32 2147483648, %v2737_v33  ;;  %v2747_v23 = vand.u32 2147483647, %v2737_v33 }
 0x6d8   :  { %v5243_v24 = vadd.f32 1.0, %v4329_v32  ;;  %vm2743_vm3 = vweird.f32 %v2737_v33  ;;  %v2827_v35 = vrot.slane %v2812_v14, 4 }
 0x6d9   :  { %4332 = vrcp.f32 %v2759_v26  ;;  %v2771_v20 = vand.u32 2147483648, %v2759_v26  ;;  %v2769_v29 = vand.u32 2147483647, %v2759_v26  ;;  %v2750_v17 = vor.u32 1.1754944e-38, %v2749_v42 }
 0x6da   :  { %4334 = vrcp.f32 %v5243_v24  ;;  %vm2748_vm0 = vcmp.eq.f32.partialorder %v2747_v23, 8.507059e+37  ;;  %vm2765_vm1 = vweird.f32 %v2759_v26  ;;  %v2795_v27 = vand.u32 2147483648, %v5243_v24 }
 0x6db   :  { %4336 = vtanh.f32 %v2775_v30  ;;  %v2772_v19 = vor.u32 1.1754944e-38, %v2771_v20  ;;  %vm2770_vm5 = vcmp.eq.f32.partialorder %v2769_v29, 8.507059e+37  ;;  %vm2789_vm8 = vweird.f32 %v5243_v24 }
 0x6dc   :  { %v2793_v39 = vand.u32 2147483647, %v5243_v24  ;;  %v2828_v4 = vsel %vm2815_vm11, %v2827_v35, %v2810_v44  ;;  %v4156_v35 = vld [vmem:[#allocation12] sm:$0xff] }
 0x6dd   :  { %v4331_v0 = vpop.eup %4330 }
 0x6de   :  { %v2739_v52 = vmul.f32 %v4331_v0, %v2737_v33  ;;  %vm2744_vm2 = vweird.f32 %v4331_v0  ;;  %vm2794_vm10 = vcmp.eq.f32.partialorder %v2793_v39, 8.507059e+37  ;;  %v2842_v33 = vunpack.c.l.s4 %v4538_v46 }
 0x6df   :  { %v4333_v38 = vpop.eup %4332  ;;  %vm2745_vm14 = vmor %vm2743_vm3, %vm2744_vm2 }
 0x6e0   :  { %v2740_v16 = vsub.f32 1.0, %v2739_v52  ;;  %v4335_v62 = vpop.eup %4334  ;;  %v2761_v36 = vmul.f32 %v4333_v38, %v2759_v26  ;;  %vm2766_vm15 = vweird.f32 %v4333_v38  ;;  %v2820_v26 = vperm.slane %v2816_v25, %v2819_v1 }
 0x6e1   :  { %v2785_v18 = vmul.f32 %v4335_v62, %v5243_v24  ;;  %vm2767_vm4 = vmor %vm2765_vm1, %vm2766_vm15  ;;  %v4337_v28 = vpop.eup %4336  ;;  %vm2790_vm7 = vweird.f32 %v4335_v62  ;;  %v2843_v11 = vunpack.c.0.s8 %v2842_v33  ;;  %v4158_v33 = vld [vmem:[#allocation12 + $0x10] sm:$0xff] }
 0x6e2   :  { %v2741_v55 = vmul.f32 %v4331_v0, %v2740_v16  ;;  %v2762_v58 = vsub.f32 1.0, %v2761_v36  ;;  %vm2791_vm9 = vmor %vm2789_vm8, %vm2790_vm7  ;;  %v2840_v52 = vsel %vm2815_vm11, %v2839_v9, %v2820_v26  ;;  %v4157_v9 = vld [vmem:[#allocation12 + $0x8] sm:$0xff]  ;;  %v4170_v26 = vld [vmem:[#allocation13 + $0x30] sm:$0xff] }
 0x6e3   :  { %v2786_v15 = vsub.f32 1.0, %v2785_v18  ;;  %v2844_v30 = vperm.slane %v2840_v52, %v2843_v11 }
 0x6e4   :  { %v2742_v41 = vadd.f32 %v4331_v0, %v2741_v55  ;;  %v2763_v47 = vmul.f32 %v4333_v38, %v2762_v58 }
 0x6e5   :  { %v2787_v59 = vmul.f32 %v4335_v62, %v2786_v15  ;;  %v2853_v18 = vrot.slane %v2844_v30, 4 }
 0x6e6   :  { %v2746_v3 = vsel %vm2745_vm14, %v4331_v0, %v2742_v41  ;;  %v2764_v53 = vadd.f32 %v4333_v38, %v2763_v47  ;;  %v2811_v0 = vld [vmem:[#allocation3 + $0xa] sm:$0x3] }
 0x6e7   :  { %v2751_v48 = vsel %vm2748_vm0, %v2750_v17, %v2746_v3  ;;  %v2788_v22 = vadd.f32 %v4335_v62, %v2787_v59 }
 0x6e8   :  { %v2768_v21 = vsel %vm2767_vm4, %v4333_v38, %v2764_v53  ;;  %v2800_v6 = vmul.f32 %v4337_v28, %v2751_v48 }
 0x6e9   :  { %v2773_v34 = vsel %vm2770_vm5, %v2772_v19, %v2768_v21  ;;  %v2792_v2 = vsel %vm2791_vm9, %v4335_v62, %v2788_v22  ;;  %v2832_v62 = vperm.slane %v2828_v4, %v2819_v1 }
 0x6ea   :  { %v2799_v12 = vmul.f32 %v2773_v34, %v5236_v61  ;;  %v2796_v61 = vor.u32 1.1754944e-38, %v2795_v27 }
 0x6ec   :  { %v2801_v37 = vadd.f32 %v2800_v6, %v2799_v12  ;;  %v2797_v54 = vsel %vm2794_vm10, %v2796_v61, %v2792_v2 }
 0x6ee   :  { %4338 = vtanh.f32 %v2801_v37 }
 0x6f4   :  { %v4339_v51 = vpop.eup %4338 }
 0x6f5   :  { %v2803_v45 = vmul.f32 %v4339_v51, %v2797_v54  ;;  %v4163_v51 = vld [vmem:[#allocation12 + $0x38] sm:$0xff]  ;;  %v4162_v54 = vld [vmem:[#allocation12 + $0x30] sm:$0xff] }
 0x6f7   :  { %2805 = vst [vmem:[#allocation3 + $0xe] sm:$0x3] %v2803_v45  ;;  %v4160_v45 = vld [vmem:[#allocation12 + $0x20] sm:$0xff] }
 0x6fe   :  { %v2813_v32 = vld [vmem:[#allocation3 + $0xe] sm:$0x3] }
 0x6ff   :  { %v2833_v24 = vrot.slane %v2813_v32, 4  ;;  %v4171_v32 = vld [vmem:[#allocation13 + $0x38] sm:$0xff] }
 0x701   :  { %v2834_v38 = vsel %vm2815_vm11, %v2833_v24, %v2811_v0  ;;  %v4169_v24 = vld [vmem:[#allocation13 + $0x28] sm:$0xff] }
 0x702   :  { %v2838_v16 = vperm.slane %v2834_v38, %v2819_v1 }
 0x704   :  { %v2845_v36 = vrot.slane %v2838_v16, 4  ;;  %v4167_v16 = vld [vmem:[#allocation13 + $0x18] sm:$0xff] }
 0x706   :  { %v2846_v55 = vsel %vm2815_vm11, %v2845_v36, %v2832_v62  ;;  %v4165_v62 = vld [vmem:[#allocation13 + $0x8] sm:$0xff]  ;;  %v4164_v36 = vld [vmem:[#allocation13] sm:$0xff] }
 0x707   :  { %v2850_v42 = vperm.slane %v2846_v55, %v2843_v11  ;;  %v4168_v11 = vld [vmem:[#allocation13 + $0x20] sm:$0xff] }
 0x709   :  { %v2854_v23 = vsel %vm2815_vm11, %v2850_v42, %v2853_v18  ;;  %v2851_v58 = vrot.slane %v2850_v42, 4  ;;  %v4210_v42 = vld [vmem:[%s5283_s7] ss:$0 sm:$0xff]  ;;  %s3210_s7 = sshll.u32 %s5286_s10, 4  ;;  %s3211_s7 = int_to_ptr.hbm [resolvable:$true] %s3210_s7 }
 0x70a   :  { %v2856_v60 = vmax.f32 %v2854_v23, 0.0 }
 0x70b   :  { %v2852_v41 = vsel %vm2815_vm11, %v2851_v58, %v2844_v30  ;;  %v4166_v30 = vld [vmem:[#allocation13 + $0x10] sm:$0xff] }
 0x70c   :  { %v2858_v20 = vpack.c.bf16 %v2856_v60, %v2856_v60  ;;  %v2855_v47 = vmax.f32 %v2852_v41, 0.0 }
 0x70e   :  { %2965 = vmatpush.bf16.xpose.msra.mxu2 %v2858_v20  ;;  %v2857_v29 = vpack.c.bf16 %v2855_v47, %v2855_v47  ;;  %v2878_v3 = vunpack.c.l.b16 %v2858_v20  ;;  %v3019_v53 = vsel %vm1489_vm6, %v2858_v20, 0  ;;  %v4211_v47 = vld [vmem:[%s5285_s9] ss:$0 sm:$0xff] }
 0x710   :  { %v2877_v17 = vunpack.c.l.b16 %v2857_v29  ;;  %2952 = vmatpush.bf16.xpose.msra.mxu1 %v2857_v29  ;;  %v3000_v15 = vsel %vm1489_vm6, %v2857_v29, 0 }
 0x711   :  { %3009 = vmatpush.bf16.msra.mxu3 %v3000_v15 }
 0x712   :  { %v2879_v50 = vpack.c.b16 %v2878_v3, %v2877_v17 }
 0x714   :  { %2937 = vmatmul.bf16.vlgmr.msra.gmra.mxu0 %v2879_v50 }
 0x715   :  { %3188 = vmatpush.bf16.msrb.mxu3 %v4171_v32 }
 0x716   :  { %3103 = vmatpush.bf16.msrb.mxu2 %v4163_v51 }
 0x718   :  { %3028 = vmatpush.bf16.msrb.mxu1 %v3019_v53 }
 0x719   :  { %3189 = vmatpush.bf16.msrb.mxu3 %v4170_v26 }
 0x71a   :  { %3104 = vmatpush.bf16.msrb.mxu2 %v4162_v54 }
 0x71d   :  { %3190 = vmatpush.bf16.msrb.mxu3 %v4169_v24 }
 0x71e   :  { %3105 = vmatpush.bf16.msrb.mxu2 %v4161_v40 }
 0x721   :  { %3191 = vmatpush.bf16.msrb.mxu3 %v4168_v11 }
 0x722   :  { %3106 = vmatpush.bf16.msrb.mxu2 %v4160_v45 }
 0x725   :  { %3192 = vmatpush.bf16.msrb.mxu3 %v4167_v16 }
 0x726   :  { %3107 = vmatpush.bf16.msrb.mxu2 %v4159_v8 }
 0x729   :  { %3193 = vmatpush.bf16.msrb.mxu3 %v4166_v30 }
 0x72a   :  { %3108 = vmatpush.bf16.msrb.mxu2 %v4158_v33 }
 0x72d   :  { %3194 = vmatpush.bf16.msrb.mxu3 %v4165_v62 }
 0x72e   :  { %3109 = vmatpush.bf16.msrb.mxu2 %v4157_v9 }
 0x731   :  { %3195 = vmatpush.bf16.msrb.mxu3 %v4164_v36 }
 0x732   :  { %3110 = vmatpush.bf16.msrb.mxu2 %v4156_v35 }
 0x791   :  { %v2938_v48 = vpop.f32.mrf.mxu0 }
 0x792   :  { %v2943_v19 = vpack.c.bf16 %v2938_v48, %v2938_v48 }
 0x794   :  { %2953 = vmatmul.bf16.vlgmr.msra.gmra.mxu1 %v2943_v19 }
 0x799   :  { %v2940_v21 = vpop.f32.mrf.mxu0 }
 0x79a   :  { %v2944_v28 = vpack.c.bf16 %v2940_v21, %v2940_v21 }
 0x79c   :  { %2966 = vmatmul.bf16.vlgmr.msra.gmra.mxu2 %v2944_v28 }
 0x811   :  { %v2954_v34 = vpop.f32.mrf.mxu1 }
 0x812   :  { %v2972_v59 = vsel %vm2971_vm12, %v2954_v34, -inf }
 0x813   :  { %2973 = vmax.xlane.f32.xlu2 %v2972_v59 }
 0x819   :  { %v2956_v12 = vpop.f32.mrf.mxu1 }
 0x81f   :  { %v2967_v6 = vpop.f32.mrf.mxu2 }
 0x820   :  { %v2975_v13 = vsel %vm2971_vm12, %v2967_v6, -inf }
 0x821   :  { %2976 = vmax.xlane.f32.xlu0 %v2975_v13 }
 0x827   :  { %v2969_v37 = vpop.f32.mrf.mxu2 }
 0x886   :  { %v2974_v22 = vpop.xlane.xlu2 %2973 }
 0x887   :  { %v2978_v27 = vsub.f32 %v2954_v34, %v2974_v22 }
 0x889   :  { %v2980_v31 = vmul.f32 1.442695, %v2978_v27 }
 0x88b   :  { %4340 = vpow2.f32 %v2980_v31 }
 0x891   :  { %v4341_v39 = vpop.eup %4340 }
 0x892   :  { %v2984_v43 = vsel %vm2971_vm12, %v4341_v39, 0.0 }
 0x893   :  { %2985 = vadd.xlane.f32.xlu1 %v2984_v43 }
 0x894   :  { %v2977_v2 = vpop.xlane.xlu0 %2976 }
 0x895   :  { %v2979_v5 = vsub.f32 %v2967_v6, %v2977_v2 }
 0x897   :  { %v2982_v61 = vmul.f32 1.442695, %v2979_v5 }
 0x899   :  { %4342 = vpow2.f32 %v2982_v61 }
 0x89f   :  { %v4343_v7 = vpop.eup %4342 }
 0x8a0   :  { %v2987_v49 = vsel %vm2971_vm12, %v4343_v7, 0.0 }
 0x8a1   :  { %2988 = vadd.xlane.f32.xlu2 %v2987_v49 }
 0x906   :  { %v2986_v57 = vpop.xlane.xlu1 %2985 }
 0x907   :  { %4344 = vrcp.f32 %v2986_v57 }
 0x90d   :  { %v4345_v63 = vpop.eup %4344 }
 0x90e   :  { %v2992_v1 = vmul.f32 %v4345_v63, %v4341_v39 }
 0x910   :  { %v2994_v10 = vpack.c.bf16 %v2992_v1, %v2992_v1 }
 0x912   :  { %3922 = vmatmul.msk.bf16.vlgmr.msra.gmra.mxu3 %vm2971_vm12, %v2994_v10 }
 0x914   :  { %v2989_v56 = vpop.xlane.xlu2 %2988 }
 0x915   :  { %4346 = vrcp.f32 %v2989_v56 }
 0x91b   :  { %v4347_v14 = vpop.eup %4346 }
 0x91c   :  { %v2993_v25 = vmul.f32 %v4347_v14, %v4343_v7 }
 0x91e   :  { %v2995_v46 = vpack.c.bf16 %v2993_v25, %v2993_v25 }
 0x920   :  { %3923 = vmatmul.msk.bf16.vlgmr.msrb.gmra.mxu1 %vm2971_vm12, %v2995_v46 }
 0x995   :  { %v3011_v44 = vpop.f32.mrf.mxu3 }
 0x99d   :  { %v3013_v0 = vpop.f32.mrf.mxu3  ;;  %v3030_v52 = vpop.f32.mrf.mxu1 }
 0x99e   :  { %v3034_v4 = vpack.c.bf16 %v3030_v52, %v3011_v44 }
 0x9a0   :  { %3111 = vmatmul.bf16.vlgmr.msrb.gmra.mxu2 %v3034_v4 }
 0x9a5   :  { %v3032_v38 = vpop.f32.mrf.mxu1 }
 0xa23   :  { %v3112_v55 = vpop.f32.mrf.mxu2 }
 0xa24   :  { %v3113_v18 = vadd.f32 %v4210_v42, %v3112_v55 }
 0xa26   :  { %v3117_v60 = vmax.f32 %v3113_v18, 0.0 }
 0xa2b   :  { %v3114_v23 = vpop.f32.mrf.mxu2 }
 0xa2c   :  { %v3115_v58 = vadd.f32 %v4210_v42, %v3114_v23 }
 0xa2e   :  { %v3118_v41 = vmax.f32 %v3115_v58, 0.0 }
 0xa30   :  { %v3119_v20 = vpack.c.bf16 %v3118_v41, %v3117_v60 }
 0xa32   :  { %3196 = vmatmul.bf16.vlgmr.msrb.gmra.mxu3 %v3119_v20 }
 0xab5   :  { %v3197_v29 = vpop.f32.mrf.mxu3 }
 0xab6   :  { %v3198_v3 = vadd.f32 %v4211_v47, %v3197_v29 }
 0xab8   :  { %3202 = vst [vmem:[#allocation15] sm:$0xff] %v3198_v3 }
 0xabd   :  { %v3199_v17 = vpop.f32.mrf.mxu3 }
 0xabe   :  { %v3200_v15 = vadd.f32 %v4211_v47, %v3199_v17 }
 0xac0   :  { %3203 = vst [vmem:[#allocation15 + $0x8] sm:$0xff] %v3200_v15 }
 0xac1   :  { %3216 = dma.vmem_to_hbm [thread:$0]  %s3209_s21, 256, %s3211_s7, [#allocation6], %s4540_s23, %s4540_s23, %s4541_s24  }
 0xac2   :  { %4524 = dma.done.wait [#allocation6], 256  }
 0xac3   :  { %4525 = vsyncadd [#allocation6], 4294967040 }
 0xac4   :  { %3221 = vsyncpa [#allocation5], 1 }
 0xac5   :  { %3222 = vsyncpa [#allocation8], 1 }
 0xac6   :  { %3223 = vsyncpa [#allocation11], 1 }
 0xac7   :  { %3224 = vsyncpa [#allocation14], 1 }
 0xac8   :  { %3225 = vsyncpa [#allocation6], 1 }

</bundles_post_ra>
